<compile_context>
chip_gen: v6e
topology: v6e:2x2x1
jax: 0.10.0
libtpu: 0.0.40
codegen_flags: <defaults>
</compile_context>

<pallas_src>
import functools
import math

import numpy as np
import jax
import jax.numpy as jnp
from jax import lax
from jax.experimental import pallas as pl
from jax.experimental.pallas import tpu as pltpu


def _round_up(v, m):
    return (v + m - 1) // m * m


def _mxu_is_narrow():
    """True for TPU generations with a 128-wide MXU (v5 and older)."""
    try:
        kind = jax.devices()[0].device_kind.lower()
    except Exception:
        return True
    return any(tag in kind for tag in ("v2", "v3", "v4", "v5"))


def _physical_vmem_bytes():
    try:
        return int(pltpu.get_tpu_info().vmem_capacity_bytes)
    except Exception:
        return 64 * 1024 * 1024  # conservative: v7x per-TensorCore VMEM


# ---------------------------------------------------------------------------
# Fused conv kernel (stride == 1): grid = (B, OCp/TN, OHp/TOH)
# ---------------------------------------------------------------------------
def _conv_fused_kernel(x_ref, w_ref, b_ref, o_ref, *, kh, kw, dh, dw, toh):
    # x_ref : (1, Hp, Wp, C)      padded image of this batch (bf16, resident)
    # w_ref : (KH*KW, C, TN)      all taps of this OC tile (bf16, resident)
    # b_ref : (1, TN)             bias slice (f32)
    # o_ref : (1, TOH, OW, TN)    output tile
    _, _, ow, tn = o_ref.shape
    c = w_ref.shape[1]

    t = pl.program_id(2)
    row_base = t * toh
    if toh % 8 == 0:
        row_base = pl.multiple_of(row_base, 8)

    # Static tap loop: per-tap (TOH*OW, C) @ (C, TN) MXU matmuls, accumulated
    # in vregs (f32).  No accumulator scratch RMW, no per-tap grid steps.
    # TODO(synk): for very small C also fold the taps into the contraction
    # dimension (in-VMEM im2col) to deepen the MXU contraction.
    acc = None
    for tap in range(kh * kw):
        ti, tj = tap // kw, tap % kw
        slab = x_ref[0, pl.ds(row_base + ti * dh, toh), pl.ds(tj * dw, ow), :]
        part = jnp.dot(slab.reshape(toh * ow, c), w_ref[tap],
                       preferred_element_type=jnp.float32)
        acc = part if acc is None else acc + part

    res = acc + b_ref[...]                       # bias add in f32
    # TODO(synk): when OW % 8 != 0 this reshape crosses the (8,128) tile
    # boundary; padding OW would make it a free layout no-op.
    o_ref[0] = res.reshape(toh, ow, tn).astype(o_ref.dtype)


def _conv_taps_fused(x_nhwc, w_taps, b_row, OH, OW, KH, KW, dH, dW, *, out_dtype):
    B, Hp, Wp, C = x_nhwc.shape
    ntaps, _, OCp = w_taps.shape

    # OC tile: 256 lanes only where the MXU is 256 wide (v6e/v7x), else 128.
    TN = 256 if (OCp % 256 == 0 and not _mxu_is_narrow()) else 128
    # Row tile: keep the matmul M dim (= TOH*OW) moderate so the f32 vreg
    # accumulator (M*TN*4 bytes) does not spill heavily.
    target_m = max(8, 32768 // TN)
    TOH = max(1, min(OH, target_m // max(OW, 1)))
    OHp = _round_up(OH, TOH)                     # no exact-divisor requirement

    # Make sure every row tile (including the padded tail) has a full window.
    eff_kh = (KH - 1) * dH + 1
    hp_need = OHp + eff_kh - 1
    if hp_need > Hp:
        x_nhwc = jnp.pad(x_nhwc, ((0, 0), (0, hp_need - Hp), (0, 0), (0, 0)))
        Hp = hp_need

    grid = (B, OCp // TN, OHp // TOH)

    # --- generation-portable VMEM budgeting -------------------------------
    in_b = np.dtype(x_nhwc.dtype).itemsize
    out_b = np.dtype(out_dtype).itemsize
    img_bytes = Hp * Wp * C * in_b
    core_bytes = (2 * ntaps * C * TN * in_b      # weight block (dbl-buffered)
                  + 2 * TN * 4                   # bias block
                  + 2 * TOH * OW * TN * out_b    # output block
                  + (1 << 20))                   # slack
    phys = _physical_vmem_bytes()
    cap = max(phys * 13 // 16, 32 * 1024 * 1024)   # ~81% of physical VMEM

    # The image block index changes only with the outermost batch axis; when
    # it is large, single-buffer it so it is not double-buffered in VMEM (the
    # lost overlap is one image DMA per batch, amortised over the grid).
    single_buffer_img = 2 * img_bytes + core_bytes > cap // 2
    need = (1 if single_buffer_img else 2) * img_bytes + core_bytes
    # TODO(synk): halo-tiled spatial blocking (manual DMA of a
    # (TOH + eff_kh - 1, Wp, C) window per row tile) for images that do not
    # fit VMEM even single-buffered (v7x: 64 MiB per TensorCore).
    vmem_limit = int(min(max(need * 5 // 4, 32 * 1024 * 1024), cap))

    x_spec_kwargs = {}
    if single_buffer_img:
        x_spec_kwargs["pipeline_mode"] = pl.Buffered(1)

    kernel = functools.partial(_conv_fused_kernel,
                               kh=KH, kw=KW, dh=dH, dw=dW, toh=TOH)

    out = pl.pallas_call(
        kernel,
        out_shape=jax.ShapeDtypeStruct((B, OHp, OW, OCp), out_dtype),
        grid_spec=pltpu.PrefetchScalarGridSpec(
            num_scalar_prefetch=0,
            grid=grid,
            in_specs=[
                # Full padded image per batch; block index invariant over
                # (n, t) => DMA'd from HBM once per batch.
                pl.BlockSpec((1, Hp, Wp, C), lambda b, n, t: (b, 0, 0, 0),
                             **x_spec_kwargs),
                # All taps of one OC tile; invariant over the row-tile axis
                # => weights are NOT re-fetched per row tile.
                pl.BlockSpec((ntaps, C, TN), lambda b, n, t: (0, 0, n)),
                pl.BlockSpec((1, TN), lambda b, n, t: (0, n)),
            ],
            out_specs=pl.BlockSpec((1, TOH, OW, TN),
                                   lambda b, n, t: (b, t, 0, n)),
        ),
        compiler_params=pltpu.CompilerParams(
            dimension_semantics=("parallel", "parallel", "parallel"),
            vmem_limit_bytes=vmem_limit),
    )(x_nhwc, w_taps, b_row)

    return out[:, :OH] if OHp != OH else out


# ---------------------------------------------------------------------------
# Strided-conv fallback: plain-JAX im2col + tiled Pallas GEMM (+ bias)
# ---------------------------------------------------------------------------
def _gemm_bias_kernel(p_ref, w_ref, b_ref, o_ref, acc_ref):
    k = pl.program_id(2)

    @pl.when(k == 0)
    def _init():
        acc_ref[...] = jnp.zeros_like(acc_ref)

    acc_ref[...] += jnp.dot(p_ref[...], w_ref[...],
                            preferred_element_type=jnp.float32)

    @pl.when(k == pl.num_programs(2) - 1)
    def _finalize():
        o_ref[...] = (acc_ref[...] + b_ref[...]).astype(o_ref.dtype)


def _gemm_bias(patches, w_mat, b_row, out_dtype):
    M, K = patches.shape
    N = w_mat.shape[1]                    # already a multiple of 128

    narrow = _mxu_is_narrow()
    TN = 256 if (N % 256 == 0 and not narrow) else 128
    TM = min(128 if narrow else 256, _round_up(M, 8))
    # Full-K blocks only while they are small; otherwise stream K tiles
    # through an accumulator (the scoped-VMEM default is only 16 MiB on v5e).
    TK = K if K <= 2048 else 512

    m_pad = _round_up(M, TM)
    k_pad = _round_up(K, TK)
    if m_pad != M or k_pad != K:
        patches = jnp.pad(patches, ((0, m_pad - M), (0, k_pad - K)))
    if k_pad != K:
        w_mat = jnp.pad(w_mat, ((0, k_pad - K), (0, 0)))

    out = pl.pallas_call(
        _gemm_bias_kernel,
        out_shape=jax.ShapeDtypeStruct((m_pad, N), out_dtype),
        grid_spec=pltpu.PrefetchScalarGridSpec(
            num_scalar_prefetch=0,
            grid=(m_pad // TM, N // TN, k_pad // TK),
            in_specs=[
                pl.BlockSpec((TM, TK), lambda i, j, k: (i, k)),
                pl.BlockSpec((TK, TN), lambda i, j, k: (k, j)),
                pl.BlockSpec((1, TN), lambda i, j, k: (0, j)),
            ],
            out_specs=pl.BlockSpec((TM, TN), lambda i, j, k: (i, j)),
            scratch_shapes=[pltpu.VMEM((TM, TN), jnp.float32)],
        ),
        compiler_params=pltpu.CompilerParams(
            dimension_semantics=("parallel", "parallel", "arbitrary")),
    )(patches, w_mat, b_row)
    return out[:M]


# ---------------------------------------------------------------------------
# conv2d with the ("buggy") "same"-padding semantics of the reference module
# ---------------------------------------------------------------------------
def conv2d_same_padding_pallas(x, weight, bias, stride=(1, 1), dilation=(1, 1),
                               groups=1, compute_dtype=jnp.bfloat16,
                               data_format="NCHW"):
    """Forward pass of the reference h_net Conv2d ("same" padding).

    NOTE: the reference derives the COLUMN padding from the ROW quantities;
    that quirk is reproduced on purpose.  MXU operands are `compute_dtype`
    (bf16 default) with f32 accumulation (~1e-2 vs an f32 reference); pass
    compute_dtype=jnp.float32 for full precision.  data_format="NHWC" skips
    the NCHW<->NHWC transposes entirely for callers already in NHWC.
    """
    assert groups == 1  # TODO(synk): grouped / depthwise conv not implemented.
    if data_format == "NCHW":
        B, C, H, W = x.shape
    else:
        B, H, W, C = x.shape
    OC, _, KH, KW = weight.shape
    sH, sW = stride
    dH, dW = dilation

    # Reproduce the reference padding math exactly (cols derived from rows).
    out_rows = (H + sH - 1) // sH
    padding_rows = max(0, (out_rows - 1) * sH + (KH - 1) * dH + 1 - H)
    rows_odd = int(padding_rows % 2 != 0)
    padding_cols = padding_rows
    cols_odd = rows_odd
    ph, pw = padding_rows // 2, padding_cols // 2

    x_nhwc = jnp.transpose(x, (0, 2, 3, 1)) if data_format == "NCHW" else x
    # TODO(synk): fold the zero-padding into the kernel (masked boundary tap
    # loads) to avoid this extra HBM round trip for large inputs.
    x_nhwc = jnp.pad(x_nhwc, ((0, 0), (ph, ph + rows_odd),
                              (pw, pw + cols_odd), (0, 0))).astype(compute_dtype)
    Hp, Wp = x_nhwc.shape[1], x_nhwc.shape[2]
    eff_kh = (KH - 1) * dH + 1
    eff_kw = (KW - 1) * dW + 1
    OH = (Hp - eff_kh) // sH + 1
    OW = (Wp - eff_kw) // sW + 1

    OCp = _round_up(OC, 128)                     # lane-dense output stores
    w_taps = jnp.transpose(weight, (2, 3, 1, 0)).reshape(KH * KW, C, OC)
    if OCp != OC:
        w_taps = jnp.pad(w_taps, ((0, 0), (0, 0), (0, OCp - OC)))
    w_taps = w_taps.astype(compute_dtype)
    b_row = bias.astype(jnp.float32)
    if OCp != OC:
        b_row = jnp.pad(b_row, (0, OCp - OC))
    b_row = b_row.reshape(1, OCp)

    out_dtype = x.dtype

    if sH == 1 and sW == 1:
        out_nhwc = _conv_taps_fused(x_nhwc, w_taps, b_row, OH, OW, KH, KW,
                                    dH, dW, out_dtype=out_dtype)
    else:
        # TODO(synk): handle stride in the fused kernel via strided pl.ds
        # loads; for now fall back to im2col + tiled Pallas GEMM.
        taps = []
        for i in range(KH):
            for j in range(KW):
                taps.append(x_nhwc[:, i * dH: i * dH + (OH - 1) * sH + 1: sH,
                                      j * dW: j * dW + (OW - 1) * sW + 1: sW, :])
        patches = jnp.stack(taps, axis=3).reshape(B * OH * OW, KH * KW * C)
        w_mat = w_taps.reshape(KH * KW * C, OCp)
        out_nhwc = _gemm_bias(patches, w_mat, b_row, out_dtype)
        out_nhwc = out_nhwc.reshape(B, OH, OW, OCp)

    if OCp != OC:
        out_nhwc = out_nhwc[..., :OC]
    if data_format == "NCHW":
        return jnp.transpose(out_nhwc, (0, 3, 1, 2))
    return out_nhwc


# ---------------------------------------------------------------------------
# Module-equivalent wrapper with deterministic parameter init
# ---------------------------------------------------------------------------
class Conv2dPallas:
    """Pallas equivalent of the reference Conv2d (same-padding forward)."""

    def __init__(self, in_channels, out_channels, kernel_size, stride=1,
                 dilation=1, groups=1, key=None):
        kh, kw = ((kernel_size, kernel_size) if isinstance(kernel_size, int)
                  else kernel_size)
        self.stride = (stride, stride) if isinstance(stride, int) else stride
        self.dilation = (dilation, dilation) if isinstance(dilation, int) else dilation
        self.groups = groups

        n = in_channels * kh * kw
        stdv = 1.0 / math.sqrt(n)
        k_w, k_b = jax.random.split(key)
        self.weight = jax.random.uniform(
            k_w, (out_channels, in_channels // groups, kh, kw),
            dtype=jnp.float32, minval=-stdv, maxval=stdv)
        self.bias = jax.random.uniform(
            k_b, (out_channels,), dtype=jnp.float32, minval=-stdv, maxval=stdv)

    def __call__(self, x):
        return conv2d_same_padding_pallas(
            x, self.weight, self.bias,
            stride=self.stride, dilation=self.dilation, groups=self.groups)


if __name__ == "__main__":
    key = jax.random.PRNGKey(0)
    k_x, k_p = jax.random.split(key)

    B, C, H, W = 2, 4, 16, 16
    OC, KSIZE = 8, 3
    x = jax.random.normal(k_x, (B, C, H, W), dtype=jnp.float32)

    # --- stride=1, dilation=1 ("same" padding == 1 each side) ----------------
    conv = Conv2dPallas(C, OC, KSIZE, stride=1, dilation=1, groups=1, key=k_p)
    out = jax.block_until_ready(conv(x))
    assert out.shape == (B, OC, H, W), out.shape
    ref = lax.conv_general_dilated(
        x, conv.weight, window_strides=(1, 1), padding=((1, 1), (1, 1)),
        rhs_dilation=(1, 1), dimension_numbers=("NCHW", "OIHW", "NCHW"),
    ) + conv.bias.reshape(1, OC, 1, 1)
    err = float(jnp.max(jnp.abs(out - ref)))
    assert jnp.allclose(out, ref, atol=2e-2, rtol=2e-2), err

    # --- dilation=2 (exercises dilated tap offsets in the fused kernel) ------
    conv2 = Conv2dPallas(C, OC, KSIZE, stride=1, dilation=2, groups=1, key=k_p)
    out2 = jax.block_until_ready(conv2(x))
    assert out2.shape == (B, OC, H, W), out2.shape
    ref2 = lax.conv_general_dilated(
        x, conv2.weight, window_strides=(1, 1), padding=((2, 2), (2, 2)),
        rhs_dilation=(2, 2), dimension_numbers=("NCHW", "OIHW", "NCHW"),
    ) + conv2.bias.reshape(1, OC, 1, 1)
    err2 = float(jnp.max(jnp.abs(out2 - ref2)))
    assert jnp.allclose(out2, ref2, atol=2e-2, rtol=2e-2), err2

    # --- stride=2 (exercises the im2col + tiled-GEMM fallback) ---------------
    conv3 = Conv2dPallas(C, OC, KSIZE, stride=2, dilation=1, groups=1, key=k_p)
    out3 = jax.block_until_ready(conv3(x))
    assert out3.shape == (B, OC, H // 2, W // 2), out3.shape
    ref3 = lax.conv_general_dilated(
        x, conv3.weight, window_strides=(2, 2), padding=((0, 1), (0, 1)),
        rhs_dilation=(1, 1), dimension_numbers=("NCHW", "OIHW", "NCHW"),
    ) + conv3.bias.reshape(1, OC, 1, 1)
    err3 = float(jnp.max(jnp.abs(out3 - ref3)))
    assert jnp.allclose(out3, ref3, atol=2e-2, rtol=2e-2), err3

    print("KERNEL_OK")
</pallas_src>

<mosaic_0001>
module attributes {stable_mosaic.version = 11 : i64} {
  func.func @_conv_fused_kernel(%arg0: i32, %arg1: i32, %arg2: i32, %arg3: memref<1x18x18x4xbf16, #tpu.memory_space<vmem>>, %arg4: memref<9x4x128xbf16, #tpu.memory_space<vmem>>, %arg5: memref<1x128xf32, #tpu.memory_space<vmem>>, %arg6: memref<1x16x16x128xf32, #tpu.memory_space<vmem>>) attributes {dimension_semantics = [#tpu.dimension_semantics<parallel>, #tpu.dimension_semantics<parallel>, #tpu.dimension_semantics<parallel>], iteration_bounds = array<i64: 2, 1, 1>, scalar_prefetch = 0 : i64, scratch_operands = 0 : i64, tpu.core_type = #tpu.core_type<tc>, window_params = [{transform_indices = @transform_0, window_bounds = array<i64: 1, 18, 18, 4>}, {transform_indices = @transform_1, window_bounds = array<i64: 9, 4, 128>}, {transform_indices = @transform_2, window_bounds = array<i64: 1, 128>}, {transform_indices = @transform_3, window_bounds = array<i64: 1, 16, 16, 128>}]} {
    %c16_i32 = arith.constant 16 : i32
    %0 = arith.muli %arg2, %c16_i32 : i32
    %1 = tpu.assume_multiple %0, 8 : i32
    %c0_i32 = arith.constant 0 : i32
    %2 = arith.addi %1, %c0_i32 : i32
    %c0 = arith.constant 0 : index
    %3 = arith.index_cast %2 : i32 to index
    %c0_0 = arith.constant 0 : index
    %c0_1 = arith.constant 0 : index
    %4 = vector.load %arg3[%c0, %3, %c0_0, %c0_1] : memref<1x18x18x4xbf16, #tpu.memory_space<vmem>>, vector<1x16x16x4xbf16>
    %5 = vector.shape_cast %4 : vector<1x16x16x4xbf16> to vector<16x16x4xbf16>
    %6 = vector.shape_cast %5 : vector<16x16x4xbf16> to vector<256x4xbf16>
    %c0_2 = arith.constant 0 : index
    %c0_3 = arith.constant 0 : index
    %c0_4 = arith.constant 0 : index
    %7 = vector.load %arg4[%c0_2, %c0_3, %c0_4] : memref<9x4x128xbf16, #tpu.memory_space<vmem>>, vector<1x4x128xbf16>
    %8 = vector.shape_cast %7 : vector<1x4x128xbf16> to vector<4x128xbf16>
    %cst = arith.constant dense<0.000000e+00> : vector<256x128xf32>
    %9 = tpu.matmul %6, %8, %cst {dimension_numbers = #tpu.dot_dimension_numbers<[1], [0], [0], [1], [0, 0, 1, 1], [], []>} : vector<256x4xbf16>, vector<4x128xbf16>, vector<256x128xf32> -> vector<256x128xf32>
    %c0_i32_5 = arith.constant 0 : i32
    %10 = arith.addi %1, %c0_i32_5 : i32
    %c0_6 = arith.constant 0 : index
    %11 = arith.index_cast %10 : i32 to index
    %c1 = arith.constant 1 : index
    %c0_7 = arith.constant 0 : index
    %12 = vector.load %arg3[%c0_6, %11, %c1, %c0_7] : memref<1x18x18x4xbf16, #tpu.memory_space<vmem>>, vector<1x16x16x4xbf16>
    %13 = vector.shape_cast %12 : vector<1x16x16x4xbf16> to vector<16x16x4xbf16>
    %14 = vector.shape_cast %13 : vector<16x16x4xbf16> to vector<256x4xbf16>
    %c1_8 = arith.constant 1 : index
    %c0_9 = arith.constant 0 : index
    %c0_10 = arith.constant 0 : index
    %15 = vector.load %arg4[%c1_8, %c0_9, %c0_10] : memref<9x4x128xbf16, #tpu.memory_space<vmem>>, vector<1x4x128xbf16>
    %16 = vector.shape_cast %15 : vector<1x4x128xbf16> to vector<4x128xbf16>
    %cst_11 = arith.constant dense<0.000000e+00> : vector<256x128xf32>
    %17 = tpu.matmul %14, %16, %cst_11 {dimension_numbers = #tpu.dot_dimension_numbers<[1], [0], [0], [1], [0, 0, 1, 1], [], []>} : vector<256x4xbf16>, vector<4x128xbf16>, vector<256x128xf32> -> vector<256x128xf32>
    %18 = arith.addf %9, %17 : vector<256x128xf32>
    %c0_i32_12 = arith.constant 0 : i32
    %19 = arith.addi %1, %c0_i32_12 : i32
    %c0_13 = arith.constant 0 : index
    %20 = arith.index_cast %19 : i32 to index
    %c2 = arith.constant 2 : index
    %c0_14 = arith.constant 0 : index
    %21 = vector.load %arg3[%c0_13, %20, %c2, %c0_14] : memref<1x18x18x4xbf16, #tpu.memory_space<vmem>>, vector<1x16x16x4xbf16>
    %22 = vector.shape_cast %21 : vector<1x16x16x4xbf16> to vector<16x16x4xbf16>
    %23 = vector.shape_cast %22 : vector<16x16x4xbf16> to vector<256x4xbf16>
    %c2_15 = arith.constant 2 : index
    %c0_16 = arith.constant 0 : index
    %c0_17 = arith.constant 0 : index
    %24 = vector.load %arg4[%c2_15, %c0_16, %c0_17] : memref<9x4x128xbf16, #tpu.memory_space<vmem>>, vector<1x4x128xbf16>
    %25 = vector.shape_cast %24 : vector<1x4x128xbf16> to vector<4x128xbf16>
    %cst_18 = arith.constant dense<0.000000e+00> : vector<256x128xf32>
    %26 = tpu.matmul %23, %25, %cst_18 {dimension_numbers = #tpu.dot_dimension_numbers<[1], [0], [0], [1], [0, 0, 1, 1], [], []>} : vector<256x4xbf16>, vector<4x128xbf16>, vector<256x128xf32> -> vector<256x128xf32>
    %27 = arith.addf %18, %26 : vector<256x128xf32>
    %c1_i32 = arith.constant 1 : i32
    %28 = arith.addi %1, %c1_i32 : i32
    %c0_19 = arith.constant 0 : index
    %29 = arith.index_cast %28 : i32 to index
    %c0_20 = arith.constant 0 : index
    %c0_21 = arith.constant 0 : index
    %30 = vector.load %arg3[%c0_19, %29, %c0_20, %c0_21] : memref<1x18x18x4xbf16, #tpu.memory_space<vmem>>, vector<1x16x16x4xbf16>
    %31 = vector.shape_cast %30 : vector<1x16x16x4xbf16> to vector<16x16x4xbf16>
    %32 = vector.shape_cast %31 : vector<16x16x4xbf16> to vector<256x4xbf16>
    %c3 = arith.constant 3 : index
    %c0_22 = arith.constant 0 : index
    %c0_23 = arith.constant 0 : index
    %33 = vector.load %arg4[%c3, %c0_22, %c0_23] : memref<9x4x128xbf16, #tpu.memory_space<vmem>>, vector<1x4x128xbf16>
    %34 = vector.shape_cast %33 : vector<1x4x128xbf16> to vector<4x128xbf16>
    %cst_24 = arith.constant dense<0.000000e+00> : vector<256x128xf32>
    %35 = tpu.matmul %32, %34, %cst_24 {dimension_numbers = #tpu.dot_dimension_numbers<[1], [0], [0], [1], [0, 0, 1, 1], [], []>} : vector<256x4xbf16>, vector<4x128xbf16>, vector<256x128xf32> -> vector<256x128xf32>
    %36 = arith.addf %27, %35 : vector<256x128xf32>
    %c1_i32_25 = arith.constant 1 : i32
    %37 = arith.addi %1, %c1_i32_25 : i32
    %c0_26 = arith.constant 0 : index
    %38 = arith.index_cast %37 : i32 to index
    %c1_27 = arith.constant 1 : index
    %c0_28 = arith.constant 0 : index
    %39 = vector.load %arg3[%c0_26, %38, %c1_27, %c0_28] : memref<1x18x18x4xbf16, #tpu.memory_space<vmem>>, vector<1x16x16x4xbf16>
    %40 = vector.shape_cast %39 : vector<1x16x16x4xbf16> to vector<16x16x4xbf16>
    %41 = vector.shape_cast %40 : vector<16x16x4xbf16> to vector<256x4xbf16>
    %c4 = arith.constant 4 : index
    %c0_29 = arith.constant 0 : index
    %c0_30 = arith.constant 0 : index
    %42 = vector.load %arg4[%c4, %c0_29, %c0_30] : memref<9x4x128xbf16, #tpu.memory_space<vmem>>, vector<1x4x128xbf16>
    %43 = vector.shape_cast %42 : vector<1x4x128xbf16> to vector<4x128xbf16>
    %cst_31 = arith.constant dense<0.000000e+00> : vector<256x128xf32>
    %44 = tpu.matmul %41, %43, %cst_31 {dimension_numbers = #tpu.dot_dimension_numbers<[1], [0], [0], [1], [0, 0, 1, 1], [], []>} : vector<256x4xbf16>, vector<4x128xbf16>, vector<256x128xf32> -> vector<256x128xf32>
    %45 = arith.addf %36, %44 : vector<256x128xf32>
    %c1_i32_32 = arith.constant 1 : i32
    %46 = arith.addi %1, %c1_i32_32 : i32
    %c0_33 = arith.constant 0 : index
    %47 = arith.index_cast %46 : i32 to index
    %c2_34 = arith.constant 2 : index
    %c0_35 = arith.constant 0 : index
    %48 = vector.load %arg3[%c0_33, %47, %c2_34, %c0_35] : memref<1x18x18x4xbf16, #tpu.memory_space<vmem>>, vector<1x16x16x4xbf16>
    %49 = vector.shape_cast %48 : vector<1x16x16x4xbf16> to vector<16x16x4xbf16>
    %50 = vector.shape_cast %49 : vector<16x16x4xbf16> to vector<256x4xbf16>
    %c5 = arith.constant 5 : index
    %c0_36 = arith.constant 0 : index
    %c0_37 = arith.constant 0 : index
    %51 = vector.load %arg4[%c5, %c0_36, %c0_37] : memref<9x4x128xbf16, #tpu.memory_space<vmem>>, vector<1x4x128xbf16>
    %52 = vector.shape_cast %51 : vector<1x4x128xbf16> to vector<4x128xbf16>
    %cst_38 = arith.constant dense<0.000000e+00> : vector<256x128xf32>
    %53 = tpu.matmul %50, %52, %cst_38 {dimension_numbers = #tpu.dot_dimension_numbers<[1], [0], [0], [1], [0, 0, 1, 1], [], []>} : vector<256x4xbf16>, vector<4x128xbf16>, vector<256x128xf32> -> vector<256x128xf32>
    %54 = arith.addf %45, %53 : vector<256x128xf32>
    %c2_i32 = arith.constant 2 : i32
    %55 = arith.addi %1, %c2_i32 : i32
    %c0_39 = arith.constant 0 : index
    %56 = arith.index_cast %55 : i32 to index
    %c0_40 = arith.constant 0 : index
    %c0_41 = arith.constant 0 : index
    %57 = vector.load %arg3[%c0_39, %56, %c0_40, %c0_41] : memref<1x18x18x4xbf16, #tpu.memory_space<vmem>>, vector<1x16x16x4xbf16>
    %58 = vector.shape_cast %57 : vector<1x16x16x4xbf16> to vector<16x16x4xbf16>
    %59 = vector.shape_cast %58 : vector<16x16x4xbf16> to vector<256x4xbf16>
    %c6 = arith.constant 6 : index
    %c0_42 = arith.constant 0 : index
    %c0_43 = arith.constant 0 : index
    %60 = vector.load %arg4[%c6, %c0_42, %c0_43] : memref<9x4x128xbf16, #tpu.memory_space<vmem>>, vector<1x4x128xbf16>
    %61 = vector.shape_cast %60 : vector<1x4x128xbf16> to vector<4x128xbf16>
    %cst_44 = arith.constant dense<0.000000e+00> : vector<256x128xf32>
    %62 = tpu.matmul %59, %61, %cst_44 {dimension_numbers = #tpu.dot_dimension_numbers<[1], [0], [0], [1], [0, 0, 1, 1], [], []>} : vector<256x4xbf16>, vector<4x128xbf16>, vector<256x128xf32> -> vector<256x128xf32>
    %63 = arith.addf %54, %62 : vector<256x128xf32>
    %c2_i32_45 = arith.constant 2 : i32
    %64 = arith.addi %1, %c2_i32_45 : i32
    %c0_46 = arith.constant 0 : index
    %65 = arith.index_cast %64 : i32 to index
    %c1_47 = arith.constant 1 : index
    %c0_48 = arith.constant 0 : index
    %66 = vector.load %arg3[%c0_46, %65, %c1_47, %c0_48] : memref<1x18x18x4xbf16, #tpu.memory_space<vmem>>, vector<1x16x16x4xbf16>
    %67 = vector.shape_cast %66 : vector<1x16x16x4xbf16> to vector<16x16x4xbf16>
    %68 = vector.shape_cast %67 : vector<16x16x4xbf16> to vector<256x4xbf16>
    %c7 = arith.constant 7 : index
    %c0_49 = arith.constant 0 : index
    %c0_50 = arith.constant 0 : index
    %69 = vector.load %arg4[%c7, %c0_49, %c0_50] : memref<9x4x128xbf16, #tpu.memory_space<vmem>>, vector<1x4x128xbf16>
    %70 = vector.shape_cast %69 : vector<1x4x128xbf16> to vector<4x128xbf16>
    %cst_51 = arith.constant dense<0.000000e+00> : vector<256x128xf32>
    %71 = tpu.matmul %68, %70, %cst_51 {dimension_numbers = #tpu.dot_dimension_numbers<[1], [0], [0], [1], [0, 0, 1, 1], [], []>} : vector<256x4xbf16>, vector<4x128xbf16>, vector<256x128xf32> -> vector<256x128xf32>
    %72 = arith.addf %63, %71 : vector<256x128xf32>
    %c2_i32_52 = arith.constant 2 : i32
    %73 = arith.addi %1, %c2_i32_52 : i32
    %c0_53 = arith.constant 0 : index
    %74 = arith.index_cast %73 : i32 to index
    %c2_54 = arith.constant 2 : index
    %c0_55 = arith.constant 0 : index
    %75 = vector.load %arg3[%c0_53, %74, %c2_54, %c0_55] : memref<1x18x18x4xbf16, #tpu.memory_space<vmem>>, vector<1x16x16x4xbf16>
    %76 = vector.shape_cast %75 : vector<1x16x16x4xbf16> to vector<16x16x4xbf16>
    %77 = vector.shape_cast %76 : vector<16x16x4xbf16> to vector<256x4xbf16>
    %c8 = arith.constant 8 : index
    %c0_56 = arith.constant 0 : index
    %c0_57 = arith.constant 0 : index
    %78 = vector.load %arg4[%c8, %c0_56, %c0_57] : memref<9x4x128xbf16, #tpu.memory_space<vmem>>, vector<1x4x128xbf16>
    %79 = vector.shape_cast %78 : vector<1x4x128xbf16> to vector<4x128xbf16>
    %cst_58 = arith.constant dense<0.000000e+00> : vector<256x128xf32>
    %80 = tpu.matmul %77, %79, %cst_58 {dimension_numbers = #tpu.dot_dimension_numbers<[1], [0], [0], [1], [0, 0, 1, 1], [], []>} : vector<256x4xbf16>, vector<4x128xbf16>, vector<256x128xf32> -> vector<256x128xf32>
    %81 = arith.addf %72, %80 : vector<256x128xf32>
    %c0_59 = arith.constant 0 : index
    %c0_60 = arith.constant 0 : index
    %82 = vector.load %arg5[%c0_59, %c0_60] : memref<1x128xf32, #tpu.memory_space<vmem>>, vector<1x128xf32>
    %83 = vector.broadcast %82 : vector<1x128xf32> to vector<256x128xf32>
    %84 = arith.addf %81, %83 : vector<256x128xf32>
    %85 = vector.shape_cast %84 : vector<256x128xf32> to vector<16x16x128xf32>
    %c0_61 = arith.constant 0 : index
    %c0_62 = arith.constant 0 : index
    %c0_63 = arith.constant 0 : index
    %c0_64 = arith.constant 0 : index
    %86 = vector.load %arg6[%c0_61, %c0_62, %c0_63, %c0_64] : memref<1x16x16x128xf32, #tpu.memory_space<vmem>>, vector<1x16x16x128xf32>
    %87 = vector.shape_cast %86 : vector<1x16x16x128xf32> to vector<16x16x128xf32>
    %88 = vector.shape_cast %85 : vector<16x16x128xf32> to vector<1x16x16x128xf32>
    tpu.vector_store %arg6[%c0_61, %c0_62, %c0_63, %c0_64], %88 {strides = array<i32>} : memref<1x16x16x128xf32, #tpu.memory_space<vmem>>, vector<1x16x16x128xf32>,
    return
  }
  func.func @transform_0(%arg0: i32, %arg1: i32, %arg2: i32) -> (i32, i32, i32, i32) {
    %c0_i32 = arith.constant 0 : i32
    %c0_i32_0 = arith.constant 0 : i32
    %c0_i32_1 = arith.constant 0 : i32
    %c0_i32_2 = arith.constant 0 : i32
    return %arg0, %c0_i32, %c0_i32_0, %c0_i32_1 : i32, i32, i32, i32
  }
  func.func @transform_1(%arg0: i32, %arg1: i32, %arg2: i32) -> (i32, i32, i32) {
    %c0_i32 = arith.constant 0 : i32
    %c0_i32_0 = arith.constant 0 : i32
    %c0_i32_1 = arith.constant 0 : i32
    return %c0_i32, %c0_i32_0, %arg1 : i32, i32, i32
  }
  func.func @transform_2(%arg0: i32, %arg1: i32, %arg2: i32) -> (i32, i32) {
    %c0_i32 = arith.constant 0 : i32
    %c0_i32_0 = arith.constant 0 : i32
    return %c0_i32, %arg1 : i32, i32
  }
  func.func @transform_3(%arg0: i32, %arg1: i32, %arg2: i32) -> (i32, i32, i32, i32) {
    %c0_i32 = arith.constant 0 : i32
    %c0_i32_0 = arith.constant 0 : i32
    return %arg0, %arg2, %c0_i32, %arg1 : i32, i32, i32, i32
  }
}

</mosaic_0001>

<bundles_post_ra>
// kernel: tpu_custom_call.1
= control target key start
LH: loop header
LB: loop body
LE: loop exit
PB: predicated region body
PF: predicated region fallthrough
CT: control target
= control target key end

     0   :  { %8 = vsyncpa [#allocation3], 0  ;;  %s8975_s0 = inlined_call_operand.vmem [shape: bf16[2,18,18,4], index: 0, kind: input, shape index: {}]   ;;  %s8976_s1 = inlined_call_operand.vmem [shape: bf16[9,4,128], index: 1, kind: input, shape index: {}]   ;;  %s8977_s2 = inlined_call_operand.vmem [shape: f32[1,128], index: 2, kind: input, shape index: {}]   ;;  %s8978_s3 = inlined_call_operand.hbm [shape: f32[2,16,16,128], index: 3, kind: output, shape index: {}]  }
   0x1   :  { %10 = vsyncpa [#allocation3 + $0x1], 0  ;;  %s6229_s12 = smov 0   ;;  %s6231_s13 = smov 0  }
   0x2   :  { %s6233_s14 = smov 0   ;;  %s6235_s15 = smov 0  }
   0x3   :  { %s6237_s16 = smov 0   ;;  %s6239_s17 = smov 0  }
   0x4 LB: > { %s4997_s18 = sadd.s32 4294967295, %s6204_s17   ;;  %s4998_s19 = sadd.s32 4294967294, %s6204_s17   ;;  %s6204_s17 = sphi %s6239_s17, %s16_s17   ;;  %s6200_s16 = sphi %s6237_s16, %s9261_s16   ;;  %s6196_s15 = sphi %s6235_s15, %s9260_s15   ;;  %s6192_s14 = sphi %s6233_s14, %s9259_s14   ;;  %s6188_s13 = sphi %s6231_s13, %s9258_s13   ;;  %s6184_s12 = sphi %s6229_s12, %s9257_s12  }
   0x5   : > { %s35_s20 = sadd.s32 1, %s6200_s16  ;;  %s124_s21 = sadd.s32 1, %s6192_s14 }
   0x6   : > { %p37_p0 = scmp.ge.s32.totalorder %s35_s20, 2  ;;  %p134_p1 = scmp.ne.s32.totalorder %s6192_s14, %s6188_s13 }
   0x7   : > { %p135_p2 = scmp.eq.s32.totalorder %s4997_s18, 1  ;;  %p140_p3 = scmp.ne.s32.totalorder %s6188_s13, %s6184_s12 }
   0x8   : > { %s9263_s20 = smov (%p37_p0, %s35_s20), 0  ;;  %p141_p5 = scmp.eq.s32.totalorder %s4998_s19, 1 }
   0x9   : > { %p6269_p4 = por %p135_p2, %p134_p1  ;;  %s117_s23 = ssub.s32 %s6200_s16, %s9263_s20 }
   0xa   : > { %p5003_p6 = scmp.ge.s32.totalorder %s6204_s17, 1  ;;  %p122_p7 = scmp.eq.s32.totalorder %s117_s23, 0 }
   0xb   : > { %p6276_p8 = por %p141_p5, %p140_p3  ;;  %p180_p9 = scmp.lt.s32.totalorder %s6204_s17, 3 }
   0xc   : > { %s6282_s25 = scalar_select %p122_p7, %s6192_s14, %s124_s21  }
   0xd   : > { %p181_p10 = pnand %p5003_p6, %p180_p9 }
   0xf   : > { %184 = sbr.rel (%p181_p10) target bundleno = 577 (0x241), region = 32 }
  0x14   : > { %v5006_v0 = vld [vmem:[%s8976_s1 + $0x2] sm:$0x3]  ;;  %vm764_vm0 = vcmask 1041408   ;;  %p211_p11 = scmp.lt.s32.totalorder %s6196_s15, 1  ;;  %v261_v2 = vld [vmem:[%s8976_s1] sm:$0x3] }
  0x15   : > { %6011 = vmatprep.subr.msk.bf16.mxu1 %vm764_vm0, %v5006_v0  ;;  %6010 = vmatprep.subr.msk.bf16.mxu0 %vm764_vm0, %v5006_v0  ;;  %v766_v1 = vsel %vm764_vm0, %v5006_v0, 0  ;;  %v5087_v3 = vld [vmem:[%s8976_s1 + $0x4] sm:$0x3]  ;;  %vm278_vm1 = vsmask.f32 3328  ;;  %v6306_v4 = vsel %vm764_vm0, %v261_v2, 0 }
  0x16   : > { %6009 = vmatpush3.bf16.msra.mxu1 %v766_v1  ;;  %5703 = vmatpush3.bf16.msra.mxu0 %v766_v1  ;;  %s212_s30 = scalar_select %p211_p11, %s6196_s15, 1  ;;  %vm279_vm2 = vsmask.f32 7440  ;;  %vm715_vm3 = vcmask 31744   ;;  %v6332_v16 = vsel %vm764_vm0, %v5087_v3, 0  ;;  %vm1269_vm5 = vcmask 1042432  }
  0x17   : > { %6012 = vmatprep.subr.msk.bf16.mxu1 %vm764_vm0, %v261_v2  ;;  %6013 = vmatprep.subr.msk.bf16.mxu0 %vm764_vm0, %v5087_v3  ;;  %vm6347_vm4 = vmor %vm278_vm1, %vm279_vm2  ;;  %vm1270_vm6 = vcmask 1046532   ;;  %s208_s5 = sand.u32 1, %s6188_s13   ;;  %s5548_s10 = sshll.u32 %s6196_s15, 12 }
  0x18   : > { %s6020_s6 = smul.u32 216, %s212_s30  ;;  %vm6633_vm7 = vmor %vm1269_vm5, %vm1270_vm6  ;;  %s8921_s21 = scalar_lea.hbm %s8978_s3, %s5548_s10 }
  0x19   : > { %s8930_s15 = scalar_lea.sflag [#allocation3], %s208_s5  ;;  %s6206_s26 = smov [#allocation2]  }
  0x1a   : > { %s6303_s9 = scalar_lea.vmem %s8975_s0, %s6020_s6  ;;  %s5004_s6 = sshll.u32 %s208_s5, 8 }
  0x1b   : > { %v6309_v5 = vld [vmem:[%s6303_s9] sm:$0xf]  ;;  %v6312_v6 = vld [vmem:[%s6303_s9 + $0x4] sm:$0xf]  ;;  %v6315_v7 = vld [vmem:[%s6303_s9 + $0x8] sm:$0x1] }
  0x1c   : > { %v282_v8 = vshrl.u32 %v6309_v5, 16  ;;  %v285_v9 = vshll.u32 %v6309_v5, 16  ;;  %v291_v10 = vshll.u32 %v6312_v6, 16  ;;  %v295_v11 = vshrl.u32 %v6312_v6, 16  ;;  %v6322_v12 = vld [vmem:[%s6303_s9 + $0x60] sm:$0xf] }
  0x1d   : > { %v301_v13 = vshll.u32 %v6315_v7, 16  ;;  %v6326_v14 = vld [vmem:[%s6303_s9 + $0x64] sm:$0xf]  ;;  %v6329_v15 = vld [vmem:[%s6303_s9 + $0x68] sm:$0x1]  ;;  %v474_v22 = vshrl.u32 %v6322_v12, 16 }
  0x1e   : > { %v284_v17 = vrot.slane %v282_v8, 4  ;;  %v287_v18 = vrot.slane %v285_v9, 5  ;;  %v293_v19 = vrot.slane %v291_v10, 5  ;;  %v297_v20 = vrot.slane %v295_v11, 4  ;;  %v6340_v29 = vld [vmem:[%s6303_s9 + $0xc] sm:$0xf] }
  0x1f   : > { %v303_v21 = vrot.slane %v301_v13, 5  ;;  %v477_v23 = vshll.u32 %v6322_v12, 16  ;;  %v483_v24 = vshll.u32 %v6326_v14, 16  ;;  %v487_v27 = vshrl.u32 %v6326_v14, 16  ;;  %v6343_v30 = vld [vmem:[%s6303_s9 + $0x10] sm:$0xf] }
  0x20   : > { %v288_v25 = vor.u32 %v287_v18, %v284_v17  ;;  %v298_v26 = vor.u32 %v297_v20, %v293_v19  ;;  %v493_v28 = vshll.u32 %v6329_v15, 16  ;;  %v476_v33 = vrot.slane %v474_v22, 4  ;;  %v6353_v41 = vld [vmem:[%s6303_s9 + $0x14] sm:$0x1]  ;;  %v6364_v53 = vld [vmem:[%s6303_s9 + $0x6c] sm:$0xf] }
  0x21   : > { %v479_v34 = vrot.slane %v477_v23, 5  ;;  %v485_v35 = vrot.slane %v483_v24, 5  ;;  %v489_v38 = vrot.slane %v487_v27, 4  ;;  %v306_v42 = vshrl.u32 %v6340_v29, 16  ;;  %v6368_v58 = vld [vmem:[%s6303_s9 + $0x70] sm:$0xf] }
  0x22   : > { %v289_v36 = vrot.slane %v288_v25, 4  ;;  %v299_v37 = vrot.slane %v298_v26, 4  ;;  %v495_v39 = vrot.slane %v493_v28, 5  ;;  %v309_v43 = vshll.u32 %v6340_v29, 16  ;;  %v6376_v63 = vld [vmem:[%s6303_s9 + $0x74] sm:$0x1] }
  0x23   : > { %v480_v40 = vor.u32 %v479_v34, %v476_v33  ;;  %v315_v44 = vshll.u32 %v6343_v30, 16  ;;  %v490_v47 = vor.u32 %v489_v38, %v485_v35  ;;  %v319_v48 = vshrl.u32 %v6343_v30, 16  ;;  %v6382_v8 = vld [vmem:[%s6303_s9 + $0x18] sm:$0xf]  ;;  %v6395_v25 = vld [vmem:[%s6303_s9 + $0x20] sm:$0x1] }
  0x24   : > { %v294_v45 = vsel %vm6347_vm4, %v289_v36, %v293_v19  ;;  %v304_v46 = vsel %vm6347_vm4, %v299_v37, %v303_v21  ;;  %v308_v51 = vrot.slane %v306_v42, 4  ;;  %v311_v52 = vrot.slane %v309_v43, 5  ;;  %v6389_v21 = vld [vmem:[%s6303_s9 + $0x1c] sm:$0xf]  ;;  %s6132_s27 = sshll.u32 %s6206_s26, 4  ;;  %s6133_s27 = int_to_ptr.vmem [resolvable:$false] %s6132_s27 }
  0x25   : > { %v5007_v49 = vcombine.low %v294_v45, %v304_v46  ;;  %v481_v50 = vrot.slane %v480_v40, 4  ;;  %v491_v54 = vrot.slane %v490_v47, 4  ;;  %v317_v55 = vrot.slane %v315_v44, 5  ;;  %v6408_v40 = vld [vmem:[%s8976_s1 + $0x8] sm:$0x3]  ;;  %s6134_s28 = scalar_lea.vmem %s6133_s27, 8192 }
  0x26   : > { %v321_v56 = vrot.slane %v319_v48, 4  ;;  %v325_v57 = vshll.u32 %v6353_v41, 16  ;;  %v312_v60 = vor.u32 %v311_v52, %v308_v51  ;;  %v498_v3 = vshrl.u32 %v6364_v53, 16  ;;  %v6413_v46 = vld [vmem:[%s6303_s9 + $0x7c] sm:$0xf] }
  0x27   : > { %5704 = vmatprep.mubr.msk.bf16.mxu0 %vm715_vm3, %v5007_v49  ;;  %v486_v59 = vsel %vm6347_vm4, %v481_v50, %v485_v35  ;;  %v496_v0 = vsel %vm6347_vm4, %v491_v54, %v495_v39  ;;  %v501_v11 = vshll.u32 %v6364_v53, 16  ;;  %v507_v13 = vshll.u32 %v6368_v58, 16  ;;  %v6402_v35 = vld [vmem:[%s6303_s9 + $0x78] sm:$0xf] }
  0x28   : > { %v322_v1 = vor.u32 %v321_v56, %v317_v55  ;;  %v327_v2 = vrot.slane %v325_v57, 5  ;;  %v5015_v9 = vcombine.low %v486_v59, %v496_v0  ;;  %v313_v10 = vrot.slane %v312_v60, 4  ;;  %v6420_v56 = vld [vmem:[%s6303_s9 + $0x80] sm:$0x1] }
  0x29   : > { %v500_v18 = vrot.slane %v498_v3, 4  ;;  %v511_v19 = vshrl.u32 %v6368_v58, 16  ;;  %v517_v20 = vshll.u32 %v6376_v63, 16  ;;  %v503_v23 = vrot.slane %v501_v11, 5  ;;  %9016 = vst [vmem:[#allocation5_spill] sm:$0xff] %v6420_v56 }
  0x2a   : > { %v323_v17 = vrot.slane %v322_v1, 4  ;;  %5720 = vmatprep.mubr.msk.bf16.mxu1 %vm715_vm3, %v5015_v9  ;;  %v318_v22 = vsel %vm6347_vm4, %v313_v10, %v317_v55  ;;  %v509_v24 = vrot.slane %v507_v13, 5  ;;  %v330_v26 = vshrl.u32 %v6382_v8, 16  ;;  %v6426_v1 = vld [vmem:[%s6303_s9 + $0x24] sm:$0xf] }
  0x2b   : > { %v513_v28 = vrot.slane %v511_v19, 4  ;;  %v519_v33 = vrot.slane %v517_v20, 5  ;;  %v333_v34 = vshll.u32 %v6382_v8, 16  ;;  %v504_v37 = vor.u32 %v503_v23, %v500_v18  ;;  %v6434_v10 = vld [vmem:[%s6303_s9 + $0x28] sm:$0xf] }
  0x2c   : > { %v328_v27 = vsel %vm6347_vm4, %v323_v17, %v327_v2  ;;  %v332_v38 = vrot.slane %v330_v26, 4  ;;  %v339_v39 = vshll.u32 %v6389_v21, 16  ;;  %v343_v44 = vshrl.u32 %v6389_v21, 16  ;;  %v6440_v19 = vld [vmem:[%s8976_s1 + $0x6] sm:$0x3] }
  0x2d   : > { %v5008_v36 = vcombine.low %v318_v22, %v328_v27  ;;  %v514_v42 = vor.u32 %v513_v28, %v509_v24  ;;  %v335_v43 = vrot.slane %v333_v34, 5  ;;  %v349_v45 = vshll.u32 %v6395_v25, 16 }
  0x2e   : > { %v505_v47 = vrot.slane %v504_v37, 4  ;;  %v341_v48 = vrot.slane %v339_v39, 5  ;;  %v522_v49 = vshrl.u32 %v6402_v35, 16  ;;  %v525_v50 = vshll.u32 %v6402_v35, 16 }
  0x2f   : > { %5705 = vmatmul.mubr.msk.bf16.vlgmr.msra.gmra.mxu0 %vm715_vm3, %v5008_v36  ;;  %v515_v51 = vrot.slane %v514_v42, 4  ;;  %v336_v52 = vor.u32 %v335_v43, %v332_v38  ;;  %v345_v54 = vrot.slane %v343_v44, 4  ;;  %v351_v55 = vrot.slane %v349_v45, 5  ;;  %v6452_v36 = vld [vmem:[%s6303_s9 + $0x84] sm:$0xf] }
  0x30   : > { %5771 = vmatpush3.bf16.msra.mxu0 %v6332_v16  ;;  %v510_v57 = vsel %vm6347_vm4, %v505_v47, %v509_v24  ;;  %v524_v59 = vrot.slane %v522_v49, 4  ;;  %v527_v60 = vrot.slane %v525_v50, 5  ;;  %v531_v0 = vshll.u32 %v6413_v46, 16  ;;  %v6445_v24 = vld [vmem:[%s6303_s9 + $0x2c] sm:$0x1] }
  0x31   : > { %6015 = vmatprep.subr.msk.bf16.mxu0 %vm764_vm0, %v6408_v40  ;;  %v520_v16 = vsel %vm6347_vm4, %v515_v51, %v519_v33  ;;  %v337_v2 = vrot.slane %v336_v52, 4  ;;  %v346_v3 = vor.u32 %v345_v54, %v341_v48  ;;  %v535_v9 = vshrl.u32 %v6413_v46, 16  ;;  %v6459_v43 = vld [vmem:[%s6303_s9 + $0x88] sm:$0xf]  ;;  %v6467_v51 = vld [vmem:[%s6303_s9 + $0x8c] sm:$0x1] }
  0x32   : > { %v5016_v11 = vcombine.low %v510_v57, %v520_v16  ;;  %v528_v13 = vor.u32 %v527_v60, %v524_v59  ;;  %v533_v17 = vrot.slane %v531_v0, 5  ;;  %v541_v18 = vshll.u32 %v6420_v56, 16  ;;  %9017 = vst [vmem:[#allocation6_spill] sm:$0xff] %v6467_v51  ;;  %v6475_v60 = vld [vmem:[%s6303_s9 + $0x30] sm:$0xf] }
  0x33   : > { %v342_v20 = vsel %vm6347_vm4, %v337_v2, %v341_v48  ;;  %v347_v22 = vrot.slane %v346_v3, 4  ;;  %v537_v23 = vrot.slane %v535_v9, 4  ;;  %v354_v26 = vshrl.u32 %v6426_v1, 16  ;;  %v6480_v9 = vld [vmem:[%s6303_s9 + $0x34] sm:$0xf] }
  0x34   : > { %5721 = vmatmul.mubr.msk.bf16.vlgmr.msra.gmra.mxu1 %vm715_vm3, %v5016_v11  ;;  %v529_v27 = vrot.slane %v528_v13, 4  ;;  %v543_v28 = vrot.slane %v541_v18, 5  ;;  %v357_v33 = vshll.u32 %v6426_v1, 16  ;;  %v363_v34 = vshll.u32 %v6434_v10, 16 }
  0x35   : > { %5737 = vmatpush3.bf16.msra.mxu1 %v6306_v4  ;;  %v352_v37 = vsel %vm6347_vm4, %v347_v22, %v351_v55  ;;  %v538_v38 = vor.u32 %v537_v23, %v533_v17  ;;  %v356_v39 = vrot.slane %v354_v26, 4  ;;  %v367_v42 = vshrl.u32 %v6434_v10, 16 }
  0x36   : > { %v5009_v44 = vcombine.low %v342_v20, %v352_v37  ;;  %v534_v45 = vsel %vm6347_vm4, %v529_v27, %v533_v17  ;;  %v359_v47 = vrot.slane %v357_v33, 5  ;;  %v365_v48 = vrot.slane %v363_v34, 5  ;;  %6014 = vmatprep.subr.msk.bf16.mxu1 %vm764_vm0, %v6440_v19  ;;  %v6488_v33 = vld [vmem:[%s6303_s9 + $0x38] sm:$0x1] }
  0x37   : > { %v539_v4 = vrot.slane %v538_v38, 4  ;;  %v369_v49 = vrot.slane %v367_v42, 4  ;;  %v373_v50 = vshll.u32 %v6445_v24, 16  ;;  %v546_v52 = vshrl.u32 %v6452_v36, 16  ;;  %v6493_v38 = vld [vmem:[%s6303_s9 + $0x90] sm:$0xf] }
  0x38   : > { %5708 = vmatprep.mubr.msk.bf16.mxu0 %vm715_vm3, %v5009_v44  ;;  %v360_v54 = vor.u32 %v359_v47, %v356_v39  ;;  %v549_v55 = vshll.u32 %v6452_v36, 16  ;;  %v555_v57 = vshll.u32 %v6459_v43, 16  ;;  %v559_v59 = vshrl.u32 %v6459_v43, 16  ;;  %9018 = vst [vmem:[#allocation7_spill] sm:$0xff] %v6493_v38  ;;  %v6498_v47 = vld [vmem:[%s6303_s9 + $0x94] sm:$0xf] }
  0x39   : > { %v544_v0 = vsel %vm6347_vm4, %v539_v4, %v543_v28  ;;  %v370_v16 = vor.u32 %v369_v49, %v365_v48  ;;  %v375_v2 = vrot.slane %v373_v50, 5  ;;  %v548_v3 = vrot.slane %v546_v52, 4  ;;  %9019 = vst [vmem:[#allocation8_spill] sm:$0xff] %v6498_v47 }
  0x3a   : > { %v5017_v11 = vcombine.low %v534_v45, %v544_v0  ;;  %v361_v13 = vrot.slane %v360_v54, 4  ;;  %v551_v17 = vrot.slane %v549_v55, 5  ;;  %v557_v18 = vrot.slane %v555_v57, 5 }
  0x3b   : > { %v371_v20 = vrot.slane %v370_v16, 4  ;;  %v561_v22 = vrot.slane %v559_v59, 4  ;;  %v565_v23 = vshll.u32 %v6467_v51, 16  ;;  %v378_v26 = vshrl.u32 %v6475_v60, 16  ;;  %v6507_v16 = vld [vmem:[%s6303_s9 + $0x98] sm:$0x1] }
  0x3c   : > { %5724 = vmatprep.mubr.msk.bf16.mxu1 %vm715_vm3, %v5017_v11  ;;  %v366_v27 = vsel %vm6347_vm4, %v361_v13, %v365_v48  ;;  %v552_v28 = vor.u32 %v551_v17, %v548_v3  ;;  %v381_v34 = vshll.u32 %v6475_v60, 16  ;;  %v387_v37 = vshll.u32 %v6480_v9, 16  ;;  %9020 = vst [vmem:[#allocation9_spill] sm:$0xff] %v6507_v16  ;;  %v6512_v11 = vld [vmem:[%s6303_s9 + $0x3c] sm:$0xf] }
  0x3d   : > { %v376_v39 = vsel %vm6347_vm4, %v371_v20, %v375_v2  ;;  %v562_v42 = vor.u32 %v561_v22, %v557_v18  ;;  %v567_v44 = vrot.slane %v565_v23, 5  ;;  %v380_v45 = vrot.slane %v378_v26, 4  ;;  %v6517_v23 = vld [vmem:[%s6303_s9 + $0x40] sm:$0xf]  ;;  %v1222_v51 = vld [vmem:[%s6303_s9 + $0xc] sm:$0xe] }
  0x3e   : > { %v5010_v48 = vcombine.low %v366_v27, %v376_v39  ;;  %v553_v4 = vrot.slane %v552_v28, 4  ;;  %v383_v49 = vrot.slane %v381_v34, 5  ;;  %v389_v50 = vrot.slane %v387_v37, 5 }
  0x3f   : > { %v563_v52 = vrot.slane %v562_v42, 4  ;;  %v391_v54 = vshrl.u32 %v6480_v9, 16  ;;  %v397_v55 = vshll.u32 %v6488_v33, 16  ;;  %v570_v57 = vshrl.u32 %v6493_v38, 16 }
  0x40   : > { %5709 = vmatmul.mubr.msk.bf16.gmra.mxu0 %vm715_vm3, %v5010_v48  ;;  %v558_v59 = vsel %vm6347_vm4, %v553_v4, %v557_v18  ;;  %v384_v0 = vor.u32 %v383_v49, %v380_v45  ;;  %v573_v2 = vshll.u32 %v6493_v38, 16  ;;  %v579_v3 = vshll.u32 %v6498_v47, 16  ;;  %v6526_v48 = vld [vmem:[%s6303_s9 + $0x44] sm:$0x1] }
  0x41   : > { %v568_v13 = vsel %vm6347_vm4, %v563_v52, %v567_v44  ;;  %v393_v17 = vrot.slane %v391_v54, 4  ;;  %v399_v20 = vrot.slane %v397_v55, 5  ;;  %v572_v22 = vrot.slane %v570_v57, 4  ;;  %v6531_v52 = vld [vmem:[%s6303_s9 + $0x9c] sm:$0xf] }
  0x42   : > { %v5018_v18 = vcombine.low %v558_v59, %v568_v13  ;;  %v385_v26 = vrot.slane %v384_v0, 4  ;;  %v575_v27 = vrot.slane %v573_v2, 5  ;;  %v581_v28 = vrot.slane %v579_v3, 5  ;;  %9021 = vst [vmem:[#allocation10_spill] sm:$0xff] %v6531_v52  ;;  %v6535_v13 = vld [vmem:[%s6303_s9 + $0xa0] sm:$0xf] }
  0x43   : > { %v394_v34 = vor.u32 %v393_v17, %v389_v50  ;;  %v583_v37 = vshrl.u32 %v6498_v47, 16  ;;  %v589_v39 = vshll.u32 %v6507_v16, 16  ;;  %v402_v42 = vshrl.u32 %v6512_v11, 16  ;;  %9022 = vst [vmem:[#allocation11_spill] sm:$0xff] %v6535_v13 }
  0x44   : > { %5725 = vmatmul.mubr.msk.bf16.gmra.mxu1 %vm715_vm3, %v5018_v18  ;;  %v390_v44 = vsel %vm6347_vm4, %v385_v26, %v389_v50  ;;  %v576_v45 = vor.u32 %v575_v27, %v572_v22  ;;  %v405_v4 = vshll.u32 %v6512_v11, 16  ;;  %v411_v49 = vshll.u32 %v6517_v23, 16  ;;  %v6541_v26 = vld [vmem:[%s6303_s9 + $0xa4] sm:$0x1] }
  0x45   : > { %v395_v54 = vrot.slane %v394_v34, 4  ;;  %v585_v55 = vrot.slane %v583_v37, 4  ;;  %v591_v57 = vrot.slane %v589_v39, 5  ;;  %v404_v59 = vrot.slane %v402_v42, 4  ;;  %9023 = vst [vmem:[#allocation12_spill] sm:$0xff] %v6541_v26 }
  0x46   : > { %v577_v0 = vrot.slane %v576_v45, 4  ;;  %v407_v2 = vrot.slane %v405_v4, 5  ;;  %v413_v3 = vrot.slane %v411_v49, 5  ;;  %v415_v50 = vshrl.u32 %v6517_v23, 16  ;;  %v6545_v34 = vld [vmem:[%s6303_s9 + $0x48] sm:$0xf] }
  0x47   : > { %v400_v17 = vsel %vm6347_vm4, %v395_v54, %v399_v20  ;;  %v586_v22 = vor.u32 %v585_v55, %v581_v28  ;;  %v421_v18 = vshll.u32 %v6526_v48, 16  ;;  %v594_v27 = vshrl.u32 %v6531_v52, 16 }
  0x48   : > { %v5011_v37 = vcombine.low %v390_v44, %v400_v17  ;;  %v582_v39 = vsel %vm6347_vm4, %v577_v0, %v581_v28  ;;  %v408_v42 = vor.u32 %v407_v2, %v404_v59  ;;  %v417_v45 = vrot.slane %v415_v50, 4  ;;  %v6554_v17 = vld [vmem:[%s6303_s9 + $0x4c] sm:$0xf]  ;;  %v6560_v2 = vld [vmem:[%s6303_s9 + $0x50] sm:$0x1] }
  0x49   : > { %v587_v4 = vrot.slane %v586_v22, 4  ;;  %v423_v49 = vrot.slane %v421_v18, 5  ;;  %v596_v20 = vrot.slane %v594_v27, 4  ;;  %v597_v54 = vshll.u32 %v6531_v52, 16 }
  0x4a   : > { %5712 = vmatprep.mubr.msk.bf16.mxu0 %vm715_vm3, %v5011_v37  ;;  %v409_v55 = vrot.slane %v408_v42, 4  ;;  %v418_v62 = vor.u32 %v417_v45, %v413_v3  ;;  %v603_v32 = vshll.u32 %v6535_v13, 16  ;;  %v607_v44 = vshrl.u32 %v6535_v13, 16  ;;  %v6566_v42 = vld [vmem:[%s6303_s9 + $0xa8] sm:$0xf] }
  0x4b   : > { %v592_v28 = vsel %vm6347_vm4, %v587_v4, %v591_v57  ;;  %v599_v59 = vrot.slane %v597_v54, 5  ;;  %v613_v0 = vshll.u32 %v6541_v26, 16  ;;  %v426_v50 = vshrl.u32 %v6545_v34, 16  ;;  %9024 = vst [vmem:[#allocation13_spill] sm:$0xff] %v6566_v42 }
  0x4c   : > { %v5019_v22 = vcombine.low %v582_v39, %v592_v28  ;;  %v414_v18 = vsel %vm6347_vm4, %v409_v55, %v413_v3  ;;  %v419_v27 = vrot.slane %v418_v62, 4  ;;  %v605_v37 = vrot.slane %v603_v32, 5 }
  0x4d   : > { %v600_v45 = vor.u32 %v599_v59, %v596_v20  ;;  %v609_v61 = vrot.slane %v607_v44, 4  ;;  %v615_v57 = vrot.slane %v613_v0, 5  ;;  %v428_v4 = vrot.slane %v426_v50, 4  ;;  %v6576_v44 = vld [vmem:[%s6303_s9 + $0xac] sm:$0xf] }
  0x4e   : > { %5728 = vmatprep.mubr.msk.bf16.mxu1 %vm715_vm3, %v5019_v22  ;;  %v424_v54 = vsel %vm6347_vm4, %v419_v27, %v423_v49  ;;  %v429_v39 = vshll.u32 %v6545_v34, 16  ;;  %v435_v28 = vshll.u32 %v6554_v17, 16  ;;  %v439_v62 = vshrl.u32 %v6554_v17, 16  ;;  %9025 = vst [vmem:[#allocation14_spill] sm:$0xff] %v6576_v44  ;;  %v6579_v22 = vld [vmem:[%s6303_s9 + $0xb0] sm:$0x1] }
  0x4f   : > { %v5012_v3 = vcombine.low %v414_v18, %v424_v54  ;;  %v601_v32 = vrot.slane %v600_v45, 4  ;;  %v610_v55 = vor.u32 %v609_v61, %v605_v37  ;;  %v445_v20 = vshll.u32 %v6560_v2, 16  ;;  %9026 = vst [vmem:[#allocation15_spill] sm:$0xff] %v6579_v22 }
  0x50   : > { %v431_v59 = vrot.slane %v429_v39, 5  ;;  %v437_v0 = vrot.slane %v435_v28, 5  ;;  %v441_v50 = vrot.slane %v439_v62, 4  ;;  %v618_v49 = vshrl.u32 %v6566_v42, 16  ;;  %v6588_v62 = vld [vmem:[%s6303_s9 + $0x54] sm:$0xf] }
  0x51   : > { %5713 = vmatmul.mubr.msk.bf16.gmra.mxu0 %vm715_vm3, %v5012_v3  ;;  %v606_v18 = vsel %vm6347_vm4, %v601_v32, %v605_v37  ;;  %v611_v27 = vrot.slane %v610_v55, 4  ;;  %v447_v61 = vrot.slane %v445_v20, 5  ;;  %v621_v45 = vshll.u32 %v6566_v42, 16  ;;  %v6595_v55 = vld [vmem:[%s6303_s9 + $0x58] sm:$0xf] }
  0x52   : > { %v432_v54 = vor.u32 %v431_v59, %v428_v4  ;;  %v442_v56 = vor.u32 %v441_v50, %v437_v0  ;;  %v620_v39 = vrot.slane %v618_v49, 4  ;;  %v627_v28 = vshll.u32 %v6576_v44, 16  ;;  %v6598_v49 = vld [vmem:[%s6303_s9 + $0x5c] sm:$0x1] }
  0x53   : > { %v616_v3 = vsel %vm6347_vm4, %v611_v27, %v615_v57  ;;  %v623_v26 = vrot.slane %v621_v45, 5  ;;  %v631_v37 = vshrl.u32 %v6576_v44, 16  ;;  %v637_v32 = vshll.u32 %v6579_v22, 16  ;;  %v1221_v22 = vld [vmem:[%s6303_s9] sm:$0xe] }
  0x54   : > { %v5020_v4 = vcombine.low %v606_v18, %v616_v3  ;;  %v433_v20 = vrot.slane %v432_v54, 4  ;;  %v443_v59 = vrot.slane %v442_v56, 4  ;;  %v629_v50 = vrot.slane %v627_v28, 5  ;;  %v6609_v54 = vld [vmem:[%s6303_s9 + $0xb4] sm:$0xf] }
  0x55   : > { %v624_v42 = vor.u32 %v623_v26, %v620_v39  ;;  %v633_v52 = vrot.slane %v631_v37, 4  ;;  %v639_v13 = vrot.slane %v637_v32, 5  ;;  %v450_v57 = vshrl.u32 %v6588_v62, 16  ;;  %9027 = vst [vmem:[#allocation16_spill] sm:$0xff] %v6609_v54  ;;  %v6612_v37 = vld [vmem:[%s6303_s9 + $0xb8] sm:$0xf] }
  0x56   : > { %5729 = vmatmul.mubr.msk.bf16.gmra.mxu1 %vm715_vm3, %v5020_v4  ;;  %v438_v27 = vsel %vm6347_vm4, %v433_v20, %v437_v0  ;;  %v448_v18 = vsel %vm6347_vm4, %v443_v59, %v447_v61  ;;  %v453_v56 = vshll.u32 %v6588_v62, 16  ;;  %v459_v45 = vshll.u32 %v6595_v55, 16  ;;  %v6617_v61 = vld [vmem:[%s6303_s9 + $0xbc] sm:$0x1] }
  0x57   : > { %v5013_v26 = vcombine.low %v438_v27, %v448_v18  ;;  %v625_v39 = vrot.slane %v624_v42, 4  ;;  %v634_v28 = vor.u32 %v633_v52, %v629_v50  ;;  %v452_v3 = vrot.slane %v450_v57, 4 }
  0x58   : > { %v455_v32 = vrot.slane %v453_v56, 5  ;;  %v461_v4 = vrot.slane %v459_v45, 5  ;;  %v463_v0 = vshrl.u32 %v6595_v55, 16  ;;  %v469_v20 = vshll.u32 %v6598_v49, 16 }
  0x59   : > { %5716 = vmatprep.mubr.msk.bf16.mxu0 %vm715_vm3, %v5013_v26  ;;  %v630_v59 = vsel %vm6347_vm4, %v625_v39, %v629_v50  ;;  %v635_v27 = vrot.slane %v634_v28, 4  ;;  %v642_v52 = vshrl.u32 %v6609_v54, 16  ;;  %v645_v42 = vshll.u32 %v6609_v54, 16 }
  0x5a   : > { %v456_v57 = vor.u32 %v455_v32, %v452_v3  ;;  %v465_v18 = vrot.slane %v463_v0, 4  ;;  %v471_v56 = vrot.slane %v469_v20, 5  ;;  %v651_v45 = vshll.u32 %v6612_v37, 16 }
  0x5b   : > { %v640_v44 = vsel %vm6347_vm4, %v635_v27, %v639_v13  ;;  %v644_v16 = vrot.slane %v642_v52, 4  ;;  %v647_v26 = vrot.slane %v645_v42, 5  ;;  %v655_v38 = vshrl.u32 %v6612_v37, 16 }
  0x5c   : > { %v5021_v50 = vcombine.low %v630_v59, %v640_v44  ;;  %v457_v39 = vrot.slane %v456_v57, 4  ;;  %v466_v28 = vor.u32 %v465_v18, %v461_v4  ;;  %v653_v47 = vrot.slane %v651_v45, 5  ;;  %v1223_v57 = vld [vmem:[%s6303_s9 + $0x18] sm:$0xe] }
  0x5d   : > { %v648_v54 = vor.u32 %v647_v26, %v644_v16  ;;  %v657_v3 = vrot.slane %v655_v38, 4  ;;  %v661_v32 = vshll.u32 %v6617_v61, 16  ;;  %v5071_v13 = vrot.slane %v1221_v22, 9 }
  0x5e   : > { %5732 = vmatprep.mubr.msk.bf16.mxu1 %vm715_vm3, %v5021_v50  ;;  %v462_v44 = vsel %vm6347_vm4, %v457_v39, %v461_v4  ;;  %v467_v20 = vrot.slane %v466_v28, 4  ;;  %v1274_v59 = vrot.slane %v6312_v6, 5  ;;  %v5040_v38 = vcombine.low %v6340_v29, %v6343_v30 }
  0x5f   : > { %v649_v16 = vrot.slane %v648_v54, 4  ;;  %v658_v27 = vor.u32 %v657_v3, %v653_v47  ;;  %v663_v52 = vrot.slane %v661_v32, 5  ;;  %v5072_v42 = vrot.slane %v1222_v51, 9 }
  0x60   : > { %v472_v18 = vsel %vm6347_vm4, %v467_v20, %v471_v56  ;;  %v1275_v22 = vsel %vm6633_vm7, %v5071_v13, %v1274_v59  ;;  %v1276_v45 = vrot.slane %v1274_v59, 4  ;;  %v9030_v4 = vrot.slane %v6343_v30, 5 }
  0x61   : > { %v5014_v50 = vcombine.low %v462_v44, %v472_v18  ;;  %v654_v54 = vsel %vm6347_vm4, %v649_v16, %v653_v47  ;;  %v659_v39 = vrot.slane %v658_v27, 4  ;;  %v5039_v51 = vcombine.low %v6309_v5, %v6312_v6  ;;  %v1224_v27 = vld [vmem:[%s6303_s9 + $0x24] sm:$0xe] }
  0x62   : > { %v1283_v26 = vrot.slane %v9030_v4, 4  ;;  %v9031_v28 = vrot.slane %v6315_v7, 5  ;;  %v9032_v3 = vmov %v9030_v4  ;;  %v5041_v13 = vcombine.low %v6382_v8, %v6389_v21  ;;  %v1226_v4 = vld [vmem:[%s6303_s9 + $0x3c] sm:$0xe] }
  0x63   : > { %v1282_v32 = vsel %vm6633_vm7, %v5072_v42, %v9032_v3  ;;  %v5073_v44 = vrot.slane %v1223_v57, 9  ;;  %5717 = vmatmul.mubr.msk.bf16.gmra.mxu0 %vm715_vm3, %v5014_v50  ;;  %v664_v47 = vsel %vm6347_vm4, %v659_v39, %v663_v52  ;;  %v9033_v6 = vrot.slane %v6353_v41, 5  ;;  %v1225_v42 = vld [vmem:[%s6303_s9 + $0x30] sm:$0xe]  ;;  %v1227_v39 = vld [vmem:[%s6303_s9 + $0x48] sm:$0xe] }
  0x64   : > { %v1278_v56 = vsel %vm6633_vm7, %v1276_v45, %v9031_v28  ;;  %v1288_v20 = vrot.slane %v6389_v21, 5  ;;  %v5022_v59 = vcombine.low %v654_v54, %v664_v47  ;;  %v1291_v16 = vrot.slane %v6395_v25, 5  ;;  %v1228_v47 = vld [vmem:[%s6303_s9 + $0x54] sm:$0xe]  ;;  %v6928_v21 = vld [vmem:[%s6303_s9 + $0x2c] sm:$0x1] }
  0x65   : > { %v5088_v5 = vcombine.low %v1275_v22, %v1278_v56  ;;  %v1285_v7 = vsel %vm6633_vm7, %v1283_v26, %v9033_v6  ;;  %v1845_v52 = vsel %vm764_vm0, %v6440_v19, 0  ;;  %v1295_v18 = vrot.slane %v6434_v10, 5 }
  0x66   : > { %v1289_v41 = vsel %vm6633_vm7, %v5073_v44, %v1288_v20  ;;  %v1290_v57 = vrot.slane %v1288_v20, 4  ;;  %5733 = vmatmul.mubr.msk.bf16.gmra.mxu1 %vm715_vm3, %v5022_v59  ;;  %v5089_v22 = vcombine.low %v1282_v32, %v1285_v7  ;;  %v2571_v25 = vsel %vm764_vm0, %v6408_v40, 0 }
  0x67   : > { %5772 = vmatprep.mubr.msk.bf16.mxu0 %vm715_vm3, %v5088_v5  ;;  %v1302_v45 = vrot.slane %v6480_v9, 5  ;;  %5738 = vmatprep.mubr.msk.bf16.mxu1 %vm715_vm3, %v5039_v51  ;;  %v5074_v26 = vrot.slane %v1224_v27, 9  ;;  %v1298_v50 = vrot.slane %v6445_v24, 5  ;;  %v5075_v54 = vrot.slane %v1225_v42, 9  ;;  %v6700_v24 = vld [vmem:[%s8976_s1 + $0xc] sm:$0x3] }
  0x68   : > { %v1292_v19 = vsel %vm6633_vm7, %v1290_v57, %v1291_v16  ;;  %v1297_v56 = vrot.slane %v1295_v18, 4  ;;  %v1305_v32 = vrot.slane %v6488_v33, 5  ;;  %v5076_v44 = vrot.slane %v1226_v4, 9 }
  0x69   : > { %v5090_v28 = vcombine.low %v1289_v41, %v1292_v19  ;;  %v1304_v3 = vrot.slane %v1302_v45, 4  ;;  %v1309_v40 = vrot.slane %v6517_v23, 5  ;;  %v1333_v5 = vrot.slane %v6329_v15, 5 }
  0x6a   : > { %v1312_v51 = vrot.slane %v6526_v48, 5  ;;  %v5077_v6 = vrot.slane %v1227_v39, 9  ;;  %v1316_v7 = vrot.slane %v6554_v17, 5  ;;  %v5042_v33 = vcombine.low %v6426_v1, %v6434_v10  ;;  %v1229_v1 = vld [vmem:[%s6303_s9 + $0x60] sm:$0xe] }
  0x6b   : > { %5773 = vmatmul.mubr.msk.bf16.vlgmr.msra.gmra.mxu0 %vm715_vm3, %v5089_v22  ;;  %v1296_v20 = vsel %vm6633_vm7, %v5074_v26, %v1295_v18  ;;  %v1311_v59 = vrot.slane %v1309_v40, 4  ;;  %v1319_v16 = vrot.slane %v6560_v2, 5  ;;  %v1299_v48 = vsel %vm6633_vm7, %v1297_v56, %v1298_v50  ;;  %v6728_v22 = vld [vmem:[%s8976_s1 + $0xa] sm:$0x3]  ;;  %v6753_v50 = vld [vmem:[%s6303_s9 + $0x6c] sm:$0xe] }
  0x6c   : > { %5839 = vmatpush3.bf16.msra.mxu0 %v2571_v25  ;;  %5776 = vmatprep.mubr.msk.bf16.mxu0 %vm715_vm3, %v5090_v28  ;;  %v1303_v27 = vsel %vm6633_vm7, %v5075_v54, %v1302_v45  ;;  %v1306_v42 = vsel %vm6633_vm7, %v1304_v3, %v1305_v32  ;;  %v1318_v41 = vrot.slane %v1316_v7, 4  ;;  %v6718_v10 = vsel %vm6633_vm7, %v5076_v44, %v1309_v40  ;;  %v1232_v39 = vld [vmem:[%s6303_s9 + $0x84] sm:$0xe]  ;;  %v6782_v44 = vld [vmem:[%s6303_s9 + $0x78] sm:$0xe] }
  0x6d   : > { %v6722_v2 = vsel %vm6633_vm7, %v5077_v6, %v1316_v7  ;;  %v5078_v57 = vrot.slane %v1228_v47, 9  ;;  %v1323_v18 = vrot.slane %v6595_v55, 5  ;;  %6017 = vmatprep.subr.msk.bf16.mxu0 %vm764_vm0, %v6700_v24  ;;  %v6738_v25 = vsel %vm6633_vm7, %v1311_v59, %v1312_v51  ;;  %v1233_v40 = vld [vmem:[%s6303_s9 + $0x90] sm:$0xe] }
  0x6e   : > { %5739 = vmatmul.mubr.msk.bf16.vlgmr.msra.gmra.mxu1 %vm715_vm3, %v5040_v38  ;;  %v6742_v45 = vsel %vm6633_vm7, %v1318_v41, %v1319_v16  ;;  %v1326_v4 = vrot.slane %v6598_v49, 5  ;;  %v1330_v19 = vrot.slane %v6326_v14, 5  ;;  %v5091_v29 = vcombine.low %v1296_v20, %v1299_v48  ;;  %v9034_v48 = vld [vmem:[#allocation6_spill] sm:$0xff] }
  0x6f   : > { %5805 = vmatpush3.bf16.msra.mxu1 %v1845_v52  ;;  %5742 = vmatprep.mubr.msk.bf16.mxu1 %vm715_vm3, %v5041_v13  ;;  %v5043_v30 = vcombine.low %v6475_v60, %v6480_v9  ;;  %v1325_v38 = vrot.slane %v1323_v18, 4  ;;  %v5079_v26 = vrot.slane %v1229_v1, 9  ;;  %v5092_v49 = vcombine.low %v1303_v27, %v1306_v42  ;;  %v1234_v42 = vld [vmem:[%s6303_s9 + $0x9c] sm:$0xe] }
  0x70   : > { %v5044_v52 = vcombine.low %v6512_v11, %v6517_v23  ;;  %v5045_v8 = vcombine.low %v6545_v34, %v6554_v17  ;;  %6016 = vmatprep.subr.msk.bf16.mxu1 %vm764_vm0, %v6728_v22  ;;  %v5093_v60 = vcombine.low %v6718_v10, %v6738_v25  ;;  %v5094_v9 = vcombine.low %v6722_v2, %v6742_v45  ;;  %v9035_v10 = vld [vmem:[#allocation8_spill] sm:$0xff]  ;;  %v9036_v2 = vld [vmem:[#allocation7_spill] sm:$0xff] }
  0x71   : > { %v1332_v54 = vrot.slane %v1330_v19, 4  ;;  %v6772_v28 = vsel %vm6633_vm7, %v5078_v57, %v1323_v18  ;;  %v6776_v56 = vsel %vm6633_vm7, %v1325_v38, %v1326_v4  ;;  %v5080_v32 = vrot.slane %v6753_v50, 9  ;;  %v1235_v18 = vld [vmem:[%s6303_s9 + $0xa8] sm:$0xe]  ;;  %v9038_v38 = vld [vmem:[#allocation11_spill] sm:$0xff] }
  0x72   : > { %v6788_v47 = vsel %vm6633_vm7, %v5079_v26, %v1330_v19  ;;  %v1337_v51 = vrot.slane %v6368_v58, 5  ;;  %v1340_v6 = vrot.slane %v6376_v63, 5  ;;  %v5082_v59 = vrot.slane %v1232_v39, 9  ;;  %v9037_v19 = vld [vmem:[#allocation9_spill] sm:$0xff]  ;;  %v9039_v26 = vld [vmem:[#allocation10_spill] sm:$0xff] }
  0x73   : > { %5777 = vmatmul.mubr.msk.bf16.gmra.mxu0 %vm715_vm3, %v5091_v29  ;;  %v1351_v16 = vrot.slane %v6459_v43, 5  ;;  %v1354_v27 = vrot.slane %v9034_v48, 5  ;;  %v5095_v41 = vcombine.low %v6772_v28, %v6776_v56  ;;  %v6806_v63 = vsel %vm6633_vm7, %v1332_v54, %v1333_v5  ;;  %v9041_v48 = vld [vmem:[#allocation14_spill] sm:$0xff] }
  0x74   : > { %5780 = vmatprep.mubr.msk.bf16.mxu0 %vm715_vm3, %v5092_v49  ;;  %v5081_v1 = vrot.slane %v6782_v44, 9  ;;  %v5083_v4 = vrot.slane %v1233_v40, 9  ;;  %v1358_v15 = vrot.slane %v9035_v10, 5  ;;  %v1339_v5 = vrot.slane %v1337_v51, 4  ;;  %v5185_v57 = vld [vmem:[%s6303_s9 + $0xc] sm:$0xf] }
  0x75   : > { %v6815_v25 = vsel %vm6633_vm7, %v5082_v59, %v1351_v16  ;;  %v1353_v45 = vrot.slane %v1351_v16, 4  ;;  %v1361_v29 = vrot.slane %v9037_v19, 5  ;;  %v5084_v49 = vrot.slane %v1234_v42, 9  ;;  %v9040_v59 = vld [vmem:[#allocation12_spill] sm:$0xff]  ;;  %v9042_v42 = vld [vmem:[#allocation13_spill] sm:$0xff] }
  0x76   : > { %5743 = vmatmul.mubr.msk.bf16.gmra.mxu1 %vm715_vm3, %v5042_v33  ;;  %v1344_v33 = vrot.slane %v6413_v46, 5  ;;  %v6829_v39 = vsel %vm6633_vm7, %v5083_v4, %v1358_v15  ;;  %v1360_v44 = vrot.slane %v1358_v15, 4  ;;  %v1365_v40 = vrot.slane %v9038_v38, 5  ;;  %v9043_v15 = vld [vmem:[#allocation15_spill] sm:$0xff] }
  0x77   : > { %5746 = vmatprep.mubr.msk.bf16.mxu1 %vm715_vm3, %v5043_v30  ;;  %v6825_v54 = vsel %vm6633_vm7, %v1353_v45, %v1354_v27  ;;  %v1368_v16 = vrot.slane %v9040_v59, 5  ;;  %v5085_v45 = vrot.slane %v1235_v18, 9  ;;  %v1372_v4 = vrot.slane %v9041_v48, 5 }
  0x78   : > { %v6839_v27 = vsel %vm6633_vm7, %v1360_v44, %v1361_v29  ;;  %v1375_v50 = vrot.slane %v9043_v15, 5  ;;  %v6849_v19 = vsel %vm6633_vm7, %v5084_v49, %v1365_v40  ;;  %v1367_v7 = vrot.slane %v1365_v40, 4  ;;  %v9044_v29 = vld [vmem:[#allocation16_spill] sm:$0xff]  ;;  %v9045_v15 = vld [vmem:[#allocation5_spill] sm:$0xff]  ;;  %v6864_v49 = vld [vmem:[%s6303_s9 + $0x10] sm:$0xf] }
  0x79   : > { %v6856_v18 = vsel %vm6633_vm7, %v5080_v32, %v1337_v51  ;;  %v6861_v59 = vsel %vm6633_vm7, %v5085_v45, %v1372_v4  ;;  %v1374_v30 = vrot.slane %v1372_v4, 4  ;;  %v5188_v40 = vld [vmem:[%s6303_s9 + $0x18] sm:$0xf]  ;;  %v1346_v20 = vrot.slane %v1344_v33, 4 }
  0x7a   : > { %v2089_v44 = vshrl.u32 %v5185_v57, 16  ;;  %v2092_v32 = vshll.u32 %v5185_v57, 16  ;;  %v5096_v51 = vcombine.low %v6788_v47, %v6806_v63  ;;  %v6879_v45 = vsel %vm6633_vm7, %v1339_v5, %v1340_v6  ;;  %v1236_v57 = vld [vmem:[%s6303_s9 + $0xb4] sm:$0xe]  ;;  %v6900_v47 = vld [vmem:[%s6303_s9 + $0x14] sm:$0x1] }
  0x7b   : > { %5781 = vmatmul.mubr.msk.bf16.gmra.mxu0 %vm715_vm3, %v5093_v60  ;;  %v1347_v60 = vrot.slane %v9045_v15, 5  ;;  %v6894_v11 = vsel %vm6633_vm7, %v5081_v1, %v1344_v33  ;;  %v2098_v6 = vshll.u32 %v6864_v49, 16  ;;  %v5189_v63 = vld [vmem:[%s6303_s9 + $0x1c] sm:$0xf]  ;;  %v2102_v17 = vshrl.u32 %v6864_v49, 16 }
  0x7c   : > { %5784 = vmatprep.mubr.msk.bf16.mxu0 %vm715_vm3, %v5094_v9  ;;  %v6869_v9 = vsel %vm6633_vm7, %v1367_v7, %v1368_v16  ;;  %v6885_v7 = vsel %vm6633_vm7, %v1374_v30, %v1375_v50  ;;  %v2091_v5 = vrot.slane %v2089_v44, 4  ;;  %v2094_v34 = vrot.slane %v2092_v32, 5  ;;  %v5191_v15 = vld [vmem:[%s6303_s9 + $0x24] sm:$0xf]  ;;  %v6913_v44 = vld [vmem:[%s6303_s9 + $0x28] sm:$0xf] }
  0x7d   : > { %v2113_v50 = vshrl.u32 %v5188_v40, 16  ;;  %v1348_v1 = vsel %vm6633_vm7, %v1346_v20, %v1347_v60  ;;  %v5086_v33 = vrot.slane %v1236_v57, 9  ;;  %v6908_v30 = vrot.slane %v2098_v6, 5 }
  0x7e   : > { %5747 = vmatmul.mubr.msk.bf16.gmra.mxu1 %vm715_vm3, %v5044_v52  ;;  %v1379_v52 = vrot.slane %v6612_v37, 5  ;;  %v2116_v16 = vshll.u32 %v5188_v40, 16  ;;  %v1382_v23 = vrot.slane %v6617_v61, 5  ;;  %v2104_v4 = vrot.slane %v2102_v17, 4 }
  0x7f   : > { %5750 = vmatprep.mubr.msk.bf16.mxu1 %vm715_vm3, %v5045_v8  ;;  %v5190_v8 = vld [vmem:[%s6303_s9 + $0x20] sm:$0x1]  ;;  %v2115_v3 = vrot.slane %v2113_v50, 4  ;;  %v2122_v13 = vshll.u32 %v5189_v63, 16  ;;  %v2108_v20 = vshll.u32 %v6900_v47, 16  ;;  %v2126_v57 = vshrl.u32 %v5189_v63, 16 }
  0x80   : > { %v1381_v32 = vrot.slane %v1379_v52, 4  ;;  %v2118_v60 = vrot.slane %v2116_v16, 5  ;;  %v5097_v61 = vcombine.low %v6856_v18, %v6879_v45  ;;  %v5098_v40 = vcombine.low %v6894_v11, %v1348_v1 }
  0x81   : > { %v2095_v6 = vor.u32 %v2094_v34, %v2091_v5  ;;  %v6924_v17 = vrot.slane %v2122_v13, 5  ;;  %v2105_v28 = vor.u32 %v2104_v4, %v6908_v30  ;;  %v2132_v50 = vshll.u32 %v5190_v8, 16  ;;  %v6951_v5 = vld [vmem:[%s6303_s9 + $0x34] sm:$0xf] }
  0x82   : > { %v2119_v56 = vor.u32 %v2118_v60, %v2115_v3  ;;  %v6936_v18 = vsel %vm6633_vm7, %v5086_v33, %v1379_v52  ;;  %v2137_v13 = vshrl.u32 %v5191_v15, 16  ;;  %v2140_v45 = vshll.u32 %v5191_v15, 16  ;;  %v5194_v52 = vld [vmem:[%s6303_s9 + $0x30] sm:$0xf] }
  0x83   : > { %5785 = vmatmul.mubr.msk.bf16.gmra.mxu0 %vm715_vm3, %v5095_v41  ;;  %v2128_v41 = vrot.slane %v2126_v57, 4  ;;  %v2146_v11 = vshll.u32 %v6913_v44, 16  ;;  %v9047_v3 = vcombine.low %v6322_v12, %v6326_v14  ;;  %v6945_v4 = vsel %vm6633_vm7, %v1381_v32, %v1382_v23 }
  0x84   : > { %5788 = vmatprep.mubr.msk.bf16.mxu0 %vm715_vm3, %v5096_v51  ;;  %v9046_v51 = vcombine.low %v6588_v62, %v6595_v55  ;;  %v2110_v62 = vrot.slane %v2108_v20, 5  ;;  %v2150_v63 = vshrl.u32 %v6913_v44, 16  ;;  %v2096_v34 = vrot.slane %v2095_v6, 4 }
  0x85   : > { %v2129_v55 = vor.u32 %v2128_v41, %v6924_v17  ;;  %v2139_v8 = vrot.slane %v2137_v13, 4  ;;  %v2142_v1 = vrot.slane %v2140_v45, 5  ;;  %v6953_v33 = vrot.slane %v2146_v11, 5  ;;  %v6959_v41 = vld [vmem:[%s6303_s9 + $0x38] sm:$0x1] }
  0x86   : > { %5751 = vmatmul.mubr.msk.bf16.gmra.mxu1 %vm715_vm3, %v9046_v51  ;;  %v2106_v12 = vrot.slane %v2105_v28, 4  ;;  %v2120_v14 = vrot.slane %v2119_v56, 4  ;;  %v2134_v16 = vrot.slane %v2132_v50, 5  ;;  %v2152_v23 = vrot.slane %v2150_v63, 4  ;;  %v5197_v13 = vld [vmem:[%s6303_s9 + $0x3c] sm:$0xf] }
  0x87   : > { %5754 = vmatprep.mubr.msk.bf16.mxu1 %vm715_vm3, %v9047_v3  ;;  %v2130_v15 = vrot.slane %v2129_v55, 4  ;;  %v2156_v32 = vshll.u32 %v6928_v21, 16  ;;  %v2161_v20 = vshrl.u32 %v5194_v52, 16  ;;  %v2164_v60 = vshll.u32 %v5194_v52, 16 }
  0x88   : > { %v2143_v57 = vor.u32 %v2142_v1, %v2139_v8  ;;  %v2153_v6 = vor.u32 %v2152_v23, %v6953_v33  ;;  %v2170_v28 = vshll.u32 %v6951_v5, 16  ;;  %v2174_v56 = vshrl.u32 %v6951_v5, 16  ;;  %v5200_v8 = vld [vmem:[%s6303_s9 + $0x48] sm:$0xf]  ;;  %v6986_v1 = vld [vmem:[%s6303_s9 + $0x4c] sm:$0xf] }
  0x89   : > { %v2163_v50 = vrot.slane %v2161_v20, 4  ;;  %v2166_v51 = vrot.slane %v2164_v60, 5  ;;  %v9048_v3 = vcombine.low %v6364_v53, %v6368_v58  ;;  %v5103_v55 = vcombine.low %v6936_v18, %v6945_v4 }
  0x8a   : > { %v6965_v45 = vrot.slane %v2170_v28, 5  ;;  %v2176_v11 = vrot.slane %v2174_v56, 4  ;;  %v2111_v63 = vsel %vm6347_vm4, %v2106_v12, %v2110_v62  ;;  %v2125_v52 = vsel %vm6347_vm4, %v2120_v14, %v6924_v17 }
  0x8b   : > { %5789 = vmatmul.mubr.msk.bf16.gmra.mxu0 %vm715_vm3, %v5097_v61  ;;  %v6968_v61 = vld [vmem:[%s6303_s9 + $0x40] sm:$0xf]  ;;  %v9049_v53 = vcombine.low %v6402_v35, %v6413_v46  ;;  %v2135_v58 = vsel %vm6347_vm4, %v2130_v15, %v2134_v16  ;;  %v2144_v23 = vrot.slane %v2143_v57, 4  ;;  %v2167_v20 = vor.u32 %v2166_v51, %v2163_v50  ;;  %v7020_v50 = vld [vmem:[%s6303_s9 + $0x44] sm:$0x1] }
  0x8c   : > { %5792 = vmatprep.mubr.msk.bf16.mxu0 %vm715_vm3, %v5098_v40  ;;  %v2101_v40 = vsel %vm6347_vm4, %v2096_v34, %v6908_v30  ;;  %v2154_v30 = vrot.slane %v2153_v6, 4  ;;  %v2158_v34 = vrot.slane %v2156_v32, 5  ;;  %v2180_v62 = vshll.u32 %v6959_v41, 16  ;;  %v5203_v51 = vld [vmem:[%s6303_s9 + $0x54] sm:$0xf] }
  0x8d   : > { %v2185_v12 = vshrl.u32 %v5197_v13, 16  ;;  %v2188_v17 = vshll.u32 %v5197_v13, 16  ;;  %v6997_v14 = vsel %vm764_vm0, %v6728_v22, 0  ;;  %v2177_v35 = vor.u32 %v2176_v11, %v6965_v45 }
  0x8e   : > { %5755 = vmatmul.mubr.msk.bf16.gmra.mxu1 %vm715_vm3, %v9048_v3  ;;  %v2194_v46 = vshll.u32 %v6968_v61, 16  ;;  %v2198_v16 = vshrl.u32 %v6968_v61, 16  ;;  %v7002_v15 = vcombine.low %v2101_v40, %v2111_v63  ;;  %v7006_v32 = vsel %vm764_vm0, %v6700_v24, 0  ;;  %v7029_v40 = vld [vmem:[%s6303_s9 + $0x58] sm:$0xf] }
  0x8f   : > { %5758 = vmatprep.mubr.msk.bf16.mxu1 %vm715_vm3, %v9049_v53  ;;  %v2209_v60 = vshrl.u32 %v5200_v8, 16  ;;  %v2212_v57 = vshll.u32 %v5200_v8, 16  ;;  %v9050_v6 = vcombine.low %v6815_v25, %v6825_v54  ;;  %v7012_v22 = vcombine.low %v2125_v52, %v2135_v58  ;;  %v7034_v8 = vld [vmem:[%s6303_s9 + $0x50] sm:$0x1] }
  0x90   : > { %v2149_v28 = vsel %vm6347_vm4, %v2144_v23, %v6953_v33  ;;  %v2159_v56 = vsel %vm6347_vm4, %v2154_v30, %v2158_v34  ;;  %v2218_v24 = vshll.u32 %v6986_v1, 16  ;;  %v9051_v25 = vcombine.low %v6829_v39, %v6839_v27  ;;  %v5206_v34 = vld [vmem:[%s6303_s9 + $0x60] sm:$0xf] }
  0x91   : > { %v2168_v54 = vrot.slane %v2167_v20, 4  ;;  %v2182_v13 = vrot.slane %v2180_v62, 5  ;;  %v2187_v11 = vrot.slane %v2185_v12, 4  ;;  %v2190_v3 = vrot.slane %v2188_v17, 5 }
  0x92   : > { %v2178_v33 = vrot.slane %v2177_v35, 4  ;;  %v7031_v63 = vrot.slane %v2194_v46, 5  ;;  %v2200_v52 = vrot.slane %v2198_v16, 4  ;;  %v2222_v53 = vshrl.u32 %v6986_v1, 16  ;;  %v7051_v35 = vld [vmem:[%s6303_s9 + $0x5c] sm:$0x1] }
  0x93   : > { %5793 = vmatmul.mubr.msk.bf16.gmra.mxu0 %vm715_vm3, %v9050_v6  ;;  %v9052_v39 = vcombine.low %v6452_v36, %v6459_v43  ;;  %v2211_v27 = vrot.slane %v2209_v60, 4  ;;  %v2214_v58 = vrot.slane %v2212_v57, 5  ;;  %v2233_v23 = vshrl.u32 %v5203_v51, 16 }
  0x94   : > { %5796 = vmatprep.mubr.msk.bf16.mxu0 %vm715_vm3, %v9051_v25  ;;  %v2236_v30 = vshll.u32 %v5203_v51, 16  ;;  %v9053_v20 = vcombine.low %v9036_v2, %v9035_v10  ;;  %v7046_v62 = vcombine.low %v2149_v28, %v2159_v56  ;;  %v7048_v12 = vrot.slane %v2218_v24, 5  ;;  %v7064_v28 = vld [vmem:[%s6303_s9 + $0x64] sm:$0xf] }
  0x95   : > { %v2224_v17 = vrot.slane %v2222_v53, 4  ;;  %v2242_v36 = vshll.u32 %v7029_v40, 16  ;;  %v2204_v43 = vshll.u32 %v7020_v50, 16  ;;  %v2235_v46 = vrot.slane %v2233_v23, 4 }
  0x96   : > { %5759 = vmatmul.mubr.msk.bf16.gmra.mxu1 %vm715_vm3, %v9052_v39  ;;  %v2238_v16 = vrot.slane %v2236_v30, 5  ;;  %v2246_v60 = vshrl.u32 %v7029_v40, 16  ;;  %v2173_v10 = vsel %vm6347_vm4, %v2168_v54, %v6965_v45  ;;  %v2183_v2 = vsel %vm6347_vm4, %v2178_v33, %v2182_v13  ;;  %v7086_v30 = vld [vmem:[%s6303_s9 + $0x68] sm:$0x1] }
  0x97   : > { %5762 = vmatprep.mubr.msk.bf16.mxu1 %vm715_vm3, %v9053_v20  ;;  %v2191_v57 = vor.u32 %v2190_v3, %v2187_v11  ;;  %v7061_v6 = vrot.slane %v2242_v36, 5  ;;  %v2201_v56 = vor.u32 %v2200_v52, %v7031_v63  ;;  %v2215_v24 = vor.u32 %v2214_v58, %v2211_v27  ;;  %v5209_v3 = vld [vmem:[%s6303_s9 + $0x6c] sm:$0xf]  ;;  %v7083_v27 = vld [vmem:[%s6303_s9 + $0x70] sm:$0xf] }
  0x98   : > { %v2228_v51 = vshll.u32 %v7034_v8, 16  ;;  %v2248_v25 = vrot.slane %v2246_v60, 4  ;;  %v9054_v53 = vcombine.low %v6849_v19, %v6869_v9  ;;  %v2225_v45 = vor.u32 %v2224_v17, %v7048_v12 }
  0x99   : > { %v2239_v54 = vor.u32 %v2238_v16, %v2235_v46  ;;  %v2257_v13 = vshrl.u32 %v5206_v34, 16  ;;  %v2260_v11 = vshll.u32 %v5206_v34, 16  ;;  %v9055_v33 = vcombine.low %v6861_v59, %v6885_v7  ;;  %v5212_v16 = vld [vmem:[%s6303_s9 + $0x78] sm:$0xf] }
  0x9a   : > { %v2249_v52 = vor.u32 %v2248_v25, %v7061_v6  ;;  %v2252_v39 = vshll.u32 %v7051_v35, 16  ;;  %v2266_v19 = vshll.u32 %v7064_v28, 16  ;;  %v2270_v9 = vshrl.u32 %v7064_v28, 16 }
  0x9b   : > { %5797 = vmatmul.mubr.msk.bf16.gmra.mxu0 %vm715_vm3, %v9054_v53  ;;  %v2192_v58 = vrot.slane %v2191_v57, 4  ;;  %v2206_v23 = vrot.slane %v2204_v43, 5  ;;  %v2259_v34 = vrot.slane %v2257_v13, 4  ;;  %v2262_v20 = vrot.slane %v2260_v11, 5 }
  0x9c   : > { %5800 = vmatprep.mubr.msk.bf16.mxu0 %vm715_vm3, %v9055_v33  ;;  %v9056_v59 = vcombine.low %v9039_v26, %v9038_v38  ;;  %v7092_v7 = vcombine.low %v2173_v10, %v2183_v2  ;;  %v2202_v17 = vrot.slane %v2201_v56, 4  ;;  %v2216_v36 = vrot.slane %v2215_v24, 4  ;;  %v7102_v2 = vld [vmem:[%s6303_s9 + $0x7c] sm:$0xf] }
  0x9d   : > { %v7094_v46 = vrot.slane %v2266_v19, 5  ;;  %v9057_v43 = vcombine.low %v9042_v42, %v9041_v48  ;;  %v2226_v60 = vrot.slane %v2225_v45, 4  ;;  %v2230_v57 = vrot.slane %v2228_v51, 5  ;;  %9058 = vst [vmem:[#allocation6_spill] sm:$0xff] %v7102_v2  ;;  %v5215_v19 = vld [vmem:[%s6303_s9 + $0x84] sm:$0xf] }
  0x9e   : > { %5763 = vmatmul.mubr.msk.bf16.gmra.mxu1 %vm715_vm3, %v9056_v59  ;;  %v2240_v25 = vrot.slane %v2239_v54, 4  ;;  %v2272_v38 = vrot.slane %v2270_v9, 4  ;;  %v2250_v26 = vrot.slane %v2249_v52, 4  ;;  %v2254_v53 = vrot.slane %v2252_v39, 5 }
  0x9f   : > { %5766 = vmatprep.mubr.msk.bf16.mxu1 %vm715_vm3, %v9057_v43  ;;  %v2263_v13 = vor.u32 %v2262_v20, %v2259_v34  ;;  %v2281_v10 = vshrl.u32 %v5209_v3, 16  ;;  %v2197_v56 = vsel %vm6347_vm4, %v2192_v58, %v7031_v63  ;;  %v2284_v24 = vshll.u32 %v5209_v3, 16  ;;  %v6094_v63 = vld [vmem:[%s6303_s9 + $0xc] sm:$0xff]   ;;  %v7136_v34 = vld [vmem:[%s6303_s9 + $0x88] sm:$0xf] }
  0xa0   : > { %v2290_v48 = vshll.u32 %v7083_v27, 16  ;;  %v2294_v42 = vshrl.u32 %v7083_v27, 16  ;;  %v2207_v51 = vsel %vm6347_vm4, %v2202_v17, %v2206_v23  ;;  %v2221_v45 = vsel %vm6347_vm4, %v2216_v36, %v7048_v12  ;;  %9059 = vst [vmem:[#allocation8_spill] sm:$0xff] %v7136_v34  ;;  %v7145_v36 = vld [vmem:[%s6303_s9 + $0x74] sm:$0x1] }
  0xa1   : > { %v2273_v54 = vor.u32 %v2272_v38, %v7094_v46  ;;  %v2276_v11 = vshll.u32 %v7086_v30, 16  ;;  %v2231_v3 = vsel %vm6347_vm4, %v2226_v60, %v2230_v57  ;;  %v2245_v33 = vsel %vm6347_vm4, %v2240_v25, %v7061_v6  ;;  %9061 = vst [vmem:[#allocation7_spill] sm:$0xff] %v7145_v36  ;;  %v7155_v38 = vld [vmem:[%s6303_s9 + $0x80] sm:$0x1] }
  0xa2   : > { %v2305_v52 = vshrl.u32 %v5212_v16, 16  ;;  %v2308_v12 = vshll.u32 %v5212_v16, 16  ;;  %v2255_v18 = vsel %vm6347_vm4, %v2250_v26, %v2254_v53  ;;  %v2264_v4 = vrot.slane %v2263_v13, 4  ;;  %9062 = vst [vmem:[#allocation9_spill] sm:$0xff] %v7155_v38  ;;  %v7158_v26 = vld [vmem:[%s6303_s9 + $0x8c] sm:$0x1] }
  0xa3   : > { %5801 = vmatmul.mubr.msk.bf16.gmra.mxu0 %vm715_vm3, %v5103_v55  ;;  %v2283_v55 = vrot.slane %v2281_v10, 4  ;;  %v2314_v39 = vshll.u32 %v7102_v2, 16  ;;  %v2286_v9 = vrot.slane %v2284_v24, 5  ;;  %v7132_v58 = vrot.slane %v2290_v48, 5  ;;  %9063 = vst [vmem:[#allocation11_spill] sm:$0xff] %v7158_v26  ;;  %v6095_v10 = vld [vmem:[%s6303_s9 + $0x18] sm:$0xff]  }
  0xa4   : > { %5840 = vmatprep.mubr.msk.bf16.mxu0 %vm715_vm3, %v7002_v15  ;;  %v2296_v23 = vrot.slane %v2294_v42, 4  ;;  %v2318_v6 = vshrl.u32 %v7102_v2, 16  ;;  %v9060_v15 = vcombine.low %v9044_v29, %v6612_v37  ;;  %v7142_v20 = vcombine.low %v2197_v56, %v2207_v51  ;;  %v5218_v51 = vld [vmem:[%s6303_s9 + $0x90] sm:$0xf] }
  0xa5   : > { %v2274_v59 = vrot.slane %v2273_v54, 4  ;;  %v2278_v17 = vrot.slane %v2276_v11, 5  ;;  %v2307_v16 = vrot.slane %v2305_v52, 4  ;;  %v2310_v43 = vrot.slane %v2308_v12, 5 }
  0xa6   : > { %5767 = vmatmul.mubr.msk.bf16.gmra.mxu1 %vm715_vm3, %v9060_v15  ;;  %v7148_v60 = vrot.slane %v2314_v39, 5  ;;  %v2320_v57 = vrot.slane %v2318_v6, 4  ;;  %v2329_v25 = vshrl.u32 %v5215_v19, 16  ;;  %v7150_v37 = vcombine.low %v2221_v45, %v2231_v3  ;;  %v7169_v45 = vld [vmem:[%s6303_s9 + $0x94] sm:$0xf] }
  0xa7   : > { %5806 = vmatprep.mubr.msk.bf16.mxu1 %vm715_vm3, %v6094_v63  ;;  %v7152_v29 = vcombine.low %v2245_v33, %v2255_v18  ;;  %v2332_v53 = vshll.u32 %v5215_v19, 16  ;;  %v2338_v13 = vshll.u32 %v7136_v34, 16  ;;  %v2269_v56 = vsel %vm6347_vm4, %v2264_v4, %v7094_v46  ;;  %9064 = vst [vmem:[#allocation10_spill] sm:$0xff] %v7169_v45  ;;  %v7177_v33 = vld [vmem:[%s8976_s1 + $0x10] sm:$0x3]  ;;  %v6096_v46 = vld [vmem:[%s6303_s9 + $0x24] sm:$0xff]  }
  0xa8   : > { %v2287_v24 = vor.u32 %v2286_v9, %v2283_v55  ;;  %v2297_v48 = vor.u32 %v2296_v23, %v7132_v58  ;;  %v2300_v42 = vshll.u32 %v7145_v36, 16  ;;  %v2331_v54 = vrot.slane %v2329_v25, 4  ;;  %9065 = vst [vmem:[#allocation12_spill] sm:$0xff] %v7177_v33 }
  0xa9   : > { %v2334_v11 = vrot.slane %v2332_v53, 5  ;;  %v7171_v63 = vrot.slane %v2338_v13, 5  ;;  %v2342_v3 = vshrl.u32 %v7136_v34, 16  ;;  %v2279_v52 = vsel %vm6347_vm4, %v2274_v59, %v2278_v17 }
  0xaa   : > { %v2311_v12 = vor.u32 %v2310_v43, %v2307_v16  ;;  %v2321_v18 = vor.u32 %v2320_v57, %v7148_v60  ;;  %v2324_v4 = vshll.u32 %v7155_v38, 16  ;;  %v2353_v19 = vshrl.u32 %v5218_v51, 16  ;;  %v7211_v57 = vld [vmem:[%s6303_s9 + $0xa0] sm:$0xf] }
  0xab   : > { %5841 = vmatmul.mubr.msk.bf16.vlgmr.msra.gmra.mxu0 %vm715_vm3, %v7012_v22  ;;  %v2335_v55 = vor.u32 %v2334_v11, %v2331_v54  ;;  %v2344_v39 = vrot.slane %v2342_v3, 4  ;;  %v2356_v9 = vshll.u32 %v5218_v51, 16  ;;  %v5221_v22 = vld [vmem:[%s6303_s9 + $0x9c] sm:$0xf]  ;;  %v7190_v23 = vrot.slane %v2287_v24, 4  ;;  %9067 = vst [vmem:[#allocation13_spill] sm:$0xff] %v7211_v57 }
  0xac   : > { %5907 = vmatpush3.bf16.msra.mxu0 %v7006_v32  ;;  %5844 = vmatprep.mubr.msk.bf16.mxu0 %vm715_vm3, %v7046_v62  ;;  %v7192_v6 = vrot.slane %v2300_v42, 5  ;;  %v2348_v15 = vshll.u32 %v7158_v26, 16  ;;  %v2362_v59 = vshll.u32 %v7169_v45, 16  ;;  %v7199_v32 = vld [vmem:[%s8976_s1 + $0xe] sm:$0x3]  ;;  %v7204_v62 = vcombine.low %v2269_v56, %v2279_v52 }
  0xad   : > { %9066 = vst [vmem:[#allocation14_spill] sm:$0xff] %v7199_v32  ;;  %6019 = vmatprep.subr.msk.bf16.mxu0 %vm764_vm0, %v7177_v33  ;;  %v7206_v17 = vrot.slane %v2297_v48, 4  ;;  %v2345_v16 = vor.u32 %v2344_v39, %v7171_v63  ;;  %v2366_v43 = vshrl.u32 %v7169_v45, 16  ;;  %v7215_v25 = vrot.slane %v2311_v12, 4  ;;  %v7224_v56 = vld [vmem:[%s6303_s9 + $0x98] sm:$0x1] }
  0xae   : > { %5807 = vmatmul.mubr.msk.bf16.vlgmr.msra.gmra.mxu1 %vm715_vm3, %v6095_v10  ;;  %v7217_v53 = vrot.slane %v2321_v18, 4  ;;  %v7219_v13 = vrot.slane %v2324_v4, 5  ;;  %v7221_v10 = vrot.slane %v2335_v55, 4  ;;  %9068 = vst [vmem:[#allocation15_spill] sm:$0xff] %v7224_v56  ;;  %v2355_v24 = vrot.slane %v2353_v19, 4  ;;  %v6098_v19 = vld [vmem:[%s6303_s9 + $0x3c] sm:$0xff]  }
  0xaf   : > { %5873 = vmatpush3.bf16.msra.mxu1 %v6997_v14  ;;  %5810 = vmatprep.mubr.msk.bf16.mxu1 %vm715_vm3, %v6096_v46  ;;  %v2358_v48 = vrot.slane %v2356_v9, 5  ;;  %v2377_v42 = vshrl.u32 %v5221_v22, 16  ;;  %v2380_v51 = vshll.u32 %v5221_v22, 16  ;;  %v6097_v14 = vld [vmem:[%s6303_s9 + $0x30] sm:$0xff]   ;;  %v7233_v11 = vrot.slane %v2348_v15, 5 }
  0xb0   : > { %6018 = vmatprep.subr.msk.bf16.mxu1 %vm764_vm0, %v7199_v32  ;;  %v7235_v3 = vrot.slane %v2362_v59, 5  ;;  %v2386_v46 = vshll.u32 %v7211_v57, 16  ;;  %v5224_v52 = vld [vmem:[%s6303_s9 + $0xa8] sm:$0xf]  ;;  %v7239_v12 = vrot.slane %v2345_v16, 4  ;;  %v2368_v18 = vrot.slane %v2366_v43, 4 }
  0xb1   : > { %v2372_v4 = vshll.u32 %v7224_v56, 16  ;;  %v2390_v55 = vshrl.u32 %v7211_v57, 16  ;;  %v7244_v39 = vld [vmem:[%s6303_s9 + $0xac] sm:$0xf]  ;;  %v2359_v59 = vor.u32 %v2358_v48, %v2355_v24  ;;  %v7268_v16 = vld [vmem:[%s6303_s9 + $0xa4] sm:$0x1] }
  0xb2   : > { %9069 = vst [vmem:[#allocation16_spill] sm:$0xff] %v7244_v39  ;;  %9070 = vst [vmem:[#allocation5_spill] sm:$0xff] %v7268_v16  ;;  %v2379_v43 = vrot.slane %v2377_v42, 4  ;;  %v2382_v22 = vrot.slane %v2380_v51, 5  ;;  %v2401_v54 = vshrl.u32 %v5224_v52, 16  ;;  %v7270_v9 = vrot.slane %v2386_v46, 5 }
  0xb3   : > { %5845 = vmatmul.mubr.msk.bf16.gmra.mxu0 %vm715_vm3, %v7092_v7  ;;  %v2392_v32 = vrot.slane %v2390_v55, 4  ;;  %v2404_v15 = vshll.u32 %v5224_v52, 16  ;;  %v2410_v33 = vshll.u32 %v7244_v39, 16  ;;  %v5227_v57 = vld [vmem:[%s6303_s9 + $0xb4] sm:$0xf]  ;;  %v2369_v24 = vor.u32 %v2368_v18, %v7235_v3 }
  0xb4   : > { %5848 = vmatprep.mubr.msk.bf16.mxu0 %vm715_vm3, %v7142_v20  ;;  %v2351_v20 = vsel %vm6347_vm4, %v7239_v12, %v7233_v11  ;;  %v7280_v48 = vrot.slane %v2372_v4, 5  ;;  %v7283_v42 = vld [vmem:[%s6303_s9 + $0xb0] sm:$0x1]  ;;  %v2403_v51 = vrot.slane %v2401_v54, 4  ;;  %v7286_v46 = vld [vmem:[%s6303_s9 + $0xb8] sm:$0xf]  ;;  %v2383_v18 = vor.u32 %v2382_v22, %v2379_v43 }
  0xb5   : > { %9071 = vst [vmem:[#allocation17_spill] sm:$0xff] %v7283_v42  ;;  %9072 = vst [vmem:[#allocation18_spill] sm:$0xff] %v7286_v46  ;;  %v2406_v52 = vrot.slane %v2404_v15, 5  ;;  %v7290_v55 = vrot.slane %v2410_v33, 5  ;;  %v2414_v11 = vshrl.u32 %v7244_v39, 16  ;;  %v7293_v12 = vrot.slane %v2359_v59, 4 }
  0xb6   : > { %5811 = vmatmul.mubr.msk.bf16.gmra.mxu1 %vm715_vm3, %v6097_v14  ;;  %v2396_v14 = vshll.u32 %v7268_v16, 16  ;;  %v7296_v4 = vld [vmem:[%s6303_s9 + $0xbc] sm:$0x1]  ;;  %v2425_v54 = vshrl.u32 %v5227_v57, 16  ;;  %v2428_v7 = vshll.u32 %v5227_v57, 16  ;;  %v2393_v56 = vor.u32 %v2392_v32, %v7270_v9  ;;  %v6099_v16 = vld [vmem:[%s6303_s9 + $0x48] sm:$0xff]  }
  0xb7   : > { %5814 = vmatprep.mubr.msk.bf16.mxu1 %vm715_vm3, %v6098_v19  ;;  %v2416_v45 = vrot.slane %v2414_v11, 4  ;;  %v2420_v19 = vshll.u32 %v7283_v42, 16  ;;  %v2434_v15 = vshll.u32 %v7286_v46, 16  ;;  %v5230_v33 = vld [vmem:[%s6303_s9 + $0xc0] sm:$0xf]  ;;  %v2407_v26 = vor.u32 %v2406_v52, %v2403_v51  ;;  %v6100_v57 = vld [vmem:[%s6303_s9 + $0x54] sm:$0xff]  }
  0xb8   : > { %v2427_v39 = vrot.slane %v2425_v54, 4  ;;  %v2430_v34 = vrot.slane %v2428_v7, 5  ;;  %v2438_v59 = vshrl.u32 %v7286_v46, 16  ;;  %v7305_v22 = vld [vmem:[%s6303_s9 + $0xc4] sm:$0xf]  ;;  %v2370_v43 = vrot.slane %v2369_v24, 4 }
  0xb9   : > { %v2398_v32 = vrot.slane %v2396_v14, 5  ;;  %v2417_v11 = vor.u32 %v2416_v45, %v7290_v55  ;;  %v2436_v42 = vrot.slane %v2434_v15, 5  ;;  %v2444_v7 = vshll.u32 %v7296_v4, 16  ;;  %v7317_v45 = vld [vmem:[%s6303_s9 + $0xc8] sm:$0x1] }
  0xba   : > { %v2431_v51 = vor.u32 %v2430_v34, %v2427_v39  ;;  %v2440_v52 = vrot.slane %v2438_v59, 4  ;;  %v2449_v54 = vshrl.u32 %v5230_v33, 16  ;;  %v2384_v46 = vrot.slane %v2383_v18, 4 }
  0xbb   : > { %5849 = vmatmul.mubr.msk.bf16.gmra.mxu0 %vm715_vm3, %v7150_v37  ;;  %v2394_v38 = vrot.slane %v2393_v56, 4  ;;  %v2452_v2 = vshll.u32 %v5230_v33, 16  ;;  %v2458_v37 = vshll.u32 %v7305_v22, 16  ;;  %v2408_v24 = vrot.slane %v2407_v26, 4 }
  0xbc   : > { %5852 = vmatprep.mubr.msk.bf16.mxu0 %vm715_vm3, %v7152_v29  ;;  %v2422_v14 = vrot.slane %v2420_v19, 5  ;;  %v2441_v36 = vor.u32 %v2440_v52, %v2436_v42  ;;  %v2451_v15 = vrot.slane %v2449_v54, 4  ;;  %v2418_v34 = vrot.slane %v2417_v11, 4 }
  0xbd   : > { %v2454_v29 = vrot.slane %v2452_v2, 5  ;;  %v7320_v39 = vrot.slane %v2458_v37, 5  ;;  %v2462_v56 = vshrl.u32 %v7305_v22, 16  ;;  %v9073_v26 = vsel %vm6347_vm4, %v7206_v17, %v7192_v6 }
  0xbe   : > { %5815 = vmatmul.mubr.msk.bf16.gmra.mxu1 %vm715_vm3, %v6099_v16  ;;  %v9074_v16 = vsel %vm6347_vm4, %v7190_v23, %v7132_v58  ;;  %v2432_v19 = vrot.slane %v2431_v51, 4  ;;  %v2442_v33 = vrot.slane %v2441_v36, 4  ;;  %v2446_v2 = vrot.slane %v2444_v7, 5  ;;  %v6101_v23 = vld [vmem:[%s6303_s9 + $0x60] sm:$0xff]  }
  0xbf   : > { %5818 = vmatprep.mubr.msk.bf16.mxu1 %vm715_vm3, %v6100_v57  ;;  %v5242_v18 = vcombine.low %v9074_v16, %v9073_v26  ;;  %v9075_v59 = vsel %vm6347_vm4, %v7217_v53, %v7219_v13  ;;  %v9076_v6 = vsel %vm6347_vm4, %v7215_v25, %v7148_v60  ;;  %v2455_v57 = vor.u32 %v2454_v29, %v2451_v15  ;;  %v5268_v13 = vld [vmem:[%s6303_s9 + $0x24] sm:$0xe]  ;;  %v5271_v26 = vld [vmem:[%s6303_s9 + $0x48] sm:$0xe] }
  0xc0   : > { %v5243_v17 = vcombine.low %v9076_v6, %v9075_v59  ;;  %v2464_v11 = vrot.slane %v2462_v56, 4  ;;  %v2468_v58 = vshll.u32 %v7317_v45, 16  ;;  %v9077_v36 = vsel %vm6347_vm4, %v7221_v10, %v7171_v63  ;;  %v6102_v63 = vld [vmem:[%s6303_s9 + $0x6c] sm:$0xff]   ;;  %v5272_v6 = vld [vmem:[%s6303_s9 + $0x54] sm:$0xe] }
  0xc1   : > { %v5244_v51 = vcombine.low %v9077_v36, %v2351_v20  ;;  %v2365_v53 = vsel %vm6347_vm4, %v7293_v12, %v7235_v3  ;;  %v2375_v60 = vsel %vm6347_vm4, %v2370_v43, %v7280_v48  ;;  %v2389_v25 = vsel %vm6347_vm4, %v2384_v46, %v7270_v9  ;;  %v7373_v12 = vld [vmem:[%s6303_s9 + $0xc] sm:$0xe] }
  0xc2   : > { %v2399_v10 = vsel %vm6347_vm4, %v2394_v38, %v2398_v32  ;;  %v2413_v3 = vsel %vm6347_vm4, %v2408_v24, %v7290_v55  ;;  %v2423_v20 = vsel %vm6347_vm4, %v2418_v34, %v2422_v14  ;;  %v2465_v48 = vor.u32 %v2464_v11, %v7320_v39  ;;  %v5269_v55 = vld [vmem:[%s6303_s9 + $0x30] sm:$0xe]  ;;  %v5270_v14 = vld [vmem:[%s6303_s9 + $0x3c] sm:$0xe] }
  0xc3   : > { %5853 = vmatmul.mubr.msk.bf16.gmra.mxu0 %vm715_vm3, %v7204_v62  ;;  %v2437_v62 = vsel %vm6347_vm4, %v2432_v19, %v2436_v42  ;;  %v2447_v38 = vsel %vm6347_vm4, %v2442_v33, %v2446_v2  ;;  %v7380_v9 = vrot.slane %v2455_v57, 4  ;;  %v2832_v46 = vrot.slane %v6864_v49, 5  ;;  %v6103_v57 = vld [vmem:[%s6303_s9 + $0x78] sm:$0xff]  }
  0xc4   : > { %5856 = vmatprep.mubr.msk.bf16.mxu0 %vm715_vm3, %v5242_v18  ;;  %v7384_v43 = vcombine.low %v2365_v53, %v2375_v60  ;;  %v7386_v32 = vrot.slane %v2465_v48, 4  ;;  %v7388_v52 = vrot.slane %v2468_v58, 5  ;;  %v5284_v7 = vrot.slane %v5268_v13, 9  ;;  %v6104_v53 = vld [vmem:[%s6303_s9 + $0x84] sm:$0xff]   ;;  %v5273_v13 = vld [vmem:[%s6303_s9 + $0x60] sm:$0xe] }
  0xc5   : > { %v7391_v54 = vcombine.low %v2389_v25, %v2399_v10  ;;  %v7393_v42 = vcombine.low %v2413_v3, %v2423_v20  ;;  %v5282_v37 = vrot.slane %v7373_v12, 9  ;;  %v2846_v24 = vrot.slane %v6913_v44, 5  ;;  %v6110_v49 = vld [vmem:[%s6303_s9 + $0x18] sm:$0xff]  }
  0xc6   : > { %5819 = vmatmul.mubr.msk.bf16.gmra.mxu1 %vm715_vm3, %v6101_v23  ;;  %v7399_v15 = vcombine.low %v2437_v62, %v2447_v38  ;;  %v2835_v34 = vrot.slane %v6900_v47, 5  ;;  %v2849_v29 = vrot.slane %v6928_v21, 5  ;;  %v5285_v56 = vrot.slane %v5269_v55, 9  ;;  %v5275_v55 = vld [vmem:[%s6303_s9 + $0x78] sm:$0xe] }
  0xc7   : > { %5822 = vmatprep.mubr.msk.bf16.mxu1 %vm715_vm3, %v6102_v63  ;;  %v2461_v16 = vsel %vm6347_vm4, %v7380_v9, %v7320_v39  ;;  %v7410_v44 = vrot.slane %v2832_v46, 4  ;;  %v7414_v18 = vsel %vm6633_vm7, %v5284_v7, %v2846_v24  ;;  %v2848_v19 = vrot.slane %v2846_v24, 4 }
  0xc8   : > { %v2471_v21 = vsel %vm6347_vm4, %v7386_v32, %v7388_v52  ;;  %v2853_v33 = vrot.slane %v6951_v5, 5  ;;  %v2856_v2 = vrot.slane %v6959_v41, 5  ;;  %v5286_v59 = vrot.slane %v5270_v14, 9  ;;  %v6109_v52 = vld [vmem:[%s6303_s9 + $0xc0] sm:$0xff]  }
  0xc9   : > { %v7426_v11 = vsel %vm6633_vm7, %v2848_v19, %v2849_v29  ;;  %v2860_v58 = vrot.slane %v6968_v61, 5  ;;  %v2863_v23 = vrot.slane %v7020_v50, 5  ;;  %v5287_v36 = vrot.slane %v5271_v26, 9  ;;  %v5276_v19 = vld [vmem:[%s6303_s9 + $0x84] sm:$0xe] }
  0xca   : > { %v5301_v5 = vcombine.low %v7414_v18, %v7426_v11  ;;  %v7436_v41 = vsel %vm6633_vm7, %v5285_v56, %v2853_v33  ;;  %v2855_v60 = vrot.slane %v2853_v33, 4  ;;  %v2867_v25 = vrot.slane %v6986_v1, 5 }
  0xcb   : > { %5857 = vmatmul.mubr.msk.bf16.gmra.mxu0 %vm715_vm3, %v5243_v17  ;;  %v7443_v61 = vsel %vm6633_vm7, %v5286_v59, %v2860_v58  ;;  %v2862_v50 = vrot.slane %v2860_v58, 4  ;;  %v2870_v17 = vrot.slane %v7034_v8, 5  ;;  %v5288_v63 = vrot.slane %v5272_v6, 9  ;;  %v9078_v59 = vld [vmem:[#allocation7_spill] sm:$0xff] }
  0xcc   : > { %5860 = vmatprep.mubr.msk.bf16.mxu0 %vm715_vm3, %v5244_v51  ;;  %v7448_v10 = vsel %vm6633_vm7, %v2855_v60, %v2856_v2  ;;  %v7452_v3 = vsel %vm6633_vm7, %v5287_v36, %v2867_v25  ;;  %v2869_v1 = vrot.slane %v2867_v25, 4  ;;  %v2874_v20 = vrot.slane %v7029_v40, 5  ;;  %v5274_v51 = vld [vmem:[%s6303_s9 + $0x6c] sm:$0xe]  ;;  %v6105_v58 = vld [vmem:[%s6303_s9 + $0x90] sm:$0xff]  }
  0xcd   : > { %v5302_v48 = vcombine.low %v7436_v41, %v7448_v10  ;;  %v7461_v8 = vsel %vm6633_vm7, %v2862_v50, %v2863_v23  ;;  %v2877_v62 = vrot.slane %v7051_v35, 5  ;;  %v5289_v38 = vrot.slane %v5273_v13, 9  ;;  %v9079_v36 = vld [vmem:[#allocation6_spill] sm:$0xff]  ;;  %v5277_v60 = vld [vmem:[%s6303_s9 + $0x90] sm:$0xe]  ;;  %v9080_v50 = vld [vmem:[#allocation9_spill] sm:$0xff] }
  0xce   : > { %5823 = vmatmul.mubr.msk.bf16.gmra.mxu1 %vm715_vm3, %v6103_v57  ;;  %v5303_v40 = vcombine.low %v7443_v61, %v7461_v8  ;;  %v7470_v7 = vsel %vm6633_vm7, %v2869_v1, %v2870_v17  ;;  %v7474_v24 = vsel %vm6633_vm7, %v5288_v63, %v2874_v20  ;;  %v2876_v14 = vrot.slane %v2874_v20, 4 }
  0xcf   : > { %5826 = vmatprep.mubr.msk.bf16.mxu1 %vm715_vm3, %v6104_v53  ;;  %v5304_v35 = vcombine.low %v7452_v3, %v7470_v7  ;;  %v2881_v29 = vrot.slane %v7064_v28, 5  ;;  %v2884_v56 = vrot.slane %v7086_v30, 5  ;;  %v5290_v26 = vrot.slane %v5274_v51, 9  ;;  %v9081_v51 = vld [vmem:[#allocation8_spill] sm:$0xff]  ;;  %v5408_v3 = vld [vmem:[%s6303_s9 + $0x48] sm:$0xf] }
  0xd0   : > { %v7483_v33 = vsel %vm6633_vm7, %v2876_v14, %v2877_v62  ;;  %v2888_v2 = vrot.slane %v7083_v27, 5  ;;  %v2891_v6 = vrot.slane %v9078_v59, 5  ;;  %v5291_v57 = vrot.slane %v5275_v55, 9  ;;  %v6106_v27 = vld [vmem:[%s6303_s9 + $0x9c] sm:$0xff]   ;;  %v9089_v55 = vld [vmem:[#allocation18_spill] sm:$0xff] }
  0xd1   : > { %v5305_v23 = vcombine.low %v7474_v24, %v7483_v33  ;;  %v7492_v28 = vsel %vm6633_vm7, %v5289_v38, %v2881_v29  ;;  %v2883_v30 = vrot.slane %v2881_v29, 4  ;;  %v2895_v53 = vrot.slane %v9079_v36, 5  ;;  %v5278_v38 = vld [vmem:[%s6303_s9 + $0x9c] sm:$0xe]  ;;  %v9084_v36 = vld [vmem:[#allocation15_spill] sm:$0xff] }
  0xd2   : > { %v7501_v25 = vsel %vm6633_vm7, %v5290_v26, %v2888_v2  ;;  %v2890_v13 = vrot.slane %v2888_v2, 4  ;;  %v2898_v17 = vrot.slane %v9080_v50, 5  ;;  %v5292_v63 = vrot.slane %v5276_v19, 9  ;;  %v5279_v26 = vld [vmem:[%s6303_s9 + $0xa8] sm:$0xe] }
  0xd3   : > { %5861 = vmatmul.mubr.msk.bf16.gmra.mxu0 %vm715_vm3, %v7384_v43  ;;  %v7508_v1 = vsel %vm6633_vm7, %v2883_v30, %v2884_v56  ;;  %v7512_v43 = vsel %vm6633_vm7, %v5291_v57, %v2895_v53  ;;  %v2897_v20 = vrot.slane %v2895_v53, 4  ;;  %v2902_v62 = vrot.slane %v9081_v51, 5  ;;  %v5281_v57 = vld [vmem:[%s6303_s9 + $0xc0] sm:$0xe]  ;;  %v6107_v19 = vld [vmem:[%s6303_s9 + $0xa8] sm:$0xff]  }
  0xd4   : > { %5864 = vmatprep.mubr.msk.bf16.mxu0 %vm715_vm3, %v7391_v54  ;;  %v7520_v14 = vsel %vm6633_vm7, %v2890_v13, %v2891_v6  ;;  %v9082_v54 = vld [vmem:[#allocation11_spill] sm:$0xff]  ;;  %v5293_v56 = vrot.slane %v5277_v60, 9  ;;  %v2912_v53 = vrot.slane %v9084_v36, 5  ;;  %v5294_v60 = vrot.slane %v5278_v38, 9  ;;  %v9087_v38 = vld [vmem:[#allocation16_spill] sm:$0xff] }
  0xd5   : > { %v2905_v29 = vrot.slane %v9082_v54, 5  ;;  %v7529_v2 = vsel %vm6633_vm7, %v2897_v20, %v2898_v17  ;;  %v7533_v59 = vsel %vm6633_vm7, %v5292_v63, %v2902_v62  ;;  %v2904_v6 = vrot.slane %v2902_v62, 4  ;;  %v5280_v13 = vld [vmem:[%s6303_s9 + $0xb4] sm:$0xe]  ;;  %v9085_v17 = vld [vmem:[#allocation13_spill] sm:$0xff] }
  0xd6   : > { %5827 = vmatmul.mubr.msk.bf16.gmra.mxu1 %vm715_vm3, %v6105_v58  ;;  %v9083_v58 = vld [vmem:[#allocation10_spill] sm:$0xff]  ;;  %v2916_v63 = vrot.slane %v9085_v17, 5  ;;  %v9086_v20 = vld [vmem:[#allocation5_spill] sm:$0xff]  ;;  %v5295_v62 = vrot.slane %v5279_v26, 9  ;;  %v2923_v36 = vrot.slane %v9087_v38, 5  ;;  %v5296_v26 = vrot.slane %v5280_v13, 9 }
  0xd7   : > { %5830 = vmatprep.mubr.msk.bf16.mxu1 %vm715_vm3, %v6106_v27  ;;  %v2909_v30 = vrot.slane %v9083_v58, 5  ;;  %v7543_v50 = vsel %vm6633_vm7, %v2904_v6, %v2905_v29  ;;  %v2919_v51 = vrot.slane %v9086_v20, 5  ;;  %v9088_v17 = vld [vmem:[#allocation17_spill] sm:$0xff]  ;;  %v6108_v27 = vld [vmem:[%s6303_s9 + $0xb4] sm:$0xff]   ;;  %v2836_v39 = vsel %vm6633_vm7, %v7410_v44, %v2835_v34  ;;  %v7760_v7 = vld [vmem:[%s6303_s9 + $0x4c] sm:$0xf] }
  0xd8   : > { %v7558_v29 = vsel %vm6633_vm7, %v5294_v60, %v2916_v63  ;;  %v2918_v6 = vrot.slane %v2916_v63, 4  ;;  %v2926_v20 = vrot.slane %v9088_v17, 5  ;;  %v2925_v38 = vrot.slane %v2923_v36, 4  ;;  %v6127_v44 = vld [vmem:[%s6303_s9 + $0x20] sm:$0x1] }
  0xd9   : > { %v7551_v54 = vsel %vm6633_vm7, %v5293_v56, %v2909_v30  ;;  %v2911_v58 = vrot.slane %v2909_v30, 4  ;;  %v7570_v30 = vsel %vm6633_vm7, %v5295_v62, %v2923_v36  ;;  %v2930_v60 = vrot.slane %v9089_v55, 5 }
  0xda   : > { %v5297_v63 = vrot.slane %v5281_v57, 9  ;;  %v7586_v55 = vsel %vm6633_vm7, %v2925_v38, %v2926_v20  ;;  %v2937_v57 = vrot.slane %v7305_v22, 5  ;;  %v2833_v22 = vsel %vm6633_vm7, %v5282_v37, %v2832_v46  ;;  %v6112_v38 = vld [vmem:[%s6303_s9 + $0x30] sm:$0xff]  }
  0xdb   : > { %5865 = vmatmul.mubr.msk.bf16.gmra.mxu0 %vm715_vm3, %v7393_v42  ;;  %v7566_v56 = vsel %vm6633_vm7, %v2911_v58, %v2912_v53  ;;  %v7579_v42 = vsel %vm6633_vm7, %v2918_v6, %v2919_v51  ;;  %v2933_v53 = vrot.slane %v7296_v4, 5  ;;  %v2932_v58 = vrot.slane %v2930_v60, 4 }
  0xdc   : > { %5868 = vmatprep.mubr.msk.bf16.mxu0 %vm715_vm3, %v7399_v15  ;;  %v7590_v15 = vsel %vm6633_vm7, %v5296_v26, %v2930_v60  ;;  %v2940_v51 = vrot.slane %v7317_v45, 5  ;;  %v5267_v45 = vld [vmem:[%s6303_s9 + $0x18] sm:$0xe]  ;;  %v7630_v9 = vsel %vm6633_vm7, %v5297_v63, %v2937_v57  ;;  %v2939_v46 = vrot.slane %v2937_v57, 4  ;;  %v6111_v26 = vld [vmem:[%s6303_s9 + $0x24] sm:$0xff]  }
  0xdd   : > { %v7618_v32 = vsel %vm6633_vm7, %v2932_v58, %v2933_v53  ;;  %v5283_v37 = vrot.slane %v5267_v45, 9  ;;  %v5299_v34 = vcombine.low %v2833_v22, %v2836_v39  ;;  %v9090_v60 = vld [vmem:[#allocation12_spill] sm:$0xff] }
  0xde   : > { %5831 = vmatmul.mubr.msk.bf16.gmra.mxu1 %vm715_vm3, %v6107_v19  ;;  %v5249_v19 = vcombine.low %v2461_v16, %v2471_v21  ;;  %v7635_v47 = vsel %vm6633_vm7, %v2939_v46, %v2940_v51  ;;  %v2842_v21 = vrot.slane %v6127_v44, 5  ;;  %v4599_v53 = vsel %vm764_vm0, %v9090_v60, 0  ;;  %v5396_v63 = vld [vmem:[%s6303_s9 + $0x18] sm:$0xf]  ;;  %v5397_v57 = vld [vmem:[%s6303_s9 + $0x1c] sm:$0xf] }
  0xdf   : > { %5834 = vmatprep.mubr.msk.bf16.mxu1 %vm715_vm3, %v6108_v27  ;;  %v6126_v27 = vld [vmem:[%s6303_s9 + $0x1c] sm:$0xf]  ;;  %v5399_v51 = vld [vmem:[%s6303_s9 + $0x24] sm:$0xf]  ;;  %v3647_v45 = vshrl.u32 %v5396_v63, 16  ;;  %v3656_v39 = vshll.u32 %v5397_v57, 16 }
  0xe0   : > { %v2839_v36 = vrot.slane %v6126_v27, 5  ;;  %v3650_v27 = vshll.u32 %v5396_v63, 16  ;;  %v3671_v46 = vshrl.u32 %v5399_v51, 16  ;;  %v6114_v44 = vld [vmem:[%s6303_s9 + $0x48] sm:$0xff]   ;;  %v5477_v60 = vld [vmem:[%s6303_s9 + $0x18] sm:$0xe] }
  0xe1   : > { %v7676_v63 = vld [vmem:[%s6303_s9 + $0x2c] sm:$0x1] }
  0xe2   : > { %v2841_v16 = vrot.slane %v2839_v36, 4  ;;  %v2840_v17 = vsel %vm6633_vm7, %v5283_v37, %v2839_v36  ;;  %v7660_v36 = vld [vmem:[%s6303_s9 + $0x28] sm:$0xf]  ;;  %v6113_v37 = vld [vmem:[%s6303_s9 + $0x3c] sm:$0xff]   ;;  %v3673_v18 = vrot.slane %v3671_v46, 4 }
  0xe3   : > { %5869 = vmatmul.mubr.msk.bf16.gmra.mxu0 %vm715_vm3, %v5249_v19  ;;  %v9091_v19 = vld [vmem:[#allocation14_spill] sm:$0xff] }
  0xe4   : > { %5908 = vmatprep.mubr.msk.bf16.mxu0 %vm715_vm3, %v6110_v49  ;;  %v2843_v20 = vsel %vm6633_vm7, %v2841_v16, %v2842_v21  ;;  %v4129_v22 = vsel %vm764_vm0, %v9091_v19, 0  ;;  %v3660_v49 = vshrl.u32 %v5397_v57, 16  ;;  %v3684_v16 = vshrl.u32 %v7660_v36, 16  ;;  %v5398_v21 = vld [vmem:[%s6303_s9 + $0x20] sm:$0x1] }
  0xe5   : > { %v5300_v58 = vcombine.low %v2840_v17, %v2843_v20  ;;  %v3649_v17 = vrot.slane %v3647_v45, 4  ;;  %v3652_v20 = vrot.slane %v3650_v27, 5  ;;  %v5402_v19 = vld [vmem:[%s6303_s9 + $0x30] sm:$0xf]  ;;  %v3666_v45 = vshll.u32 %v5398_v21, 16 }
  0xe6   : > { %5835 = vmatmul.mubr.msk.bf16.gmra.mxu1 %vm715_vm3, %v6109_v52  ;;  %v3674_v52 = vshll.u32 %v5399_v51, 16  ;;  %v3686_v51 = vrot.slane %v3684_v16, 4  ;;  %v5493_v27 = vrot.slane %v5477_v60, 9  ;;  %v4393_v46 = vrot.slane %v5398_v21, 5  ;;  %v5478_v16 = vld [vmem:[%s6303_s9 + $0x24] sm:$0xe] }
  0xe7   : > { %5874 = vmatprep.mubr.msk.bf16.mxu1 %vm715_vm3, %v5299_v34  ;;  %v3680_v34 = vshll.u32 %v7660_v36, 16  ;;  %v6115_v21 = vld [vmem:[%s6303_s9 + $0x54] sm:$0xff]   ;;  %v3698_v10 = vshll.u32 %v5402_v19, 16  ;;  %v6116_v60 = vld [vmem:[%s6303_s9 + $0x60] sm:$0xff]  }
  0xe8   : > { %v3676_v11 = vrot.slane %v3674_v52, 5  ;;  %v3690_v52 = vshll.u32 %v7676_v63, 16 }
  0xeb   : > { %5909 = vmatmul.mubr.msk.bf16.vlgmr.msra.gmra.mxu0 %vm715_vm3, %v6111_v26  ;;  %v7672_v26 = vrot.slane %v3656_v39, 5 }
  0xec   : > { %5975 = vmatpush3.bf16.msra.mxu0 %v4599_v53  ;;  %5912 = vmatprep.mubr.msk.bf16.mxu0 %vm715_vm3, %v6112_v38  ;;  %v3662_v38 = vrot.slane %v3660_v49, 4  ;;  %v4390_v53 = vrot.slane %v5397_v57, 5  ;;  %v7686_v57 = vld [vmem:[%s6303_s9 + $0x34] sm:$0xf] }
  0xee   : > { %5875 = vmatmul.mubr.msk.bf16.vlgmr.msra.gmra.mxu1 %vm715_vm3, %v5300_v58  ;;  %v7681_v58 = vrot.slane %v3680_v34, 5  ;;  %v3663_v39 = vor.u32 %v3662_v38, %v7672_v26  ;;  %v4392_v49 = vrot.slane %v4390_v53, 4  ;;  %v3677_v34 = vor.u32 %v3676_v11, %v3673_v18 }
  0xef   : > { %5941 = vmatpush3.bf16.msra.mxu1 %v4129_v22  ;;  %5878 = vmatprep.mubr.msk.bf16.mxu1 %vm715_vm3, %v5301_v5  ;;  %v7679_v5 = vpop.f32.mrf.mxu0  ;;  %v3653_v22 = vor.u32 %v3652_v20, %v3649_v17  ;;  %v3695_v17 = vshrl.u32 %v5402_v19, 16  ;;  %v3708_v38 = vshrl.u32 %v7686_v57, 16  ;;  %v7711_v61 = vsel %vm6633_vm7, %v5493_v27, %v4390_v53  ;;  %v5405_v19 = vld [vmem:[%s6303_s9 + $0x3c] sm:$0xf] }
  0xf0   : > { %v3687_v41 = vor.u32 %v3686_v51, %v7681_v58  ;;  %v3664_v8 = vrot.slane %v3663_v39, 4  ;;  %v3692_v11 = vrot.slane %v3690_v52, 5  ;;  %v5494_v51 = vrot.slane %v5478_v16, 9  ;;  %v7725_v39 = vld [vmem:[%s6303_s9 + $0x38] sm:$0x1] }
  0xf1   : > { %v7703_v20 = vpop.f32.mrf.mxu0  ;;  %v3654_v18 = vrot.slane %v3653_v22, 4  ;;  %v3678_v12 = vrot.slane %v3677_v34, 4  ;;  %v4400_v22 = vrot.slane %v7676_v63, 5  ;;  %v3710_v52 = vrot.slane %v3708_v38, 4 }
  0xf2   : > { %v3688_v27 = vrot.slane %v3687_v41, 4  ;;  %v3719_v34 = vshrl.u32 %v5405_v19, 16  ;;  %v3722_v16 = vshll.u32 %v5405_v19, 16  ;;  %v7738_v41 = vld [vmem:[%s6303_s9 + $0x40] sm:$0xf] }
  0xf3   : > { %5913 = vmatmul.mubr.msk.bf16.gmra.mxu0 %vm715_vm3, %v6113_v37  ;;  %v7722_v53 = vpop.f32.mrf.mxu0  ;;  %v3659_v63 = vsel %vm6347_vm4, %v3654_v18, %v7672_v26  ;;  %v3683_v26 = vsel %vm6347_vm4, %v3678_v12, %v7681_v58  ;;  %v5479_v18 = vld [vmem:[%s6303_s9 + $0x30] sm:$0xe]  ;;  %v3728_v24 = vshll.u32 %v7738_v41, 16  ;;  %v3732_v33 = vshrl.u32 %v7738_v41, 16 }
  0xf4   : > { %5916 = vmatprep.mubr.msk.bf16.mxu0 %vm715_vm3, %v6114_v44  ;;  %v7694_v37 = vpop.f32.mrf.mxu1  ;;  %v4397_v44 = vrot.slane %v7660_v36, 5  ;;  %v3668_v36 = vrot.slane %v3666_v45, 5  ;;  %v3697_v45 = vrot.slane %v3695_v17, 4  ;;  %v3693_v58 = vsel %vm6347_vm4, %v3688_v27, %v3692_v11 }
  0xf5   : > { %9092 = vst [vmem:[#allocation7_spill] sm:$0xff] %v7694_v37  ;;  %v7767_v12 = vpop.f32.mrf.mxu0  ;;  %v3724_v19 = vrot.slane %v3722_v16, 5  ;;  %v3756_v11 = vshrl.u32 %v7760_v7, 16 }
  0xf6   : > { %5879 = vmatmul.mubr.msk.bf16.gmra.mxu1 %vm715_vm3, %v5302_v48  ;;  %v3704_v48 = vshll.u32 %v7686_v57, 16  ;;  %v7718_v6 = vpop.f32.mrf.mxu1  ;;  %v4399_v4 = vrot.slane %v4397_v44, 4  ;;  %v3669_v17 = vsel %vm6347_vm4, %v3664_v8, %v3668_v36  ;;  %v4404_v36 = vrot.slane %v7686_v57, 5  ;;  %v6118_v8 = vld [vmem:[%s6303_s9 + $0x78] sm:$0xff]  }
  0xf7   : > { %5882 = vmatprep.mubr.msk.bf16.mxu1 %vm715_vm3, %v5303_v40  ;;  %v7715_v40 = vsel %vm6633_vm7, %v4392_v49, %v4393_v46  ;;  %9093 = vst [vmem:[#allocation6_spill] sm:$0xff] %v7718_v6  ;;  %v3700_v49 = vrot.slane %v3698_v10, 5  ;;  %v7781_v27 = vcombine.low %v3659_v63, %v3669_v17  ;;  %v7783_v57 = vcombine.low %v3683_v26, %v3693_v58  ;;  %v7797_v17 = vld [vmem:[%s6303_s9 + $0x58] sm:$0xf]  ;;  %v7803_v58 = vld [vmem:[%s6303_s9 + $0x44] sm:$0x1] }
  0xf8   : > { %v7727_v46 = vrot.slane %v3704_v48, 5  ;;  %v7744_v10 = vpop.f32.mrf.mxu1  ;;  %v7751_v48 = vsel %vm6633_vm7, %v5494_v51, %v4397_v44  ;;  %v7755_v38 = vsel %vm6633_vm7, %v4399_v4, %v4400_v22  ;;  %v3721_v51 = vrot.slane %v3719_v34, 4  ;;  %v5411_v34 = vld [vmem:[%s6303_s9 + $0x54] sm:$0xf] }
  0xf9   : > { %9094 = vst [vmem:[#allocation9_spill] sm:$0xff] %v7744_v10  ;;  %v3701_v44 = vor.u32 %v3700_v49, %v3697_v45  ;;  %v3746_v22 = vshll.u32 %v5408_v3, 16  ;;  %v4406_v13 = vrot.slane %v4404_v36, 4  ;;  %v4407_v63 = vrot.slane %v7725_v39, 5  ;;  %v5480_v49 = vld [vmem:[%s6303_s9 + $0x3c] sm:$0xe] }
  0xfa   : > { %v3711_v4 = vor.u32 %v3710_v52, %v7727_v46  ;;  %v7779_v45 = vpop.f32.mrf.mxu1  ;;  %v5495_v52 = vrot.slane %v5479_v18, 9  ;;  %v3725_v18 = vor.u32 %v3724_v19, %v3721_v51  ;;  %v9097_v6 = vcombine.low %v7492_v28, %v7508_v1 }
  0xfb   : > { %5917 = vmatmul.mubr.msk.bf16.gmra.mxu0 %vm715_vm3, %v6115_v21  ;;  %v3752_v21 = vshll.u32 %v7760_v7, 16  ;;  %9095 = vst [vmem:[#allocation8_spill] sm:$0xff] %v7779_v45  ;;  %v3748_v45 = vrot.slane %v3746_v22, 5  ;;  %v3767_v51 = vshrl.u32 %v5411_v34, 16  ;;  %v3770_v19 = vshll.u32 %v5411_v34, 16 }
  0xfc   : > { %5920 = vmatprep.mubr.msk.bf16.mxu0 %vm715_vm3, %v6116_v60  ;;  %v3714_v60 = vshll.u32 %v7725_v39, 16  ;;  %v7800_v26 = vrot.slane %v3711_v4, 4  ;;  %v3758_v39 = vrot.slane %v3756_v11, 4  ;;  %v7838_v22 = vsel %vm6633_vm7, %v4406_v13, %v4407_v63 }
  0xfd   : > { %v7808_v10 = vrot.slane %v3752_v21, 5  ;;  %v9099_v21 = vcombine.low %v7501_v25, %v7520_v14  ;;  %v4411_v25 = vrot.slane %v7738_v41, 5  ;;  %v6120_v14 = vld [vmem:[%s6303_s9 + $0x90] sm:$0xff]   ;;  %v5496_v1 = vrot.slane %v5480_v49, 9  ;;  %v5414_v41 = vld [vmem:[%s6303_s9 + $0x60] sm:$0xf] }
  0xfe   : > { %5883 = vmatmul.mubr.msk.bf16.gmra.mxu1 %vm715_vm3, %v5304_v35  ;;  %v6117_v35 = vld [vmem:[%s6303_s9 + $0x6c] sm:$0xff]   ;;  %v7793_v62 = vrot.slane %v3714_v60, 5  ;;  %v3769_v37 = vrot.slane %v3767_v51, 4 }
  0xff   : > { %5886 = vmatprep.mubr.msk.bf16.mxu1 %vm715_vm3, %v5305_v23  ;;  %v3743_v23 = vshrl.u32 %v5408_v3, 16  ;;  %v7791_v3 = vrot.slane %v3701_v44, 4  ;;  %v3734_v44 = vrot.slane %v3732_v33, 4  ;;  %v3780_v33 = vshrl.u32 %v7797_v17, 16 }
 0x100   : > { %v7789_v16 = vpop.f32.mrf.mxu0  ;;  %v3759_v13 = vor.u32 %v3758_v39, %v7808_v10  ;;  %v4418_v39 = vrot.slane %v7760_v7, 5  ;;  %v9103_v7 = vcombine.low %v7512_v43, %v7529_v2  ;;  %v9105_v43 = vcombine.low %v7533_v59, %v7543_v50  ;;  %v6121_v2 = vld [vmem:[%s6303_s9 + $0x9c] sm:$0xff]  }
 0x101   : > { %9096 = vst [vmem:[#allocation11_spill] sm:$0xff] %v7789_v16  ;;  %v3745_v60 = vrot.slane %v3743_v23, 4  ;;  %v6119_v23 = vld [vmem:[%s6303_s9 + $0x84] sm:$0xff]   ;;  %v7865_v16 = vld [vmem:[%s6303_s9 + $0x5c] sm:$0x1]  ;;  %v4425_v59 = vrot.slane %v7797_v17, 5 }
 0x102   : > { %v7826_v28 = vpop.f32.mrf.mxu0 }
 0x103   : > { %5921 = vmatmul.mubr.msk.bf16.gmra.mxu0 %vm715_vm3, %v6117_v35  ;;  %v7805_v35 = vrot.slane %v3728_v24, 5  ;;  %v3776_v24 = vshll.u32 %v7797_v17, 16  ;;  %9100 = vst [vmem:[#allocation15_spill] sm:$0xff] %v7826_v28  ;;  %v3772_v28 = vrot.slane %v3770_v19, 5 }
 0x104   : > { %5924 = vmatprep.mubr.msk.bf16.mxu0 %vm715_vm3, %v6118_v8  ;;  %v7814_v4 = vpop.f32.mrf.mxu1  ;;  %v7817_v8 = vld [vmem:[%s6303_s9 + $0x50] sm:$0x1]  ;;  %v7858_v49 = vpop.f32.mrf.mxu0 }
 0x105   : > { %9098 = vst [vmem:[#allocation10_spill] sm:$0xff] %v7814_v4  ;;  %v3735_v34 = vor.u32 %v3734_v44, %v7805_v35  ;;  %v7848_v4 = vrot.slane %v3725_v18, 4  ;;  %v7855_v11 = vrot.slane %v3776_v24, 5  ;;  %v3782_v44 = vrot.slane %v3780_v33, 4  ;;  %9102 = vst [vmem:[#allocation5_spill] sm:$0xff] %v7858_v49 }
 0x106   : > { %5887 = vmatmul.mubr.msk.bf16.gmra.mxu1 %vm715_vm3, %v9097_v6  ;;  %v7834_v6 = vsel %vm6633_vm7, %v5495_v52, %v4404_v36  ;;  %v3749_v36 = vor.u32 %v3748_v45, %v3745_v60  ;;  %v3762_v52 = vshll.u32 %v7817_v8, 16  ;;  %v7853_v63 = vpop.f32.mrf.mxu1  ;;  %v4413_v18 = vrot.slane %v4411_v25, 4  ;;  %v5481_v24 = vld [vmem:[%s6303_s9 + $0x48] sm:$0xe] }
 0x107   : > { %5890 = vmatprep.mubr.msk.bf16.mxu1 %vm715_vm3, %v9099_v21  ;;  %v3738_v21 = vshll.u32 %v7803_v58, 16  ;;  %9101 = vst [vmem:[#allocation13_spill] sm:$0xff] %v7853_v63  ;;  %v4414_v60 = vrot.slane %v7803_v58, 5  ;;  %v3736_v51 = vrot.slane %v3735_v34, 4  ;;  %v3791_v33 = vshrl.u32 %v5414_v41, 16 }
 0x108   : > { %v7871_v63 = vsel %vm6633_vm7, %v5496_v1, %v4411_v25  ;;  %v3750_v45 = vrot.slane %v3749_v36, 4  ;;  %v3760_v49 = vrot.slane %v3759_v13, 4  ;;  %v3764_v58 = vrot.slane %v3762_v52, 5  ;;  %v7886_v36 = vld [vmem:[%s6303_s9 + $0x64] sm:$0xf]  ;;  %v7893_v13 = vpop.f32.mrf.mxu0 }
 0x109   : > { %v3740_v19 = vrot.slane %v3738_v21, 5  ;;  %v3731_v34 = vsel %vm6347_vm4, %v7848_v4, %v7805_v35  ;;  %v3773_v21 = vor.u32 %v3772_v28, %v3769_v37  ;;  %v3783_v1 = vor.u32 %v3782_v44, %v7855_v11  ;;  %9106 = vst [vmem:[#allocation17_spill] sm:$0xff] %v7893_v13  ;;  %v5482_v28 = vld [vmem:[%s6303_s9 + $0x54] sm:$0xe]  ;;  %v6125_v13 = vld [vmem:[%s6303_s9 + $0xcc] sm:$0xff]  }
 0x10a   : > { %v3786_v25 = vshll.u32 %v7865_v16, 16  ;;  %v7897_v52 = vsel %vm6633_vm7, %v4413_v18, %v4414_v60  ;;  %v5497_v35 = vrot.slane %v5481_v24, 9  ;;  %v4420_v37 = vrot.slane %v4418_v39, 4 }
 0x10b   : > { %5925 = vmatmul.mubr.msk.bf16.gmra.mxu0 %vm715_vm3, %v6119_v23  ;;  %v3794_v23 = vshll.u32 %v5414_v41, 16  ;;  %v4421_v4 = vrot.slane %v7817_v8, 5  ;;  %v6122_v41 = vld [vmem:[%s6303_s9 + $0xa8] sm:$0xff]   ;;  %v3741_v44 = vsel %vm6347_vm4, %v3736_v51, %v3740_v19  ;;  %v3793_v50 = vrot.slane %v3791_v33, 4 }
 0x10c   : > { %5928 = vmatprep.mubr.msk.bf16.mxu0 %vm715_vm3, %v6120_v14  ;;  %v7877_v14 = vpop.f32.mrf.mxu1  ;;  %v3765_v18 = vsel %vm6347_vm4, %v3760_v49, %v3764_v58  ;;  %v3800_v60 = vshll.u32 %v7886_v36, 16  ;;  %v3804_v8 = vshrl.u32 %v7886_v36, 16  ;;  %v3784_v51 = vrot.slane %v3783_v1, 4  ;;  %v7915_v33 = vld [vmem:[%s6303_s9 + $0x68] sm:$0x1] }
 0x10d   : > { %9104 = vst [vmem:[#allocation16_spill] sm:$0xff] %v7877_v14  ;;  %v3774_v14 = vrot.slane %v3773_v21, 4  ;;  %v3788_v17 = vrot.slane %v3786_v25, 5  ;;  %v5498_v19 = vrot.slane %v5482_v28, 9  ;;  %v9109_v49 = vsel %vm6347_vm4, %v7800_v26, %v7793_v62  ;;  %v5417_v25 = vld [vmem:[%s6303_s9 + $0x6c] sm:$0xf] }
 0x10e   : > { %5891 = vmatmul.mubr.msk.bf16.gmra.mxu1 %vm715_vm3, %v9103_v7  ;;  %v3796_v7 = vrot.slane %v3794_v23, 5  ;;  %v7912_v24 = vpop.f32.mrf.mxu1  ;;  %v7936_v21 = vsel %vm6633_vm7, %v5497_v35, %v4418_v39  ;;  %v7940_v1 = vsel %vm6633_vm7, %v4420_v37, %v4421_v4  ;;  %v7943_v62 = vcombine.low %v3731_v34, %v3741_v44  ;;  %v5483_v4 = vld [vmem:[%s6303_s9 + $0x60] sm:$0xe]  ;;  %v5423_v44 = vld [vmem:[%s6303_s9 + $0x84] sm:$0xf] }
 0x10f   : > { %5894 = vmatprep.mubr.msk.bf16.mxu1 %vm715_vm3, %v9105_v43  ;;  %v3755_v43 = vsel %vm6347_vm4, %v3750_v45, %v7808_v10  ;;  %9107 = vst [vmem:[#allocation18_spill] sm:$0xff] %v7912_v24  ;;  %v9110_v45 = vsel %vm6347_vm4, %v7791_v3, %v7727_v46  ;;  %v4427_v46 = vrot.slane %v4425_v59, 4  ;;  %v4428_v3 = vrot.slane %v7865_v16, 5 }
 0x110   : > { %v7930_v23 = vcombine.low %v9110_v45, %v9109_v49  ;;  %9111 = vst [vmem:[#allocation14_spill] sm:$0xff] %v7943_v62  ;;  %v3797_v26 = vor.u32 %v3796_v7, %v3793_v50  ;;  %v7950_v28 = vcombine.low %v3755_v43, %v3765_v18  ;;  %v7952_v39 = vrot.slane %v3800_v60, 5 }
 0x111   : > { %v7918_v10 = vpop.f32.mrf.mxu0  ;;  %v7954_v35 = vrot.slane %v3804_v8, 4  ;;  %v3810_v37 = vshll.u32 %v7915_v33, 16  ;;  %v9113_v34 = vcombine.low %v7551_v54, %v7566_v56  ;;  %v3779_v50 = vsel %vm6347_vm4, %v3774_v14, %v7855_v11  ;;  %v5420_v54 = vld [vmem:[%s6303_s9 + $0x78] sm:$0xf] }
 0x112   : > { %9108 = vst [vmem:[#allocation12_spill] sm:$0xff] %v7918_v10  ;;  %9112 = vst [vmem:[#allocation19_spill] sm:$0xff] %v7950_v28  ;;  %v3789_v7 = vsel %vm6347_vm4, %v3784_v51, %v3788_v17  ;;  %v7974_v43 = vsel %vm6633_vm7, %v5498_v19, %v4425_v59  ;;  %v9115_v56 = vcombine.low %v7558_v29, %v7579_v42  ;;  %v3815_v60 = vshrl.u32 %v5417_v25, 16  ;;  %v7986_v51 = vld [vmem:[%s6303_s9 + $0x7c] sm:$0xf]  ;;  %v6124_v59 = vld [vmem:[%s6303_s9 + $0xc0] sm:$0xff]  }
 0x113   : > { %5929 = vmatmul.mubr.msk.bf16.gmra.mxu0 %vm715_vm3, %v6121_v2  ;;  %v7948_v2 = vld [vmem:[%s6303_s9 + $0x70] sm:$0xf]  ;;  %v7981_v18 = vpop.f32.mrf.mxu0  ;;  %v3818_v8 = vshll.u32 %v5417_v25, 16  ;;  %v7991_v17 = vsel %vm6633_vm7, %v4427_v46, %v4428_v3  ;;  %v7993_v29 = vrot.slane %v3797_v26, 4  ;;  %v5499_v42 = vrot.slane %v5483_v4, 9 }
 0x114   : > { %5932 = vmatprep.mubr.msk.bf16.mxu0 %vm715_vm3, %v6122_v41  ;;  %v6123_v41 = vld [vmem:[%s6303_s9 + $0xb4] sm:$0xff]   ;;  %9116 = vst [vmem:[#allocation21_spill] sm:$0xff] %v7981_v18  ;;  %v3824_v11 = vshll.u32 %v7948_v2, 16  ;;  %v3828_v14 = vshrl.u32 %v7948_v2, 16  ;;  %v4432_v19 = vrot.slane %v7886_v36, 5  ;;  %v7996_v49 = vcombine.low %v3779_v50, %v3789_v7 }
 0x115   : > { %v3807_v45 = vor.u32 %v7954_v35, %v7952_v39  ;;  %v8000_v25 = vrot.slane %v3810_v37, 5  ;;  %v3839_v46 = vshrl.u32 %v5420_v54, 16  ;;  %v3842_v3 = vshll.u32 %v5420_v54, 16  ;;  %v8012_v4 = vld [vmem:[%s6303_s9 + $0x88] sm:$0xf]  ;;  %v8015_v35 = vpop.f32.mrf.mxu0 }
 0x116   : > { %5895 = vmatmul.mubr.msk.bf16.gmra.mxu1 %vm715_vm3, %v9113_v34  ;;  %v7962_v16 = vpop.f32.mrf.mxu1  ;;  %9117 = vst [vmem:[#allocation22_spill] sm:$0xff] %v7996_v49  ;;  %v4435_v34 = vrot.slane %v7915_v33, 5  ;;  %v3848_v36 = vshll.u32 %v7986_v51, 16  ;;  %v3852_v26 = vshrl.u32 %v7986_v51, 16  ;;  %9119 = vst [vmem:[#allocation24_spill] sm:$0xff] %v8015_v35  ;;  %v3817_v33 = vrot.slane %v3815_v60, 4 }
 0x117   : > { %9114 = vst [vmem:[#allocation20_spill] sm:$0xff] %v7962_v16  ;;  %5898 = vmatprep.mubr.msk.bf16.mxu1 %vm715_vm3, %v9115_v56  ;;  %v8004_v56 = vld [vmem:[%s6303_s9 + $0x74] sm:$0x1]  ;;  %v3820_v37 = vrot.slane %v3818_v8, 5  ;;  %v8017_v50 = vrot.slane %v3824_v11, 5  ;;  %v3830_v7 = vrot.slane %v3828_v14, 4  ;;  %v9120_v54 = vcombine.low %v7570_v30, %v7586_v55  ;;  %v8045_v49 = vpop.f32.mrf.mxu0 }
 0x118   : > { %v8007_v58 = vpop.f32.mrf.mxu1  ;;  %v4434_v16 = vrot.slane %v4432_v19, 4  ;;  %v8030_v60 = vld [vmem:[%s6303_s9 + $0x80] sm:$0x1]  ;;  %v8033_v8 = vld [vmem:[%s6303_s9 + $0x6c] sm:$0xe]  ;;  %v3863_v11 = vshrl.u32 %v5423_v44, 16 }
 0x119   : > { %9118 = vst [vmem:[#allocation23_spill] sm:$0xff] %v8007_v58  ;;  %v8026_v58 = vsel %vm6633_vm7, %v5499_v42, %v4432_v19  ;;  %v3866_v14 = vshll.u32 %v5423_v44, 16  ;;  %v3876_v24 = vshrl.u32 %v8012_v4, 16  ;;  %v3841_v19 = vrot.slane %v3839_v46, 4  ;;  %9122 = vst [vmem:[#allocation26_spill] sm:$0xff] %v8045_v49 }
 0x11a   : > { %v8041_v42 = vpop.f32.mrf.mxu1  ;;  %v3844_v35 = vrot.slane %v3842_v3, 5  ;;  %v8043_v18 = vrot.slane %v3848_v36, 5  ;;  %v3854_v10 = vrot.slane %v3852_v26, 4  ;;  %v9123_v44 = vcombine.low %v7590_v15, %v7618_v32  ;;  %v8064_v32 = vld [vmem:[%s6303_s9 + $0x8c] sm:$0x1] }
 0x11b   : > { %5933 = vmatmul.mubr.msk.bf16.gmra.mxu0 %vm715_vm3, %v6123_v41  ;;  %v3834_v41 = vshll.u32 %v8004_v56, 16  ;;  %9121 = vst [vmem:[#allocation25_spill] sm:$0xff] %v8041_v42  ;;  %v3821_v30 = vor.u32 %v3820_v37, %v3817_v33  ;;  %v3831_v55 = vor.u32 %v3830_v7, %v8017_v50  ;;  %v3858_v46 = vshll.u32 %v8030_v60, 16  ;;  %v5485_v33 = vld [vmem:[%s6303_s9 + $0x78] sm:$0xe] }
 0x11c   : > { %5936 = vmatprep.mubr.msk.bf16.mxu0 %vm715_vm3, %v6124_v59  ;;  %v3872_v59 = vshll.u32 %v8012_v4, 16  ;;  %v8055_v3 = vrot.slane %v3807_v45, 4  ;;  %v8059_v36 = vsel %vm6633_vm7, %v4434_v16, %v4435_v34  ;;  %v5500_v26 = vrot.slane %v8033_v8, 9  ;;  %v8069_v42 = vpop.f32.mrf.mxu1  ;;  %v5426_v8 = vld [vmem:[%s6303_s9 + $0x90] sm:$0xf] }
 0x11d   : > { %v4446_v15 = vrot.slane %v7986_v51, 5  ;;  %v3865_v37 = vrot.slane %v3863_v11, 4  ;;  %v3868_v7 = vrot.slane %v3866_v14, 5  ;;  %9124 = vst [vmem:[#allocation27_spill] sm:$0xff] %v8069_v42  ;;  %v3836_v45 = vrot.slane %v3834_v41, 5 }
 0x11e   : > { %5899 = vmatmul.mubr.msk.bf16.gmra.mxu1 %vm715_vm3, %v9120_v54  ;;  %v4439_v54 = vrot.slane %v7948_v2, 5  ;;  %v8067_v2 = vrot.slane %v3872_v59, 5  ;;  %v4442_v49 = vrot.slane %v8004_v56, 5  ;;  %v3845_v16 = vor.u32 %v3844_v35, %v3841_v19  ;;  %v8078_v59 = vld [vmem:[%s6303_s9 + $0x94] sm:$0xf] }
 0x11f   : > { %5902 = vmatprep.mubr.msk.bf16.mxu1 %vm715_vm3, %v9123_v44  ;;  %v3878_v44 = vrot.slane %v3876_v24, 4  ;;  %v3855_v34 = vor.u32 %v3854_v10, %v8043_v18  ;;  %v3822_v51 = vrot.slane %v3821_v30, 4  ;;  %v3832_v11 = vrot.slane %v3831_v55, 4 }
 0x120   : > { %v4441_v62 = vrot.slane %v4439_v54, 4  ;;  %v3860_v14 = vrot.slane %v3858_v46, 5  ;;  %v9125_v24 = vcombine.low %v7711_v61, %v7715_v40  ;;  %v5501_v56 = vrot.slane %v5485_v33, 9 }
 0x121   : > { %v4448_v35 = vrot.slane %v4446_v15, 4  ;;  %v4449_v10 = vrot.slane %v8030_v60, 5  ;;  %v3882_v41 = vshll.u32 %v8064_v32, 16  ;;  %v3879_v30 = vor.u32 %v3878_v44, %v8067_v2 }
 0x122   : > { %v3887_v55 = vshrl.u32 %v5426_v8, 16  ;;  %v3890_v46 = vshll.u32 %v5426_v8, 16  ;;  %v9127_v61 = vcombine.low %v7630_v9, %v7635_v47  ;;  %v3846_v40 = vrot.slane %v3845_v16, 4 }
 0x123   : > { %v8074_v28 = vpop.f32.mrf.mxu0  ;;  %5937 = vmatmul.mubr.msk.bf16.gmra.mxu0 %vm715_vm3, %v6125_v13  ;;  %v3869_v13 = vor.u32 %v3868_v7, %v3865_v37  ;;  %v3856_v33 = vrot.slane %v3855_v34, 4  ;;  %v3896_v60 = vshll.u32 %v8078_v59, 16  ;;  %v3813_v37 = vsel %vm6347_vm4, %v8055_v3, %v8000_v25 }
 0x124   : > { %5976 = vmatprep.mubr.msk.bf16.mxu0 %vm715_vm3, %v9125_v24  ;;  %v3900_v24 = vshrl.u32 %v8078_v59, 16  ;;  %v3827_v9 = vsel %vm6347_vm4, %v3822_v51, %v8017_v50  ;;  %v8110_v47 = vsel %vm6633_vm7, %v5500_v26, %v4439_v54  ;;  %v8114_v7 = vsel %vm6633_vm7, %v4441_v62, %v4442_v49  ;;  %v5486_v54 = vld [vmem:[%s6303_s9 + $0x84] sm:$0xe]  ;;  %v9166_v31 = vld [vmem:[#allocation27_spill] sm:$0xff] }
 0x125   : > { %v8086_v19 = vpop.f32.mrf.mxu0  ;;  %v8122_v25 = vsel %vm6633_vm7, %v5501_v56, %v4446_v15  ;;  %v8126_v50 = vsel %vm6633_vm7, %v4448_v35, %v4449_v10  ;;  %v3884_v3 = vrot.slane %v3882_v41, 5  ;;  %v3870_v62 = vrot.slane %v3869_v13, 4  ;;  %v8150_v13 = vld [vmem:[%s6303_s9 + $0x98] sm:$0x1] }
 0x126   : > { %9126 = vst [vmem:[#allocation28_spill] sm:$0xff] %v8086_v19  ;;  %v8089_v42 = vpop.f32.mrf.mxu1  ;;  %5903 = vmatmul.mubr.msk.bf16.gmra.mxu1 %vm715_vm3, %v9127_v61  ;;  %v3880_v49 = vrot.slane %v3879_v30, 4  ;;  %v3889_v16 = vrot.slane %v3887_v55, 4  ;;  %v3892_v34 = vrot.slane %v3890_v46, 5  ;;  %v3851_v15 = vsel %vm6347_vm4, %v3846_v40, %v8043_v18  ;;  %v5429_v30 = vld [vmem:[%s6303_s9 + $0x9c] sm:$0xf] }
 0x127   : > { %v8097_v19 = vpop.f32.mrf.mxu0  ;;  %5942 = vmatprep.mubr.msk.bf16.mxu1 %vm715_vm3, %v7781_v27  ;;  %v3837_v27 = vsel %vm6347_vm4, %v3832_v11, %v3836_v45  ;;  %v3861_v45 = vsel %vm6347_vm4, %v3856_v33, %v3860_v14  ;;  %v8138_v51 = vrot.slane %v3896_v60, 5  ;;  %v3902_v11 = vrot.slane %v3900_v24, 4  ;;  %v8181_v24 = vld [vmem:[%s6303_s9 + $0xa0] sm:$0xf] }
 0x128   : > { %v8116_v44 = vpop.f32.mrf.mxu1  ;;  %v9128_v35 = vcombine.low %v7751_v48, %v7755_v38  ;;  %v5515_v10 = vcombine.low %v7974_v43, %v7991_v17  ;;  %v5516_v41 = vcombine.low %v8026_v58, %v8059_v36  ;;  %v5502_v18 = vrot.slane %v5486_v54, 9 }
 0x129   : > { %v8129_v26 = vpop.f32.mrf.mxu0  ;;  %v4453_v14 = vrot.slane %v8012_v4, 5  ;;  %v9129_v48 = vcombine.low %v7834_v6, %v7838_v22  ;;  %v9130_v38 = vsel %vm6347_vm4, %v7993_v29, %v7952_v39  ;;  %v8166_v61 = vcombine.low %v3827_v9, %v3837_v27  ;;  %v5487_v29 = vld [vmem:[%s6303_s9 + $0x90] sm:$0xe]  ;;  %v9137_v4 = vld [vmem:[#allocation5_spill] sm:$0xff] }
 0x12a   : > { %v8131_v8 = vpop.f32.mrf.mxu1  ;;  %v8164_v46 = vcombine.low %v9130_v38, %v3813_v37  ;;  %v8172_v60 = vcombine.low %v3851_v15, %v3861_v45  ;;  %v3875_v6 = vsel %vm6347_vm4, %v3870_v62, %v8067_v2  ;;  %v3885_v22 = vsel %vm6347_vm4, %v3880_v49, %v3884_v3 }
 0x12b   : > { %v5774_v56 = vpop.f32.mrf.mxu0  ;;  %5977 = vmatmul.mubr.msk.bf16.vlgmr.msra.gmra.mxu0 %vm715_vm3, %v9128_v35  ;;  %v3893_v39 = vor.u32 %v3892_v34, %v3889_v16  ;;  %v3903_v9 = vor.u32 %v3902_v11, %v8138_v51  ;;  %v3906_v27 = vshll.u32 %v8150_v13, 16  ;;  %v3911_v54 = vshrl.u32 %v5429_v30, 16 }
 0x12c   : > { %v8153_v55 = vpop.f32.mrf.mxu1  ;;  %5980 = vmatprep.mubr.msk.bf16.mxu0 %vm715_vm3, %v9129_v48  ;;  %v3914_v15 = vshll.u32 %v5429_v30, 16  ;;  %v8192_v3 = vsel %vm6633_vm7, %v5502_v18, %v4453_v14  ;;  %v4455_v62 = vrot.slane %v4453_v14, 4  ;;  %v4456_v49 = vrot.slane %v8064_v32, 5 }
 0x12d   : > { %v1519_v33 = vpop.f32.mrf.mxu0  ;;  %v5503_v16 = vrot.slane %v5487_v29, 9  ;;  %v4460_v34 = vrot.slane %v8078_v59, 5  ;;  %v3920_v11 = vshll.u32 %v8181_v24, 16  ;;  %v3924_v35 = vshrl.u32 %v8181_v24, 16 }
 0x12e   : > { %v5740_v37 = vpop.f32.mrf.mxu1  ;;  %5943 = vmatmul.mubr.msk.bf16.vlgmr.msra.gmra.mxu1 %vm715_vm3, %v7783_v57  ;;  %v8201_v48 = vcombine.low %v3875_v6, %v3885_v22  ;;  %v8203_v18 = vrot.slane %v3893_v39, 4  ;;  %v3904_v32 = vrot.slane %v3903_v9, 4  ;;  %v3908_v38 = vrot.slane %v3906_v27, 5  ;;  %v5432_v22 = vld [vmem:[%s6303_s9 + $0xa8] sm:$0xf] }
 0x12f   : > { %v1103_v45 = vadd.f32 %v5740_v37, %v7679_v5  ;;  %v5775_v2 = vpop.f32.mrf.mxu0  ;;  %5946 = vmatprep.mubr.msk.bf16.mxu1 %vm715_vm3, %v7930_v23  ;;  %v3913_v29 = vrot.slane %v3911_v54, 4  ;;  %v3916_v59 = vrot.slane %v3914_v15, 5  ;;  %v4463_v6 = vrot.slane %v8150_v13, 5  ;;  %v8229_v27 = vld [vmem:[%s6303_s9 + $0xac] sm:$0xf] }
 0x130   : > { %v1094_v57 = vpop.f32.mrf.mxu1  ;;  %v3926_v9 = vrot.slane %v3924_v35, 4  ;;  %v9134_v35 = vld [vmem:[#allocation11_spill] sm:$0xff] }
 0x131   : > { %v8198_v5 = vadd.f32 %v5774_v56, %v1103_v45  ;;  %v1095_v23 = vadd.f32 %v1094_v57, %v7703_v20  ;;  %v1522_v30 = vpop.f32.mrf.mxu0  ;;  %v9131_v45 = vcombine.low %v7871_v63, %v7897_v52  ;;  %v8214_v20 = vsel %vm6633_vm7, %v4455_v62, %v4456_v49  ;;  %v5488_v62 = vld [vmem:[%s6303_s9 + $0x9c] sm:$0xe] }
 0x132   : > { %v5741_v14 = vpop.f32.mrf.mxu1  ;;  %v4462_v63 = vrot.slane %v4460_v34, 4  ;;  %v8226_v52 = vrot.slane %v3920_v11, 5  ;;  %v4467_v49 = vrot.slane %v8181_v24, 5  ;;  %v3944_v24 = vshll.u32 %v8229_v27, 16 }
 0x133   : > { %v8205_v37 = vadd.f32 %v1519_v33, %v1095_v23  ;;  %v1106_v40 = vadd.f32 %v5741_v14, %v7722_v53  ;;  %v5778_v56 = vpop.f32.mrf.mxu0  ;;  %5981 = vmatmul.mubr.msk.bf16.gmra.mxu0 %vm715_vm3, %v9131_v45  ;;  %v9132_v33 = vcombine.low %v7936_v21, %v7940_v1  ;;  %v8224_v53 = vsel %vm6633_vm7, %v5503_v16, %v4460_v34  ;;  %v5431_v1 = vld [vmem:[%s6303_s9 + $0xa4] sm:$0x1]  ;;  %v9133_v16 = vld [vmem:[#allocation14_spill] sm:$0xff] }
 0x134   : > { %v1097_v39 = vpop.f32.mrf.mxu1  ;;  %v3899_v21 = vsel %vm6347_vm4, %v8203_v18, %v8138_v51  ;;  %v3935_v34 = vshrl.u32 %v5432_v22, 16  ;;  %v9135_v51 = vld [vmem:[#allocation19_spill] sm:$0xff]  ;;  %v3948_v18 = vshrl.u32 %v8229_v27, 16 }
 0x135   : > { %5984 = vmatprep.mubr.msk.bf16.mxu0 %vm715_vm3, %v9132_v33  ;;  %v8231_v54 = vadd.f32 %v5775_v2, %v1106_v40  ;;  %v1098_v13 = vadd.f32 %v1097_v39, %v7767_v12  ;;  %v1535_v15 = vpop.f32.mrf.mxu0  ;;  %v3909_v40 = vsel %vm6347_vm4, %v3904_v32, %v3908_v38  ;;  %v3917_v2 = vor.u32 %v3916_v59, %v3913_v29  ;;  %v9136_v59 = vld [vmem:[#allocation15_spill] sm:$0xff] }
 0x136   : > { %v5744_v57 = vpop.f32.mrf.mxu1  ;;  %5947 = vmatmul.mubr.msk.bf16.gmra.mxu1 %vm715_vm3, %v9133_v16  ;;  %v3938_v12 = vshll.u32 %v5432_v22, 16  ;;  %v8254_v39 = vsel %vm6633_vm7, %v4462_v63, %v4463_v6  ;;  %v3927_v32 = vor.u32 %v3926_v9, %v8226_v52  ;;  %v3930_v38 = vshll.u32 %v5431_v1, 16 }
 0x137   : > { %v8245_v11 = vadd.f32 %v1522_v30, %v1098_v13  ;;  %v1119_v23 = vadd.f32 %v5744_v57, %v9134_v35  ;;  %v5779_v14 = vpop.f32.mrf.mxu0  ;;  %5950 = vmatprep.mubr.msk.bf16.mxu1 %vm715_vm3, %v9135_v51  ;;  %v5504_v30 = vrot.slane %v5488_v62, 9  ;;  %v4469_v13 = vrot.slane %v4467_v49, 4 }
 0x138   : > { %v1110_v45 = vpop.f32.mrf.mxu1  ;;  %v4470_v57 = vrot.slane %v5431_v1, 5  ;;  %v8262_v51 = vrot.slane %v3917_v2, 4  ;;  %v3937_v6 = vrot.slane %v3935_v34, 4  ;;  %v3940_v63 = vrot.slane %v3938_v12, 5  ;;  %v8272_v1 = vld [vmem:[%s6303_s9 + $0xb0] sm:$0x1] }
 0x139   : > { %v8257_v29 = vadd.f32 %v5778_v56, %v1119_v23  ;;  %v1111_v22 = vadd.f32 %v1110_v45, %v9136_v59  ;;  %v1538_v33 = vpop.f32.mrf.mxu0  ;;  %v8274_v23 = vrot.slane %v3944_v24, 5  ;;  %v3950_v2 = vrot.slane %v3948_v18, 4  ;;  %v9138_v12 = vld [vmem:[#allocation17_spill] sm:$0xff] }
 0x13a   : > { %v5745_v16 = vpop.f32.mrf.mxu1  ;;  %v8284_v43 = vrot.slane %v3927_v32, 4  ;;  %v8286_v17 = vrot.slane %v3930_v38, 5  ;;  %v8294_v58 = vsel %vm6633_vm7, %v5504_v30, %v4467_v49  ;;  %v8298_v36 = vsel %vm6633_vm7, %v4469_v13, %v4470_v57  ;;  %v8310_v30 = vld [vmem:[%s6303_s9 + $0xb8] sm:$0xf] }
 0x13b   : > { %v8264_v9 = vadd.f32 %v1535_v15, %v1111_v22  ;;  %v1122_v62 = vadd.f32 %v5745_v16, %v9137_v4  ;;  %v5782_v56 = vpop.f32.mrf.mxu0  ;;  %5985 = vmatmul.mubr.msk.bf16.gmra.mxu0 %vm715_vm3, %v5515_v10  ;;  %v8280_v15 = vcombine.low %v3899_v21, %v3909_v40  ;;  %v5489_v10 = vld [vmem:[%s6303_s9 + $0xa8] sm:$0xe]  ;;  %v3941_v32 = vor.u32 %v3940_v63, %v3937_v6  ;;  %v9140_v22 = vld [vmem:[#allocation12_spill] sm:$0xff] }
 0x13c   : > { %v1113_v45 = vpop.f32.mrf.mxu1  ;;  %5988 = vmatprep.mubr.msk.bf16.mxu0 %vm715_vm3, %v5516_v41  ;;  %v5435_v41 = vld [vmem:[%s6303_s9 + $0xb4] sm:$0xf]  ;;  %v9139_v40 = vld [vmem:[#allocation22_spill] sm:$0xff]  ;;  %v3954_v38 = vshll.u32 %v8272_v1, 16  ;;  %v4474_v49 = vrot.slane %v8229_v27, 5  ;;  %v3951_v16 = vor.u32 %v3950_v2, %v8274_v23  ;;  %v3933_v27 = vsel %vm6347_vm4, %v8284_v43, %v8286_v17 }
 0x13d   : > { %v8289_v34 = vadd.f32 %v5779_v14, %v1122_v62  ;;  %v1114_v24 = vadd.f32 %v1113_v45, %v9138_v12  ;;  %v1551_v18 = vpop.f32.mrf.mxu0  ;;  %v5505_v62 = vrot.slane %v5489_v10, 9  ;;  %v3959_v6 = vshrl.u32 %v5435_v41, 16 }
 0x13e   : > { %v5748_v21 = vpop.f32.mrf.mxu1  ;;  %5951 = vmatmul.mubr.msk.bf16.gmra.mxu1 %vm715_vm3, %v9139_v40  ;;  %v3962_v63 = vshll.u32 %v5435_v41, 16  ;;  %v3968_v2 = vshll.u32 %v8310_v30, 16  ;;  %v3972_v10 = vshrl.u32 %v8310_v30, 16  ;;  %v5438_v40 = vld [vmem:[%s6303_s9 + $0xc0] sm:$0xf]  ;;  %v3942_v4 = vrot.slane %v3941_v32, 4 }
 0x13f   : > { %v8312_v59 = vadd.f32 %v1538_v33, %v1114_v24  ;;  %v1135_v13 = vadd.f32 %v5748_v21, %v9140_v22  ;;  %v5783_v57 = vpop.f32.mrf.mxu0  ;;  %5954 = vmatprep.mubr.msk.bf16.mxu1 %vm715_vm3, %v8164_v46  ;;  %v9142_v24 = vld [vmem:[#allocation21_spill] sm:$0xff]  ;;  %v3956_v43 = vrot.slane %v3954_v38, 5  ;;  %v4476_v17 = vrot.slane %v4474_v49, 4 }
 0x140   : > { %v1126_v45 = vpop.f32.mrf.mxu1  ;;  %v4477_v33 = vrot.slane %v8272_v1, 5  ;;  %v8340_v14 = vsel %vm6633_vm7, %v5505_v62, %v4474_v49  ;;  %v8343_v32 = vld [vmem:[%s6303_s9 + $0xc4] sm:$0xf]  ;;  %v9146_v1 = vcombine.low %v8122_v25, %v8126_v50  ;;  %v8355_v62 = vrot.slane %v3968_v2, 5 }
 0x141   : > { %v8324_v12 = vadd.f32 %v5782_v56, %v1135_v13  ;;  %v1127_v21 = vadd.f32 %v1126_v45, %v9142_v24  ;;  %v1554_v46 = vpop.f32.mrf.mxu0  ;;  %v9144_v56 = vld [vmem:[#allocation24_spill] sm:$0xff]  ;;  %v9145_v45 = vcombine.low %v8110_v47, %v8114_v7  ;;  %v3952_v24 = vrot.slane %v3951_v16, 4  ;;  %v9147_v16 = vld [vmem:[#allocation26_spill] sm:$0xff] }
 0x142   : > { %v5749_v22 = vpop.f32.mrf.mxu1  ;;  %v3983_v47 = vshrl.u32 %v5438_v40, 16  ;;  %v3986_v7 = vshll.u32 %v5438_v40, 16  ;;  %v3947_v25 = vsel %vm6347_vm4, %v3942_v4, %v8274_v23  ;;  %v8364_v50 = vsel %vm6633_vm7, %v4476_v17, %v4477_v33  ;;  %v5490_v40 = vld [vmem:[%s6303_s9 + $0xb4] sm:$0xe] }
 0x143   : > { %9141 = vst [vmem:[#allocation14_spill] sm:$0xff] %v8324_v12  ;;  %v8331_v35 = vadd.f32 %v1551_v18, %v1127_v21  ;;  %v1138_v41 = vadd.f32 %v5749_v22, %v9144_v56  ;;  %v5786_v13 = vpop.f32.mrf.mxu0  ;;  %5989 = vmatmul.mubr.msk.bf16.gmra.mxu0 %vm715_vm3, %v9145_v45  ;;  %v8350_v18 = vld [vmem:[%s6303_s9 + $0xbc] sm:$0x1]  ;;  %v3961_v21 = vrot.slane %v3959_v6, 4  ;;  %v3964_v22 = vrot.slane %v3962_v63, 5 }
 0x144   : > { %v1129_v38 = vpop.f32.mrf.mxu1  ;;  %5992 = vmatprep.mubr.msk.bf16.mxu0 %vm715_vm3, %v9146_v1  ;;  %v3996_v6 = vshrl.u32 %v8343_v32, 16  ;;  %v3978_v23 = vshll.u32 %v8350_v18, 16  ;;  %v4481_v17 = vrot.slane %v8310_v30, 5  ;;  %v9148_v1 = vld [vmem:[#allocation28_spill] sm:$0xff] }
 0x145   : > { %9143 = vst [vmem:[#allocation11_spill] sm:$0xff] %v8331_v35  ;;  %v8352_v56 = vadd.f32 %v5783_v57, %v1138_v41  ;;  %v1130_v45 = vadd.f32 %v1129_v38, %v9147_v16  ;;  %v1567_v49 = vpop.f32.mrf.mxu0  ;;  %v3974_v35 = vrot.slane %v3972_v10, 4  ;;  %v3992_v57 = vshll.u32 %v8343_v32, 16 }
 0x146   : > { %v5752_v12 = vpop.f32.mrf.mxu1  ;;  %5955 = vmatmul.mubr.msk.bf16.gmra.mxu1 %vm715_vm3, %v8166_v61  ;;  %v3957_v61 = vsel %vm6347_vm4, %v3952_v24, %v3956_v43  ;;  %v3965_v33 = vor.u32 %v3964_v22, %v3961_v21  ;;  %v3985_v41 = vrot.slane %v3983_v47, 4  ;;  %v3988_v38 = vrot.slane %v3986_v7, 5 }
 0x147   : > { %v8368_v63 = vadd.f32 %v1554_v46, %v1130_v45  ;;  %v1151_v2 = vadd.f32 %v5752_v12, %v8074_v28  ;;  %v5787_v10 = vpop.f32.mrf.mxu0  ;;  %5958 = vmatprep.mubr.msk.bf16.mxu1 %vm715_vm3, %v8172_v60  ;;  %v9149_v60 = vsel %vm6347_vm4, %v8262_v51, %v8226_v52  ;;  %v3975_v24 = vor.u32 %v3974_v35, %v8355_v62 }
 0x148   : > { %v1142_v4 = vpop.f32.mrf.mxu1  ;;  %v8386_v43 = vcombine.low %v9149_v60, %v3933_v27  ;;  %v8389_v30 = vcombine.low %v3947_v25, %v3957_v61  ;;  %v8393_v22 = vrot.slane %v3992_v57, 5  ;;  %v3998_v47 = vrot.slane %v3996_v6, 4  ;;  %v5440_v27 = vld [vmem:[%s6303_s9 + $0xc8] sm:$0x1] }
 0x149   : > { %v8378_v46 = vadd.f32 %v5786_v13, %v1151_v2  ;;  %v1143_v28 = vadd.f32 %v1142_v4, %v9148_v1  ;;  %v1570_v12 = vpop.f32.mrf.mxu0  ;;  %v5522_v13 = vcombine.low %v8340_v14, %v8364_v50  ;;  %v9150_v52 = vcombine.low %v8192_v3, %v8214_v20  ;;  %v5441_v14 = vld [vmem:[%s6303_s9 + $0xcc] sm:$0xf]  ;;  %v8414_v20 = vld [vmem:[%s6303_s9 + $0xd0] sm:$0xf]  ;;  %v5491_v4 = vld [vmem:[%s6303_s9 + $0xc0] sm:$0xe] }
 0x14a   : > { %v5753_v21 = vpop.f32.mrf.mxu1  ;;  %v8402_v35 = vrot.slane %v3978_v23, 5  ;;  %v5506_v51 = vrot.slane %v5490_v40, 9  ;;  %v9151_v50 = vcombine.low %v8224_v53, %v8254_v39  ;;  %v4484_v57 = vrot.slane %v8350_v18, 5 }
 0x14b   : > { %v8395_v7 = vadd.f32 %v1567_v49, %v1143_v28  ;;  %v1154_v16 = vadd.f32 %v5753_v21, %v8097_v19  ;;  %v5790_v45 = vpop.f32.mrf.mxu0  ;;  %5993 = vmatmul.mubr.msk.bf16.gmra.mxu0 %vm715_vm3, %v9150_v52  ;;  %v8410_v49 = vrot.slane %v3965_v33, 4  ;;  %v4483_v19 = vrot.slane %v4481_v17, 4 }
 0x14c   : > { %v1145_v25 = vpop.f32.mrf.mxu1  ;;  %5996 = vmatprep.mubr.msk.bf16.mxu0 %vm715_vm3, %v9151_v50  ;;  %v3989_v3 = vor.u32 %v3988_v38, %v3985_v41  ;;  %v8419_v23 = vrot.slane %v3975_v24, 4  ;;  %v4488_v53 = vrot.slane %v8343_v32, 5  ;;  %v3999_v33 = vor.u32 %v3998_v47, %v8393_v22 }
 0x14d   : > { %v8416_v6 = vadd.f32 %v5787_v10, %v1154_v16  ;;  %v1146_v2 = vadd.f32 %v1145_v25, %v8129_v26  ;;  %v1583_v61 = vpop.f32.mrf.mxu0  ;;  %v4002_v18 = vshll.u32 %v5440_v27, 16  ;;  %v4007_v40 = vshrl.u32 %v5441_v14, 16  ;;  %v9154_v10 = vld [vmem:[#allocation7_spill] sm:$0xff]  ;;  %v9155_v16 = vld [vmem:[#allocation6_spill] sm:$0xff] }
 0x14e   : > { %v5756_v39 = vpop.f32.mrf.mxu1  ;;  %5959 = vmatmul.mubr.msk.bf16.gmra.mxu1 %vm715_vm3, %v8201_v48  ;;  %v4010_v41 = vshll.u32 %v5441_v14, 16  ;;  %v4016_v28 = vshll.u32 %v8414_v20, 16  ;;  %v4020_v32 = vshrl.u32 %v8414_v20, 16  ;;  %v4482_v48 = vsel %vm6633_vm7, %v5506_v51, %v4481_v17  ;;  %v9156_v17 = vld [vmem:[#allocation9_spill] sm:$0xff] }
 0x14f   : > { %9152 = vst [vmem:[#allocation19_spill] sm:$0xff] %v8416_v6  ;;  %v8426_v38 = vadd.f32 %v1570_v12, %v1146_v2  ;;  %v1167_v1 = vadd.f32 %v5756_v39, %v9154_v10  ;;  %v5791_v26 = vpop.f32.mrf.mxu0  ;;  %5962 = vmatprep.mubr.msk.bf16.mxu1 %vm715_vm3, %v8280_v15  ;;  %v4485_v24 = vsel %vm6633_vm7, %v4483_v19, %v4484_v57  ;;  %v3990_v21 = vrot.slane %v3989_v3, 4 }
 0x150   : > { %v1158_v60 = vpop.f32.mrf.mxu1  ;;  %v5507_v12 = vrot.slane %v5491_v4, 9  ;;  %v4490_v25 = vrot.slane %v4488_v53, 4  ;;  %v4491_v15 = vrot.slane %v5440_v27, 5  ;;  %v4000_v2 = vrot.slane %v3999_v33, 4  ;;  %v5443_v33 = vld [vmem:[%s6303_s9 + $0xd4] sm:$0x1] }
 0x151   : > { %9153 = vst [vmem:[#allocation15_spill] sm:$0xff] %v8426_v38  ;;  %v8437_v47 = vadd.f32 %v5790_v45, %v1167_v1  ;;  %v1159_v52 = vadd.f32 %v1158_v60, %v9155_v16  ;;  %v1586_v14 = vpop.f32.mrf.mxu0  ;;  %v4004_v39 = vrot.slane %v4002_v18, 5  ;;  %v4009_v10 = vrot.slane %v4007_v40, 4  ;;  %v9158_v18 = vld [vmem:[#allocation8_spill] sm:$0xff] }
 0x152   : > { %v5757_v50 = vpop.f32.mrf.mxu1  ;;  %v4012_v38 = vrot.slane %v4010_v41, 5  ;;  %v9157_v45 = vcombine.low %v8294_v58, %v8298_v36  ;;  %v8447_v57 = vrot.slane %v4016_v28, 5  ;;  %v4022_v27 = vrot.slane %v4020_v32, 4 }
 0x153   : > { %v8440_v6 = vadd.f32 %v1583_v61, %v1159_v52  ;;  %v1170_v51 = vadd.f32 %v5757_v50, %v9156_v17  ;;  %v5794_v19 = vpop.f32.mrf.mxu0  ;;  %v3971_v61 = vsel %vm6347_vm4, %v8410_v49, %v8355_v62  ;;  %v3981_v4 = vsel %vm6347_vm4, %v8419_v23, %v8402_v35  ;;  %v5492_v62 = vld [vmem:[%s6303_s9 + $0xcc] sm:$0xe]  ;;  %s8777_s9 = scalar_lea.vmem [#allocation2], %s5004_s6 }
 0x154   : > { %5997 = vmatmul.mubr.msk.bf16.gmra.mxu0 %vm715_vm3, %v9157_v45  ;;  %v1161_v3 = vpop.f32.mrf.mxu1  ;;  %v4495_v58 = vrot.slane %v8414_v20, 5  ;;  %v4492_v1 = vsel %vm6633_vm7, %v4490_v25, %v4491_v15  ;;  %v5523_v35 = vcombine.low %v4482_v48, %v4485_v24  ;;  %v3995_v20 = vsel %vm6347_vm4, %v3990_v21, %v8393_v22  ;;  %v9160_v25 = vld [vmem:[#allocation13_spill] sm:$0xff]  ;;  %s4883_s11 = sshll.u32 %s8777_s9, 4  ;;  %s8923_s11 = int_to_ptr.vmem [resolvable:$true] %s4883_s11 }
 0x155   : > { %6000 = vmatprep.mubr.msk.bf16.mxu0 %vm715_vm3, %v5522_v13  ;;  %v8460_v36 = vadd.f32 %v5791_v26, %v1170_v51  ;;  %v1162_v40 = vadd.f32 %v1161_v3, %v9158_v18  ;;  %v1599_v41 = vpop.f32.mrf.mxu0  ;;  %v4489_v13 = vsel %vm6633_vm7, %v5507_v12, %v4488_v53  ;;  %v4005_v23 = vsel %vm6347_vm4, %v4000_v2, %v4004_v39  ;;  %v9159_v53 = vld [vmem:[#allocation10_spill] sm:$0xff]  ;;  %s6128_s23 = scalar_lea.vmem %s8923_s11, 4096  ;;  %p6135_p1 = scmp.lt.s32.totalorder %s8923_s11, %s6133_s27 }
 0x156   : > { %v5760_v49 = vpop.f32.mrf.mxu1  ;;  %5963 = vmatmul.mubr.msk.bf16.gmra.mxu1 %vm715_vm3, %v8386_v43  ;;  %v4013_v26 = vor.u32 %v4012_v38, %v4009_v10  ;;  %v4023_v12 = vor.u32 %v4022_v27, %v8447_v57  ;;  %v4026_v43 = vshll.u32 %v5443_v33, 16  ;;  %v5524_v24 = vcombine.low %v4489_v13, %v4492_v1  ;;  %p6129_p12 = scmp.ne.s32.totalorder %s8923_s11, %s6128_s23  ;;  %p6136_p2 = scmp.lt.s32.totalorder %s6134_s28, %s6128_s23 }
 0x157   : > { %v8475_v28 = vadd.f32 %v1586_v14, %v1162_v40  ;;  %v1183_v32 = vadd.f32 %v5760_v49, %v9159_v53  ;;  %v5795_v60 = vpop.f32.mrf.mxu0  ;;  %5966 = vmatprep.mubr.msk.bf16.mxu1 %vm715_vm3, %v8389_v30  ;;  %v5508_v16 = vrot.slane %v5492_v62, 9  ;;  %v4497_v52 = vrot.slane %v4495_v58, 4  ;;  %v9161_v30 = vld [vmem:[#allocation16_spill] sm:$0xff] }
 0x158   : > { %v1174_v48 = vpop.f32.mrf.mxu1  ;;  %v4498_v22 = vrot.slane %v5443_v33, 5  ;;  %v5458_v50 = vcombine.low %v3971_v61, %v3981_v4  ;;  %v5459_v2 = vcombine.low %v3995_v20, %v4005_v23  ;;  %v4014_v39 = vrot.slane %v4013_v26, 4  ;;  %v9162_v33 = vld [vmem:[#allocation18_spill] sm:$0xff]  ;;  %v9163_v62 = vld [vmem:[#allocation20_spill] sm:$0xff]  ;;  %v9164_v26 = vld [vmem:[#allocation23_spill] sm:$0xff]  ;;  %p6130_p13 = pnand %p6129_p12, %p6269_p4  ;;  %p6137_p3 = por %p6136_p2, %p6135_p1 }
 0x159   : > { %v8481_v21 = vadd.f32 %v5794_v19, %v1183_v32  ;;  %v1175_v38 = vadd.f32 %v1174_v48, %v9160_v25  ;;  %v1602_v14 = vpop.f32.mrf.mxu0  ;;  %v4024_v45 = vrot.slane %v4023_v12, 4  ;;  %v4028_v27 = vrot.slane %v4026_v43, 5  ;;  %v9165_v43 = vld [vmem:[#allocation25_spill] sm:$0xff] }
 0x15a   : > { %v5761_v15 = vpop.f32.mrf.mxu1  ;;  %v4496_v19 = vsel %vm6633_vm7, %v5508_v16, %v4495_v58  ;;  %v4499_v61 = vsel %vm6633_vm7, %v4497_v52, %v4498_v22  ;;  %v4019_v13 = vsel %vm6347_vm4, %v4014_v39, %v8447_v57  ;;  %p6131_p0 = pneg %p6130_p13 }
 0x15b   : > { %v8484_v10 = vadd.f32 %v1599_v41, %v1175_v38  ;;  %v1186_v17 = vadd.f32 %v5761_v15, %v9161_v30  ;;  %v5798_v51 = vpop.f32.mrf.mxu0  ;;  %v4029_v0 = vsel %vm6347_vm4, %v4024_v45, %v4028_v27 }
 0x15c   : > { %6001 = vmatmul.mubr.msk.bf16.gmra.mxu0 %vm715_vm3, %v5523_v35  ;;  %v1177_v3 = vpop.f32.mrf.mxu1  ;;  %v5525_v35 = vcombine.low %v4496_v19, %v4499_v61  ;;  %v5460_v12 = vcombine.low %v4019_v13, %v4029_v0  ;;  %p6138_p5 = pnand %p6137_p3, %p6131_p0 }
 0x15d   : > { %6004 = vmatprep.mubr.msk.bf16.mxu0 %vm715_vm3, %v5524_v24  ;;  %v8493_v4 = vadd.f32 %v5795_v60, %v1186_v17  ;;  %v1178_v18 = vadd.f32 %v1177_v3, %v9162_v33  ;;  %v1615_v40 = vpop.f32.mrf.mxu0 }
 0x15e   : > { %v5764_v41 = vpop.f32.mrf.mxu1  ;;  %5967 = vmatmul.mubr.msk.bf16.gmra.mxu1 %vm715_vm3, %v5458_v50 }
 0x15f   : > { %v8500_v1 = vadd.f32 %v1602_v14, %v1178_v18  ;;  %v1199_v49 = vadd.f32 %v5764_v41, %v9163_v62  ;;  %v5799_v58 = vpop.f32.mrf.mxu0  ;;  %5970 = vmatprep.mubr.msk.bf16.mxu1 %vm715_vm3, %v5459_v2 }
 0x160   : > { %v1190_v20 = vpop.f32.mrf.mxu1 }
 0x161   : > { %v8506_v23 = vadd.f32 %v5798_v51, %v1199_v49  ;;  %v1191_v53 = vadd.f32 %v1190_v20, %v9164_v26  ;;  %v1618_v32 = vpop.f32.mrf.mxu0 }
 0x162   : > { %v5765_v60 = vpop.f32.mrf.mxu1 }
 0x163   : > { %v8509_v57 = vadd.f32 %v1615_v40, %v1191_v53  ;;  %v1202_v48 = vadd.f32 %v5765_v60, %v9165_v43  ;;  %v5802_v24 = vpop.f32.mrf.mxu0 }
 0x164   : > { %6005 = vmatmul.mubr.msk.bf16.gmra.mxu0 %vm715_vm3, %v5525_v35  ;;  %v1193_v16 = vpop.f32.mrf.mxu1 }
 0x165   : > { %v8513_v52 = vadd.f32 %v5799_v58, %v1202_v48  ;;  %v1194_v22 = vadd.f32 %v1193_v16, %v9166_v31  ;;  %v1631_v25 = vpop.f32.mrf.mxu0 }
 0x166   : > { %v5768_v38 = vpop.f32.mrf.mxu1  ;;  %5971 = vmatmul.mubr.msk.bf16.gmra.mxu1 %vm715_vm3, %v5460_v12 }
 0x167   : > { %v8517_v14 = vadd.f32 %v1618_v32, %v1194_v22  ;;  %v1215_v15 = vadd.f32 %v5768_v38, %v8089_v42  ;;  %v5803_v50 = vpop.f32.mrf.mxu0 }
 0x168   : > { %v1206_v2 = vpop.f32.mrf.mxu1 }
 0x169   : > { %v8520_v39 = vadd.f32 %v5802_v24, %v1215_v15  ;;  %v1207_v30 = vadd.f32 %v1206_v2, %v8116_v44  ;;  %v1634_v17 = vpop.f32.mrf.mxu0 }
 0x16a   : > { %v5769_v51 = vpop.f32.mrf.mxu1 }
 0x16b   : > { %v8523_v45 = vadd.f32 %v1631_v25, %v1207_v30  ;;  %v1218_v27 = vadd.f32 %v5769_v51, %v8131_v8  ;;  %v5842_v3 = vpop.f32.mrf.mxu0  ;;  %v9167_v30 = vld [vmem:[#allocation14_spill] sm:$0xff] }
 0x16c   : > { %v1209_v19 = vpop.f32.mrf.mxu1 }
 0x16d   : > { %v8526_v61 = vadd.f32 %v5803_v50, %v1218_v27  ;;  %v1210_v33 = vadd.f32 %v1209_v19, %v8153_v55  ;;  %v2607_v18 = vpop.f32.mrf.mxu0 }
 0x16e   : > { %v5808_v42 = vpop.f32.mrf.mxu1 }
 0x16f   : > { %v8529_v40 = vadd.f32 %v1634_v17, %v1210_v33  ;;  %v2010_v41 = vadd.f32 %v5808_v42, %v8198_v5  ;;  %v5843_v13 = vpop.f32.mrf.mxu0 }
 0x170   : > { %v1881_v44 = vpop.f32.mrf.mxu1 }
 0x171   : > { %v8532_v62 = vadd.f32 %v5842_v3, %v2010_v41  ;;  %v2008_v49 = vadd.f32 %v1881_v44, %v8205_v37  ;;  %v2610_v58 = vpop.f32.mrf.mxu0  ;;  %v9168_v3 = vld [vmem:[#allocation11_spill] sm:$0xff] }
 0x172   : > { %v5809_v8 = vpop.f32.mrf.mxu1 }
 0x173   : > { %v8535_v0 = vadd.f32 %v2607_v18, %v2008_v49  ;;  %v2011_v35 = vadd.f32 %v5809_v8, %v8231_v54  ;;  %v5846_v20 = vpop.f32.mrf.mxu0 }
 0x174   : > { %v1884_v55 = vpop.f32.mrf.mxu1 }
 0x175   : > { %v8538_v26 = vadd.f32 %v5843_v13, %v2011_v35  ;;  %v2009_v53 = vadd.f32 %v1884_v55, %v8245_v11  ;;  %v2623_v32 = vpop.f32.mrf.mxu0 }
 0x176   : > { %v5812_v5 = vpop.f32.mrf.mxu1 }
 0x177   : > { %v8541_v60 = vadd.f32 %v2610_v58, %v2009_v53  ;;  %v2014_v12 = vadd.f32 %v5812_v5, %v8257_v29  ;;  %v5847_v43 = vpop.f32.mrf.mxu0 }
 0x178   : > { %v1897_v37 = vpop.f32.mrf.mxu1 }
 0x179   : > { %v8544_v48 = vadd.f32 %v5846_v20, %v2014_v12  ;;  %v2012_v24 = vadd.f32 %v1897_v37, %v8264_v9  ;;  %v2626_v16 = vpop.f32.mrf.mxu0 }
 0x17a   : > { %v5813_v54 = vpop.f32.mrf.mxu1 }
 0x17b   : > { %v8547_v31 = vadd.f32 %v2623_v32, %v2012_v24  ;;  %v2015_v22 = vadd.f32 %v5813_v54, %v8289_v34  ;;  %v5850_v25 = vpop.f32.mrf.mxu0  ;;  %v9170_v54 = vld [vmem:[#allocation15_spill] sm:$0xff] }
 0x17c   : > { %v1900_v11 = vpop.f32.mrf.mxu1 }
 0x17d   : > { %v8550_v38 = vadd.f32 %v5847_v43, %v2015_v22  ;;  %v2013_v15 = vadd.f32 %v1900_v11, %v8312_v59  ;;  %v2639_v50 = vpop.f32.mrf.mxu0  ;;  %v9169_v43 = vld [vmem:[#allocation19_spill] sm:$0xff] }
 0x17e   : > { %v5816_v29 = vpop.f32.mrf.mxu1 }
 0x17f   : > { %v8553_v2 = vadd.f32 %v2626_v16, %v2013_v15  ;;  %v2018_v17 = vadd.f32 %v5816_v29, %v9167_v30  ;;  %v5851_v51 = vpop.f32.mrf.mxu0 }
 0x180   : > { %v1913_v9 = vpop.f32.mrf.mxu1 }
 0x181   : > { %v8556_v27 = vadd.f32 %v5850_v25, %v2018_v17  ;;  %v2016_v19 = vadd.f32 %v1913_v9, %v9168_v3  ;;  %v2642_v33 = vpop.f32.mrf.mxu0 }
 0x182   : > { %v5817_v34 = vpop.f32.mrf.mxu1 }
 0x183   : > { %v8559_v18 = vadd.f32 %v2639_v50, %v2016_v19  ;;  %v2019_v42 = vadd.f32 %v5817_v34, %v8352_v56  ;;  %v5854_v41 = vpop.f32.mrf.mxu0 }
 0x184   : > { %v1916_v59 = vpop.f32.mrf.mxu1 }
 0x185   : > { %v8562_v13 = vadd.f32 %v5851_v51, %v2019_v42  ;;  %v2017_v44 = vadd.f32 %v1916_v59, %v8368_v63  ;;  %v2655_v49 = vpop.f32.mrf.mxu0 }
 0x186   : > { %v5820_v58 = vpop.f32.mrf.mxu1 }
 0x187   : > { %v8565_v8 = vadd.f32 %v2642_v33, %v2017_v44  ;;  %v2022_v35 = vadd.f32 %v5820_v58, %v8378_v46  ;;  %v5855_v20 = vpop.f32.mrf.mxu0 }
 0x188   : > { %v1929_v55 = vpop.f32.mrf.mxu1 }
 0x189   : > { %v8568_v53 = vadd.f32 %v5854_v41, %v2022_v35  ;;  %v2020_v32 = vadd.f32 %v1929_v55, %v8395_v7  ;;  %v2658_v5 = vpop.f32.mrf.mxu0 }
 0x18a   : > { %v5821_v56 = vpop.f32.mrf.mxu1 }
 0x18b   : > { %v8571_v12 = vadd.f32 %v2655_v49, %v2020_v32  ;;  %v2023_v37 = vadd.f32 %v5821_v56, %v9169_v43  ;;  %v5858_v24 = vpop.f32.mrf.mxu0 }
 0x18c   : > { %v1932_v63 = vpop.f32.mrf.mxu1 }
 0x18d   : > { %v8574_v16 = vadd.f32 %v5855_v20, %v2023_v37  ;;  %v2021_v22 = vadd.f32 %v1932_v63, %v9170_v54  ;;  %v2671_v25 = vpop.f32.mrf.mxu0 }
 0x18e   : > { %v5824_v46 = vpop.f32.mrf.mxu1 }
 0x18f   : > { %v8577_v11 = vadd.f32 %v2658_v5, %v2021_v22  ;;  %v2026_v15 = vadd.f32 %v5824_v46, %v8437_v47  ;;  %v5859_v50 = vpop.f32.mrf.mxu0 }
 0x190   : > { %v1945_v7 = vpop.f32.mrf.mxu1 }
 0x191   : > { %v8580_v29 = vadd.f32 %v5858_v24, %v2026_v15  ;;  %v2024_v30 = vadd.f32 %v1945_v7, %v8440_v6  ;;  %v2674_v17 = vpop.f32.mrf.mxu0 }
 0x192   : > { %v5825_v51 = vpop.f32.mrf.mxu1 }
 0x193   : > { %v8583_v9 = vadd.f32 %v2671_v25, %v2024_v30  ;;  %v2027_v3 = vadd.f32 %v5825_v51, %v8460_v36  ;;  %v5862_v19 = vpop.f32.mrf.mxu0 }
 0x194   : > { %v1948_v33 = vpop.f32.mrf.mxu1 }
 0x195   : > { %v8586_v34 = vadd.f32 %v5859_v50, %v2027_v3  ;;  %v2025_v42 = vadd.f32 %v1948_v33, %v8475_v28  ;;  %v2687_v41 = vpop.f32.mrf.mxu0 }
 0x196   : > { %v5828_v47 = vpop.f32.mrf.mxu1 }
 0x197   : > { %9171 = vst [vmem:[#allocation5_spill] sm:$0xff] %v8586_v34  ;;  %v8589_v59 = vadd.f32 %v2674_v17, %v2025_v42  ;;  %v2030_v44 = vadd.f32 %v5828_v47, %v8481_v21  ;;  %v5863_v49 = vpop.f32.mrf.mxu0 }
 0x198   : > { %v1961_v6 = vpop.f32.mrf.mxu1 }
 0x199   : > { %9172 = vst [vmem:[#allocation17_spill] sm:$0xff] %v8589_v59  ;;  %v8592_v58 = vadd.f32 %v5862_v19, %v2030_v44  ;;  %v2028_v35 = vadd.f32 %v1961_v6, %v8484_v10  ;;  %v2690_v20 = vpop.f32.mrf.mxu0 }
 0x19a   : > { %v5829_v36 = vpop.f32.mrf.mxu1 }
 0x19b   : > { %9173 = vst [vmem:[#allocation22_spill] sm:$0xff] %v8592_v58  ;;  %v8595_v55 = vadd.f32 %v2687_v41, %v2028_v35  ;;  %v2031_v32 = vadd.f32 %v5829_v36, %v8493_v4  ;;  %v5866_v5 = vpop.f32.mrf.mxu0 }
 0x19c   : > { %v1964_v28 = vpop.f32.mrf.mxu1 }
 0x19d   : > { %9174 = vst [vmem:[#allocation12_spill] sm:$0xff] %v8595_v55  ;;  %v8598_v56 = vadd.f32 %v5863_v49, %v2031_v32  ;;  %v2029_v43 = vadd.f32 %v1964_v28, %v8500_v1  ;;  %v2703_v37 = vpop.f32.mrf.mxu0 }
 0x19e   : > { %v5832_v21 = vpop.f32.mrf.mxu1 }
 0x19f   : > { %9175 = vst [vmem:[#allocation21_spill] sm:$0xff] %v8598_v56  ;;  %v8601_v24 = vadd.f32 %v2690_v20, %v2029_v43  ;;  %v2034_v63 = vadd.f32 %v5832_v21, %v8506_v23  ;;  %v5867_v54 = vpop.f32.mrf.mxu0 }
 0x1a0   : > { %v1977_v10 = vpop.f32.mrf.mxu1 }
 0x1a1   : > { %9176 = vst [vmem:[#allocation24_spill] sm:$0xff] %v8601_v24  ;;  %v8604_v22 = vadd.f32 %v5866_v5, %v2034_v63  ;;  %v2032_v25 = vadd.f32 %v1977_v10, %v8509_v57  ;;  %v2706_v46 = vpop.f32.mrf.mxu0 }
 0x1a2   : > { %v5833_v4 = vpop.f32.mrf.mxu1 }
 0x1a3   : > { %9177 = vst [vmem:[#allocation26_spill] sm:$0xff] %v8604_v22  ;;  %v8607_v15 = vadd.f32 %v2703_v37, %v2032_v25  ;;  %v2035_v50 = vadd.f32 %v5833_v4, %v8513_v52  ;;  %v5870_v7 = vpop.f32.mrf.mxu0 }
 0x1a4   : > { %v1980_v1 = vpop.f32.mrf.mxu1 }
 0x1a5   : > { %9178 = vst [vmem:[#allocation28_spill] sm:$0xff] %v8607_v15  ;;  %v8610_v30 = vadd.f32 %v5867_v54, %v2035_v50  ;;  %v2033_v17 = vadd.f32 %v1980_v1, %v8517_v14  ;;  %v2719_v51 = vpop.f32.mrf.mxu0 }
 0x1a6   : > { %v5836_v23 = vpop.f32.mrf.mxu1 }
 0x1a7   : > { %9179 = vst [vmem:[#allocation7_spill] sm:$0xff] %v8610_v30  ;;  %v8613_v3 = vadd.f32 %v2706_v46, %v2033_v17  ;;  %v2038_v19 = vadd.f32 %v5836_v23, %v8520_v39  ;;  %v5871_v33 = vpop.f32.mrf.mxu0 }
 0x1a8   : > { %v1993_v57 = vpop.f32.mrf.mxu1 }
 0x1a9   : > { %9180 = vst [vmem:[#allocation6_spill] sm:$0xff] %v8613_v3  ;;  %v8616_v42 = vadd.f32 %v5870_v7, %v2038_v19  ;;  %v2036_v41 = vadd.f32 %v1993_v57, %v8523_v45  ;;  %v2722_v47 = vpop.f32.mrf.mxu0 }
 0x1aa   : > { %v5837_v52 = vpop.f32.mrf.mxu1 }
 0x1ab   : > { %9181 = vst [vmem:[#allocation9_spill] sm:$0xff] %v8616_v42  ;;  %v8619_v44 = vadd.f32 %v2719_v51, %v2036_v41  ;;  %v2039_v49 = vadd.f32 %v5837_v52, %v8526_v61  ;;  %v8622_v6 = vpop.f32.mrf.mxu0 }
 0x1ac   : > { %v1996_v14 = vpop.f32.mrf.mxu1 }
 0x1ad   : > { %9182 = vst [vmem:[#allocation8_spill] sm:$0xff] %v8619_v44  ;;  %v8624_v35 = vadd.f32 %v5871_v33, %v2039_v49  ;;  %v2037_v20 = vadd.f32 %v1996_v14, %v8529_v40  ;;  %v8627_v39 = vpop.f32.mrf.mxu0 }
 0x1ae   : > { %v5876_v36 = vpop.f32.mrf.mxu1 }
 0x1af   : > { %9183 = vst [vmem:[#allocation10_spill] sm:$0xff] %v8624_v35  ;;  %v8629_v32 = vadd.f32 %v2722_v47, %v2037_v20  ;;  %v8631_v5 = vpop.f32.mrf.mxu0 }
 0x1b0   : > { %v3077_v45 = vpop.f32.mrf.mxu1 }
 0x1b1   : > { %9184 = vst [vmem:[#allocation13_spill] sm:$0xff] %v8629_v32  ;;  %v8633_v28 = vpop.f32.mrf.mxu0 }
 0x1b2   : > { %v8635_v43 = vpop.f32.mrf.mxu1 }
 0x1b3   : > { %v8637_v61 = vpop.f32.mrf.mxu0 }
 0x1b4   : > { %v8639_v37 = vpop.f32.mrf.mxu1 }
 0x1b5   : > { %v8641_v21 = vpop.f32.mrf.mxu0 }
 0x1b6   : > { %v8643_v63 = vpop.f32.mrf.mxu1 }
 0x1b7   : > { %v8645_v40 = vpop.f32.mrf.mxu0 }
 0x1b8   : > { %v8647_v54 = vpop.f32.mrf.mxu1 }
 0x1b9   : > { %v8649_v10 = vpop.f32.mrf.mxu0 }
 0x1ba   : > { %v8651_v25 = vpop.f32.mrf.mxu1 }
 0x1bb   : > { %v8653_v46 = vpop.f32.mrf.mxu0 }
 0x1bc   : > { %v8655_v4 = vpop.f32.mrf.mxu1 }
 0x1bd   : > { %v8657_v50 = vpop.f32.mrf.mxu0 }
 0x1be   : > { %v8659_v7 = vpop.f32.mrf.mxu1 }
 0x1bf   : > { %v8661_v1 = vpop.f32.mrf.mxu0 }
 0x1c0   : > { %v8663_v17 = vpop.f32.mrf.mxu1 }
 0x1c1   : > { %v8665_v51 = vpop.f32.mrf.mxu0 }
 0x1c2   : > { %v8667_v23 = vpop.f32.mrf.mxu1 }
 0x1c3   : > { %v8669_v19 = vpop.f32.mrf.mxu0 }
 0x1c4   : > { %v8671_v33 = vpop.f32.mrf.mxu1 }
 0x1c5   : > { %v8673_v57 = vpop.f32.mrf.mxu0 }
 0x1c6   : > { %v8675_v41 = vpop.f32.mrf.mxu1 }
 0x1c7   : > { %v8677_v47 = vpop.f32.mrf.mxu0 }
 0x1c8   : > { %v8679_v52 = vpop.f32.mrf.mxu1 }
 0x1c9   : > { %v8681_v49 = vpop.f32.mrf.mxu0 }
 0x1ca   : > { %v8683_v14 = vpop.f32.mrf.mxu1 }
 0x1cb   : > { %v8685_v20 = vpop.f32.mrf.mxu0 }
 0x1cc   : > { %v8687_v32 = vpop.f32.mrf.mxu1 }
 0x1cd   : > { %v8689_v35 = vpop.f32.mrf.mxu0 }
 0x1ce   : > { %9185 = vst [vmem:[#allocation16_spill] sm:$0xff] %v8689_v35  ;;  %v8691_v44 = vpop.f32.mrf.mxu1 }
 0x1cf   : > { %v8693_v42 = vpop.f32.mrf.mxu0 }
 0x1d0   : > { %9186 = vst [vmem:[#allocation18_spill] sm:$0xff] %v8693_v42  ;;  %v8695_v3 = vpop.f32.mrf.mxu1 }
 0x1d1   : > { %v8697_v30 = vpop.f32.mrf.mxu0 }
 0x1d2   : > { %9187 = vst [vmem:[#allocation20_spill] sm:$0xff] %v8697_v30  ;;  %v8699_v15 = vpop.f32.mrf.mxu1 }
 0x1d3   : > { %9188 = vst [vmem:[#allocation23_spill] sm:$0xff] %v8699_v15  ;;  %v8701_v22 = vpop.f32.mrf.mxu0 }
 0x1d4   : > { %9189 = vst [vmem:[#allocation25_spill] sm:$0xff] %v8701_v22  ;;  %v8703_v24 = vpop.f32.mrf.mxu1 }
 0x1d5   : > { %9190 = vst [vmem:[#allocation27_spill] sm:$0xff] %v8703_v24  ;;  %v8705_v56 = vpop.f32.mrf.mxu0 }
 0x1d6   : > { %9191 = vst [vmem:[#allocation14_spill] sm:$0xff] %v8705_v56  ;;  %v8707_v55 = vpop.f32.mrf.mxu1 }
 0x1d7   : > { %9192 = vst [vmem:[#allocation11_spill] sm:$0xff] %v8707_v55  ;;  %v8709_v58 = vpop.f32.mrf.mxu0 }
 0x1d8   : > { %9193 = vst [vmem:[#allocation19_spill] sm:$0xff] %v8709_v58  ;;  %v8711_v59 = vpop.f32.mrf.mxu1 }
 0x1d9   : > { %9194 = vst [vmem:[#allocation15_spill] sm:$0xff] %v8711_v59  ;;  %v8713_v35 = vpop.f32.mrf.mxu0 }
 0x1da   : > { %9195 = vst [vmem:[#allocation29_spill] sm:$0xff] %v8713_v35  ;;  %v8715_v42 = vpop.f32.mrf.mxu1 }
 0x1db   : > { %9196 = vst [vmem:[#allocation30_spill] sm:$0xff] %v8715_v42  ;;  %v8717_v34 = vpop.f32.mrf.mxu0 }
 0x1dc   : > { %9197 = vst [vmem:[#allocation31_spill] sm:$0xff] %v8717_v34  ;;  %v8719_v30 = vpop.f32.mrf.mxu1 }
 0x1dd   : > { %9198 = vst [vmem:[#allocation32_spill] sm:$0xff] %v8719_v30  ;;  %v8721_v15 = vpop.f32.mrf.mxu0 }
 0x1de   : > { %9199 = vst [vmem:[#allocation33_spill] sm:$0xff] %v8721_v15  ;;  %v8723_v22 = vpop.f32.mrf.mxu1 }
 0x1df   : > { %9200 = vst [vmem:[#allocation34_spill] sm:$0xff] %v8723_v22  ;;  %v8725_v24 = vpop.f32.mrf.mxu0 }
 0x1e0   : > { %9201 = vst [vmem:[#allocation35_spill] sm:$0xff] %v8725_v24  ;;  %v8727_v56 = vpop.f32.mrf.mxu1  ;;  %v3206_v24 = vadd.f32 %v5876_v36, %v8532_v62  ;;  %v3205_v62 = vadd.f32 %v8639_v37, %v8541_v60  ;;  %v3208_v60 = vadd.f32 %v8647_v54, %v8547_v31 }
 0x1e1   : > { %9202 = vst [vmem:[#allocation36_spill] sm:$0xff] %v8727_v56  ;;  %v8729_v58 = vpop.f32.mrf.mxu0 }
 0x1e2   : > { %9203 = vst [vmem:[#allocation37_spill] sm:$0xff] %v8729_v58  ;;  %v8731_v59 = vpop.f32.mrf.mxu1 }
 0x1e3   : > { %9204 = vst [vmem:[#allocation38_spill] sm:$0xff] %v8731_v59  ;;  %v8733_v35 = vpop.f32.mrf.mxu0  ;;  %v3204_v59 = vadd.f32 %v3077_v45, %v8535_v0  ;;  %v3210_v45 = vadd.f32 %v8643_v63, %v8544_v48 }
 0x1e4   : > { %9205 = vst [vmem:[#allocation39_spill] sm:$0xff] %v8733_v35  ;;  %v8735_v42 = vpop.f32.mrf.mxu1 }
 0x1e5   : > { %9206 = vst [vmem:[#allocation40_spill] sm:$0xff] %v8735_v42  ;;  %v8737_v34 = vpop.f32.mrf.mxu0 }
 0x1e6   : > { %9207 = vst [vmem:[#allocation41_spill] sm:$0xff] %v8737_v34  ;;  %v8739_v30 = vpop.f32.mrf.mxu1  ;;  %v3568_v34 = vadd.f32 %v8622_v6, %v3206_v24  ;;  %v8767_v24 = vld [vmem:[%s8977_s2] ss:$0 sm:$0xff] }
 0x1e7   : > { %9208 = vst [vmem:[#allocation42_spill] sm:$0xff] %v8739_v30  ;;  %v8741_v15 = vpop.f32.mrf.mxu0 }
 0x1e8   : > { %9209 = vst [vmem:[#allocation43_spill] sm:$0xff] %v8741_v15  ;;  %v8743_v22 = vpop.f32.mrf.mxu1  ;;  %v3207_v15 = vadd.f32 %v8635_v43, %v8538_v26 }
 0x1e9   : > { %9210 = vst [vmem:[#allocation44_spill] sm:$0xff] %v8743_v22  ;;  %v8746_v56 = vpop.f32.mrf.mxu0  ;;  %v3566_v22 = vadd.f32 %v8627_v39, %v3204_v59 }
 0x1ea   : > { %9211 = vst [vmem:[#allocation45_spill] sm:$0xff] %v8746_v56  ;;  %v8748_v58 = vpop.f32.mrf.mxu1  ;;  %v3569_v6 = vadd.f32 %v8631_v5, %v3207_v15  ;;  %v3211_v15 = vadd.f32 %v8651_v25, %v8550_v38 }
 0x1eb   : > { %9212 = vst [vmem:[#allocation46_spill] sm:$0xff] %v8748_v58  ;;  %v5978_v35 = vpop.f32.mrf.mxu0 }
 0x1ec   : > { %v8751_v55 = vpop.f32.mrf.mxu1 }
 0x1ed   : > { %9213 = vst [vmem:[#allocation47_spill] sm:$0xff] %v8751_v55  ;;  %v4635_v30 = vpop.f32.mrf.mxu0  ;;  %v3572_v55 = vadd.f32 %v8637_v61, %v3210_v45  ;;  %v3209_v61 = vadd.f32 %v8655_v4, %v8553_v2  ;;  %v3212_v4 = vadd.f32 %v8663_v17, %v8559_v18 }
 0x1ee   : > { %v5944_v42 = vpop.f32.mrf.mxu1 }
 0x1ef   : > { %v4294_v36 = vadd.f32 %v5944_v42, %v3568_v34  ;;  %v5979_v0 = vpop.f32.mrf.mxu0  ;;  %v3567_v42 = vadd.f32 %v8633_v28, %v3205_v62 }
 0x1f0   : > { %v4165_v26 = vpop.f32.mrf.mxu1 }
 0x1f1   : > { %v4764_v43 = vadd.f32 %v5978_v35, %v4294_v36  ;;  %v4292_v59 = vadd.f32 %v4165_v26, %v3566_v22  ;;  %v4638_v39 = vpop.f32.mrf.mxu0  ;;  %v3214_v36 = vadd.f32 %v8659_v7, %v8556_v27 }
 0x1f2   : > { %v5945_v34 = vpop.f32.mrf.mxu1 }
 0x1f3   : > { %v4803_v37 = vadd.f32 %v8767_v24, %v4764_v43  ;;  %v4762_v48 = vadd.f32 %v4635_v30, %v4292_v59  ;;  %v4295_v63 = vadd.f32 %v5945_v34, %v3569_v6  ;;  %v5982_v56 = vpop.f32.mrf.mxu0  ;;  %v3570_v30 = vadd.f32 %v8641_v21, %v3208_v60 }
 0x1f4   : > { %v4168_v58 = vpop.f32.mrf.mxu1  ;;  %v3576_v59 = vadd.f32 %v8653_v46, %v3214_v36  ;;  %v3574_v34 = vadd.f32 %v8657_v50, %v3212_v4 }
 0x1f5   : > { %4835 = vst [vmem:[%s8777_s9 + $0x10] sm:$0xff] %v4803_v37  ;;  %v4801_v31 = vadd.f32 %v8767_v24, %v4762_v48  ;;  %v4765_v22 = vadd.f32 %v5979_v0, %v4295_v63  ;;  %v4293_v35 = vadd.f32 %v4168_v58, %v3567_v42  ;;  %v4651_v5 = vpop.f32.mrf.mxu0  ;;  %v3573_v58 = vadd.f32 %v8645_v40, %v3211_v15 }
 0x1f6   : > { %v5948_v28 = vpop.f32.mrf.mxu1  ;;  %v3213_v37 = vadd.f32 %v8671_v33, %v8565_v8  ;;  %v3216_v33 = vadd.f32 %v8679_v52, %v8571_v12 }
 0x1f7   : > { %4833 = vst [vmem:[%s8777_s9] sm:$0xff] %v4801_v31  ;;  %v4804_v38 = vadd.f32 %v8767_v24, %v4765_v22  ;;  %v4763_v54 = vadd.f32 %v4638_v39, %v4293_v35  ;;  %v4298_v25 = vadd.f32 %v5948_v28, %v3572_v55  ;;  %v5983_v62 = vpop.f32.mrf.mxu0  ;;  %v3571_v55 = vadd.f32 %v8649_v10, %v3209_v61 }
 0x1f8   : > { %v4181_v45 = vpop.f32.mrf.mxu1 }
 0x1f9   : > { %4836 = vst [vmem:[%s8777_s9 + $0x18] sm:$0xff] %v4804_v38  ;;  %v4802_v21 = vadd.f32 %v8767_v24, %v4763_v54  ;;  %v4768_v0 = vadd.f32 %v5982_v56, %v4298_v25  ;;  %v4296_v26 = vadd.f32 %v4181_v45, %v3570_v30  ;;  %v4654_v2 = vpop.f32.mrf.mxu0  ;;  %v3215_v56 = vadd.f32 %v8667_v23, %v8562_v13 }
 0x1fa   : > { %v5949_v6 = vpop.f32.mrf.mxu1  ;;  %v3218_v23 = vadd.f32 %v8675_v41, %v8568_v53  ;;  %v3575_v30 = vadd.f32 %v8665_v51, %v3213_v37  ;;  %v3219_v54 = vadd.f32 %v8683_v14, %v8574_v16  ;;  %v3217_v45 = vadd.f32 %v8687_v32, %v8577_v11 }
 0x1fb   : > { %4834 = vst [vmem:[%s8777_s9 + $0x8] sm:$0xff] %v4802_v21  ;;  %v4807_v27 = vadd.f32 %v8767_v24, %v4768_v0  ;;  %v4766_v7 = vadd.f32 %v4651_v5, %v4296_v26  ;;  %v4299_v43 = vadd.f32 %v5949_v6, %v3573_v58  ;;  %v5986_v40 = vpop.f32.mrf.mxu0  ;;  %v3577_v31 = vadd.f32 %v8661_v1, %v3215_v56 }
 0x1fc   : > { %v4184_v39 = vpop.f32.mrf.mxu1  ;;  %v3580_v61 = vadd.f32 %v8669_v19, %v3218_v23  ;;  %v3222_v14 = vadd.f32 %v8691_v44, %v8580_v29  ;;  %v3581_v26 = vadd.f32 %v8677_v47, %v3219_v54  ;;  %v3220_v32 = vadd.f32 %v8695_v3, %v8583_v9 }
 0x1fd   : > { %4839 = vst [vmem:[%s8777_s9 + $0x30] sm:$0xff] %v4807_v27  ;;  %v4805_v18 = vadd.f32 %v8767_v24, %v4766_v7  ;;  %v4769_v17 = vadd.f32 %v5983_v62, %v4299_v43  ;;  %v4297_v60 = vadd.f32 %v4184_v39, %v3571_v55  ;;  %v4667_v10 = vpop.f32.mrf.mxu0  ;;  %v3578_v62 = vadd.f32 %v8673_v57, %v3216_v33 }
 0x1fe   : > { %v5952_v42 = vpop.f32.mrf.mxu1  ;;  %v3579_v55 = vadd.f32 %v8681_v49, %v3217_v45  ;;  %v3584_v7 = vadd.f32 %v8685_v20, %v3222_v14  ;;  %v9228_v14 = vld [vmem:[#allocation14_spill] sm:$0xff] }
 0x1ff   : > { %4837 = vst [vmem:[%s8777_s9 + $0x20] sm:$0xff] %v4805_v18  ;;  %v4808_v46 = vadd.f32 %v8767_v24, %v4769_v17  ;;  %v4767_v48 = vadd.f32 %v4654_v2, %v4297_v60  ;;  %v4302_v63 = vadd.f32 %v5952_v42, %v3576_v59  ;;  %v5987_v13 = vpop.f32.mrf.mxu0  ;;  %v9215_v59 = vld [vmem:[#allocation23_spill] sm:$0xff]  ;;  %v9216_v18 = vld [vmem:[#allocation16_spill] sm:$0xff] }
 0x200   : > { %v4197_v15 = vpop.f32.mrf.mxu1  ;;  %v3582_v17 = vadd.f32 %v9216_v18, %v3220_v32 }
 0x201   : > { %4840 = vst [vmem:[%s8777_s9 + $0x38] sm:$0xff] %v4808_v46  ;;  %v4806_v50 = vadd.f32 %v8767_v24, %v4767_v48  ;;  %v4772_v22 = vadd.f32 %v5986_v40, %v4302_v63  ;;  %v4300_v35 = vadd.f32 %v4197_v15, %v3574_v34  ;;  %v4670_v8 = vpop.f32.mrf.mxu0  ;;  %v9214_v40 = vld [vmem:[#allocation5_spill] sm:$0xff]  ;;  %v9218_v34 = vld [vmem:[#allocation27_spill] sm:$0xff]  ;;  %v9219_v63 = vld [vmem:[#allocation22_spill] sm:$0xff] }
 0x202   : > { %v5953_v5 = vpop.f32.mrf.mxu1  ;;  %v3223_v39 = vadd.f32 %v9215_v59, %v9214_v40 }
 0x203   : > { %4838 = vst [vmem:[%s8777_s9 + $0x28] sm:$0xff] %v4806_v50  ;;  %v4811_v53 = vadd.f32 %v8767_v24, %v4772_v22  ;;  %v4770_v41 = vadd.f32 %v4667_v10, %v4300_v35  ;;  %v4303_v28 = vadd.f32 %v5953_v5, %v3577_v31  ;;  %v5990_v1 = vpop.f32.mrf.mxu0  ;;  %v9217_v10 = vld [vmem:[#allocation17_spill] sm:$0xff]  ;;  %v9221_v31 = vld [vmem:[#allocation18_spill] sm:$0xff]  ;;  %v9222_v5 = vld [vmem:[#allocation12_spill] sm:$0xff] }
 0x204   : > { %v4200_v38 = vpop.f32.mrf.mxu1  ;;  %v3221_v42 = vadd.f32 %v9218_v34, %v9217_v10  ;;  %v3585_v50 = vadd.f32 %v9221_v31, %v3223_v39 }
 0x205   : > { %4843 = vst [vmem:[%s8777_s9 + $0x50] sm:$0xff] %v4811_v53  ;;  %v4809_v12 = vadd.f32 %v8767_v24, %v4770_v41  ;;  %v4773_v52 = vadd.f32 %v5987_v13, %v4303_v28  ;;  %v4301_v25 = vadd.f32 %v4200_v38, %v3575_v30  ;;  %v4683_v51 = vpop.f32.mrf.mxu0  ;;  %v9220_v13 = vld [vmem:[#allocation11_spill] sm:$0xff]  ;;  %v9224_v28 = vld [vmem:[#allocation20_spill] sm:$0xff] }
 0x206   : > { %v5956_v36 = vpop.f32.mrf.mxu1  ;;  %v3226_v23 = vadd.f32 %v9220_v13, %v9219_v63  ;;  %v9223_v30 = vld [vmem:[#allocation15_spill] sm:$0xff]  ;;  %v9239_v13 = vld [vmem:[#allocation38_spill] sm:$0xff] }
 0x207   : > { %4841 = vst [vmem:[%s8777_s9 + $0x40] sm:$0xff] %v4809_v12  ;;  %v4812_v19 = vadd.f32 %v8767_v24, %v4773_v52  ;;  %v4771_v58 = vadd.f32 %v4670_v8, %v4301_v25  ;;  %v4306_v21 = vadd.f32 %v5956_v36, %v3580_v61  ;;  %v5991_v16 = vpop.f32.mrf.mxu0  ;;  %v3224_v53 = vadd.f32 %v9223_v30, %v9222_v5  ;;  %v9225_v52 = vld [vmem:[#allocation25_spill] sm:$0xff]  ;;  %v9227_v36 = vld [vmem:[#allocation30_spill] sm:$0xff]  ;;  %v9238_v63 = vld [vmem:[#allocation7_spill] sm:$0xff] }
 0x208   : > { %v4213_v0 = vpop.f32.mrf.mxu1  ;;  %v3588_v25 = vadd.f32 %v9225_v52, %v3226_v23  ;;  %v3231_v23 = vadd.f32 %v9239_v13, %v9238_v63  ;;  %v9241_v5 = vld [vmem:[#allocation6_spill] sm:$0xff]  ;;  %v9242_v30 = vld [vmem:[#allocation40_spill] sm:$0xff]  ;;  %v9256_v13 = vld [vmem:[#allocation45_spill] sm:$0xff] }
 0x209   : > { %4844 = vst [vmem:[%s8777_s9 + $0x58] sm:$0xff] %v4812_v19  ;;  %v4810_v57 = vadd.f32 %v8767_v24, %v4771_v58  ;;  %v4776_v2 = vadd.f32 %v5990_v1, %v4306_v21  ;;  %v4304_v4 = vadd.f32 %v4213_v0, %v3578_v62  ;;  %v4686_v11 = vpop.f32.mrf.mxu0  ;;  %v3583_v1 = vadd.f32 %v9224_v28, %v3221_v42  ;;  %v9226_v62 = vld [vmem:[#allocation21_spill] sm:$0xff] }
 0x20a   : > { %v5957_v6 = vpop.f32.mrf.mxu1  ;;  %v3227_v45 = vadd.f32 %v9227_v36, %v9226_v62  ;;  %v3586_v0 = vadd.f32 %v9228_v14, %v3224_v53  ;;  %v3229_v53 = vadd.f32 %v9242_v30, %v9241_v5 }
 0x20b   : > { %4842 = vst [vmem:[%s8777_s9 + $0x48] sm:$0xff] %v4810_v57  ;;  %v4815_v29 = vadd.f32 %v8767_v24, %v4776_v2  ;;  %v4774_v44 = vadd.f32 %v4683_v51, %v4304_v4  ;;  %v4307_v27 = vadd.f32 %v5957_v6, %v3581_v26  ;;  %v5994_v47 = vpop.f32.mrf.mxu0  ;;  %v9229_v57 = vld [vmem:[#allocation24_spill] sm:$0xff] }
 0x20c   : > { %v4216_v43 = vpop.f32.mrf.mxu1  ;;  %v9230_v2 = vld [vmem:[#allocation32_spill] sm:$0xff] }
 0x20d   : > { %4847 = vst [vmem:[%s8777_s9 + $0x70] sm:$0xff] %v4815_v29  ;;  %v4813_v9 = vadd.f32 %v8767_v24, %v4774_v44  ;;  %v4777_v3 = vadd.f32 %v5991_v16, %v4307_v27  ;;  %v4305_v56 = vadd.f32 %v4216_v43, %v3579_v55  ;;  %v4699_v49 = vpop.f32.mrf.mxu0  ;;  %v3225_v4 = vadd.f32 %v9230_v2, %v9229_v57  ;;  %v9231_v29 = vld [vmem:[#allocation26_spill] sm:$0xff] }
 0x20e   : > { %v5960_v60 = vpop.f32.mrf.mxu1  ;;  %v9232_v44 = vld [vmem:[#allocation34_spill] sm:$0xff] }
 0x20f   : > { %4845 = vst [vmem:[%s8777_s9 + $0x60] sm:$0xff] %v4813_v9  ;;  %v4816_v20 = vadd.f32 %v8767_v24, %v4777_v3  ;;  %v4775_v37 = vadd.f32 %v4686_v11, %v4305_v56  ;;  %v4310_v46 = vadd.f32 %v5960_v60, %v3584_v7  ;;  %v5995_v48 = vpop.f32.mrf.mxu0  ;;  %v3230_v27 = vadd.f32 %v9232_v44, %v9231_v29  ;;  %v9233_v7 = vld [vmem:[#allocation19_spill] sm:$0xff]  ;;  %v9234_v3 = vld [vmem:[#allocation28_spill] sm:$0xff]  ;;  %v9250_v29 = vld [vmem:[#allocation10_spill] sm:$0xff] }
 0x210   : > { %v4229_v15 = vpop.f32.mrf.mxu1  ;;  %v3589_v43 = vadd.f32 %v9233_v7, %v3227_v45  ;;  %v9235_v56 = vld [vmem:[#allocation36_spill] sm:$0xff]  ;;  %v9251_v44 = vld [vmem:[#allocation46_spill] sm:$0xff] }
 0x211   : > { %4848 = vst [vmem:[%s8777_s9 + $0x78] sm:$0xff] %v4816_v20  ;;  %v4814_v22 = vadd.f32 %v8767_v24, %v4775_v37  ;;  %v4780_v35 = vadd.f32 %v5994_v47, %v4310_v46  ;;  %v4308_v8 = vadd.f32 %v4229_v15, %v3582_v17  ;;  %v4702_v33 = vpop.f32.mrf.mxu0  ;;  %v9236_v17 = vld [vmem:[#allocation29_spill] sm:$0xff]  ;;  %v9237_v37 = vld [vmem:[#allocation31_spill] sm:$0xff] }
 0x212   : > { %v5961_v41 = vpop.f32.mrf.mxu1  ;;  %v3587_v60 = vadd.f32 %v9236_v17, %v3225_v4  ;;  %v3592_v46 = vadd.f32 %v9237_v37, %v3230_v27  ;;  %v3235_v27 = vadd.f32 %v9251_v44, %v9250_v29 }
 0x213   : > { %4846 = vst [vmem:[%s8777_s9 + $0x68] sm:$0xff] %v4814_v22  ;;  %v4819_v61 = vadd.f32 %v8767_v24, %v4780_v35  ;;  %v4778_v38 = vadd.f32 %v4699_v49, %v4308_v8  ;;  %v4311_v54 = vadd.f32 %v5961_v41, %v3585_v50  ;;  %v3228_v49 = vadd.f32 %v9235_v56, %v9234_v3  ;;  %v9240_v35 = vld [vmem:[#allocation33_spill] sm:$0xff]  ;;  %v9254_v56 = vld [vmem:[#allocation47_spill] sm:$0xff] }
 0x214   : > { %v5998_v12 = vpop.f32.mrf.mxu0  ;;  %v4232_v51 = vpop.f32.mrf.mxu1  ;;  %v9253_v3 = vld [vmem:[#allocation13_spill] sm:$0xff] }
 0x215   : > { %4851 = vst [vmem:[%s8777_s9 + $0x90] sm:$0xff] %v4819_v61  ;;  %v4817_v19 = vadd.f32 %v8767_v24, %v4778_v38  ;;  %v4781_v58 = vadd.f32 %v5995_v48, %v4311_v54  ;;  %v4309_v21 = vadd.f32 %v4232_v51, %v3583_v1  ;;  %v3590_v8 = vadd.f32 %v9240_v35, %v3228_v49  ;;  %v9243_v38 = vld [vmem:[#allocation9_spill] sm:$0xff]  ;;  %v9244_v54 = vld [vmem:[#allocation42_spill] sm:$0xff] }
 0x216   : > { %v4715_v16 = vpop.f32.mrf.mxu0  ;;  %v5964_v26 = vpop.f32.mrf.mxu1  ;;  %v3233_v49 = vadd.f32 %v9254_v56, %v9253_v3 }
 0x217   : > { %4849 = vst [vmem:[%s8777_s9 + $0x80] sm:$0xff] %v4817_v19  ;;  %v4820_v11 = vadd.f32 %v8767_v24, %v4781_v58  ;;  %v4779_v32 = vadd.f32 %v4702_v33, %v4309_v21  ;;  %v4314_v6 = vadd.f32 %v5964_v26, %v3588_v25  ;;  %v9245_v25 = vld [vmem:[#allocation35_spill] sm:$0xff]  ;;  %v9246_v58 = vld [vmem:[#allocation8_spill] sm:$0xff] }
 0x218   : > { %v5999_v55 = vpop.f32.mrf.mxu0  ;;  %v4245_v47 = vpop.f32.mrf.mxu1  ;;  %v3593_v51 = vadd.f32 %v9245_v25, %v3231_v23  ;;  %v9247_v21 = vld [vmem:[#allocation44_spill] sm:$0xff]  ;;  %v3595_v23 = vadd.f32 %v9256_v13, %v3233_v49 }
 0x219   : > { %4852 = vst [vmem:[%s8777_s9 + $0x98] sm:$0xff] %v4820_v11  ;;  %v4818_v40 = vadd.f32 %v8767_v24, %v4779_v32  ;;  %v4784_v59 = vadd.f32 %v5998_v12, %v4314_v6  ;;  %v4312_v39 = vadd.f32 %v4245_v47, %v3586_v0  ;;  %v3234_v12 = vadd.f32 %v9244_v54, %v9243_v38  ;;  %v9248_v0 = vld [vmem:[#allocation37_spill] sm:$0xff]  ;;  %v9249_v32 = vld [vmem:[#allocation39_spill] sm:$0xff] }
 0x21a   : > { %v4718_v9 = vpop.f32.mrf.mxu0  ;;  %v5965_v18 = vpop.f32.mrf.mxu1  ;;  %v3591_v26 = vadd.f32 %v9248_v0, %v3229_v53 }
 0x21b   : > { %4850 = vst [vmem:[%s8777_s9 + $0x88] sm:$0xff] %v4818_v40  ;;  %v4823_v10 = vadd.f32 %v8767_v24, %v4784_v59  ;;  %v4782_v34 = vadd.f32 %v4715_v16, %v4312_v39  ;;  %v4315_v42 = vadd.f32 %v5965_v18, %v3589_v43  ;;  %v3232_v16 = vadd.f32 %v9247_v21, %v9246_v58  ;;  %v9252_v40 = vld [vmem:[#allocation41_spill] sm:$0xff] }
 0x21c   : > { %v6002_v20 = vpop.f32.mrf.mxu0  ;;  %v4248_v48 = vpop.f32.mrf.mxu1  ;;  %v3596_v6 = vadd.f32 %v9249_v32, %v3234_v12 }
 0x21d   : > { %4855 = vst [vmem:[%s8777_s9 + $0xb0] sm:$0xff] %v4823_v10  ;;  %v4821_v15 = vadd.f32 %v8767_v24, %v4782_v34  ;;  %v4785_v31 = vadd.f32 %v5999_v55, %v4315_v42  ;;  %v4313_v50 = vadd.f32 %v4248_v48, %v3587_v60  ;;  %v3594_v59 = vadd.f32 %v9252_v40, %v3232_v16  ;;  %v9255_v34 = vld [vmem:[#allocation43_spill] sm:$0xff] }
 0x21e   : > { %v4731_v22 = vpop.f32.mrf.mxu0  ;;  %v5968_v33 = vpop.f32.mrf.mxu1  ;;  %v3597_v42 = vadd.f32 %v9255_v34, %v3235_v27 }
 0x21f   : > { %4853 = vst [vmem:[%s8777_s9 + $0xa0] sm:$0xff] %v4821_v15  ;;  %v4824_v41 = vadd.f32 %v8767_v24, %v4785_v31  ;;  %v4783_v28 = vadd.f32 %v4718_v9, %v4313_v50  ;;  %v4318_v1 = vadd.f32 %v5968_v33, %v3592_v46 }
 0x220   : > { %v6003_v61 = vpop.f32.mrf.mxu0  ;;  %v4261_v52 = vpop.f32.mrf.mxu1 }
 0x221   : > { %4856 = vst [vmem:[%s8777_s9 + $0xb8] sm:$0xff] %v4824_v41  ;;  %v4822_v62 = vadd.f32 %v8767_v24, %v4783_v28  ;;  %v4788_v36 = vadd.f32 %v6002_v20, %v4318_v1  ;;  %v4316_v45 = vadd.f32 %v4261_v52, %v3590_v8 }
 0x222   : > { %v4734_v19 = vpop.f32.mrf.mxu0  ;;  %v5969_v14 = vpop.f32.mrf.mxu1 }
 0x223   : > { %4854 = vst [vmem:[%s8777_s9 + $0xa8] sm:$0xff] %v4822_v62  ;;  %v4827_v57 = vadd.f32 %v8767_v24, %v4788_v36  ;;  %v4786_v2 = vadd.f32 %v4731_v22, %v4316_v45  ;;  %v4319_v4 = vadd.f32 %v5969_v14, %v3593_v51 }
 0x224   : > { %v6006_v11 = vpop.f32.mrf.mxu0  ;;  %v4264_v55 = vpop.f32.mrf.mxu1 }
 0x225   : > { %4859 = vst [vmem:[%s8777_s9 + $0xd0] sm:$0xff] %v4827_v57  ;;  %v4825_v47 = vadd.f32 %v8767_v24, %v4786_v2  ;;  %v4789_v7 = vadd.f32 %v6003_v61, %v4319_v4  ;;  %v4317_v43 = vadd.f32 %v4264_v55, %v3591_v26 }
 0x226   : > { %v5972_v39 = vpop.f32.mrf.mxu1  ;;  %v4747_v9 = vpop.f32.mrf.mxu0 }
 0x227   : > { %4857 = vst [vmem:[%s8777_s9 + $0xc0] sm:$0xff] %v4825_v47  ;;  %v4828_v18 = vadd.f32 %v8767_v24, %v4789_v7  ;;  %v4787_v17 = vadd.f32 %v4734_v19, %v4317_v43  ;;  %v4322_v60 = vadd.f32 %v5972_v39, %v3596_v6 }
 0x228   : > { %v4277_v10 = vpop.f32.mrf.mxu1  ;;  %v6007_v63 = vpop.f32.mrf.mxu0 }
 0x229   : > { %4860 = vst [vmem:[%s8777_s9 + $0xd8] sm:$0xff] %v4828_v18  ;;  %v4826_v20 = vadd.f32 %v8767_v24, %v4787_v17  ;;  %v4792_v37 = vadd.f32 %v6006_v11, %v4322_v60  ;;  %v4320_v46 = vadd.f32 %v4277_v10, %v3594_v59 }
 0x22a   : > { %v5973_v48 = vpop.f32.mrf.mxu1  ;;  %v4750_v5 = vpop.f32.mrf.mxu0 }
 0x22b   : > { %4858 = vst [vmem:[%s8777_s9 + $0xc8] sm:$0xff] %v4826_v20  ;;  %v4831_v15 = vadd.f32 %v8767_v24, %v4792_v37  ;;  %v4790_v31 = vadd.f32 %v4747_v9, %v4320_v46  ;;  %v4323_v50 = vadd.f32 %v5973_v48, %v3597_v42 }
 0x22c   : > { %v4280_v22 = vpop.f32.mrf.mxu1 }
 0x22d   : > { %4863 = vst [vmem:[%s8777_s9 + $0xf0] sm:$0xff] %v4831_v15  ;;  %v4829_v35 = vadd.f32 %v8767_v24, %v4790_v31  ;;  %v4793_v8 = vadd.f32 %v6007_v63, %v4323_v50  ;;  %v4321_v33 = vadd.f32 %v4280_v22, %v3595_v23 }
 0x22f   : > { %4861 = vst [vmem:[%s8777_s9 + $0xe0] sm:$0xff] %v4829_v35  ;;  %v4832_v30 = vadd.f32 %v8767_v24, %v4793_v8  ;;  %v4791_v53 = vadd.f32 %v4750_v5, %v4321_v33 }
 0x231   : > { %4864 = vst [vmem:[%s8777_s9 + $0xf8] sm:$0xff] %v4832_v30  ;;  %v4830_v41 = vadd.f32 %v8767_v24, %v4791_v53 }
 0x233   : > { %4862 = vst [vmem:[%s8777_s9 + $0xe8] sm:$0xff] %v4830_v41 }
 0x234   : > { %6141 = shalt.err (!%p6138_p5)
}
 0x235   : > { %s6142_s29 = scalar_lea.hbm %s8921_s21, 4096  ;;  %s6146_s5 = scalar_lea.hbm %s8978_s3, 8192 }
 0x236   : > { %p6143_p6 = scmp.ne.s32.totalorder %s8921_s21, %s6142_s29  ;;  %p6147_p10 = scmp.lt.s32.totalorder %s8921_s21, %s8978_s3 }
 0x237   : > { %p6148_p11 = scmp.lt.s32.totalorder %s6146_s5, %s6142_s29 }
 0x238   : > { %p6144_p7 = pnand %p6143_p6, %p6269_p4 }
 0x239   : > { %p6149_p12 = por %p6148_p11, %p6147_p10 }
 0x23a   : > { %p6145_p9 = pneg %p6144_p7 }
 0x23c   : > { %p6150_p13 = pnand %p6149_p12, %p6145_p9 }
 0x23e   : > { %6153 = shalt.err (!%p6150_p13)
}
 0x23f   : > { %s6207_s8 = smov 128   ;;  %s6208_s9 = smov 8  }
 0x240   : > { %6021 = dma.vmem_to_hbm [thread:$0]  (%p6269_p4), %s8923_s11, 4096, %s8921_s21, %s8930_s15, %s6207_s8, %s6207_s8, %s6208_s9  }
 0x241 PF: > { %p6027_p0 = scmp.ge.s32.totalorder %s6204_s17, 2  ;;  %s4898_s10 = sand.u32 1, %s6184_s12  }
 0x242   : > { %s4899_s18 = scalar_lea.sflag [#allocation3], %s4898_s10 }
 0x243   : > { %p6024_p1 = pnand %p6027_p0, %p6276_p8 }
 0x245   : > { %p6025_p2 = pneg %p6024_p1 }
 0x247   : > { %6179 = dma.done.wait (%p6025_p2), %s4899_s18, 4096  }
 0x248   : > { %6181 = vsyncadd (%p6025_p2), %s4899_s18, 4294963200  ;;  %s16_s17 = sadd.s32 1, %s6204_s17   ;;  %s9257_s12 = smov %s6188_s13 }
 0x249   : > { %p13_p3 = scmp.ge.s32.totalorder %s16_s17, 4   ;;  %s9258_s13 = smov %s6192_s14 }
 0x24a   : > { %s9259_s14 = smov %s6282_s25  ;;  %s9260_s15 = smov %s6200_s16 }
 0x24b   : > { %s9261_s16 = smov %s9263_s20  ;;  %15 = sbr.rel (!%p13_p3) target bundleno = 4 (0x4), region = 84 }
 0x250   :  { %4904 = vsyncpa [#allocation3], 1 }
 0x251   :  { %4906 = vsyncpa [#allocation3 + $0x1], 1 }

</bundles_post_ra>
